<compile_context>
chip_gen: v7x
topology: tpu7x:2x2x1
jax: 0.10.0
libtpu: 0.0.40
codegen_flags: <defaults>
</compile_context>

<pallas_src>
import math
from functools import partial

import jax
import jax.numpy as jnp
from jax.experimental import pallas as pl
from jax.experimental.pallas import tpu as pltpu

# ---------------- config (small synthetic sizes) ----------------
D_MODEL = 32
N_HEADS = 4
N_LAYERS = 2
VOCAB = 64
START_IND = 61
END_IND = 62
IGNORE_IND = 63
LN_EPS = 1e-5


# ---------------- shared math helpers (used in-kernel and in reference) ----
def _matmul_t(a, w):
    # a: (m, k), w: (n, k) -> a @ w.T : (m, n), f32 accumulation on the MXU
    return jax.lax.dot_general(
        a, w, dimension_numbers=(((1,), (1,)), ((), ())),
        preferred_element_type=jnp.float32)


def _layer_norm(y, w, b):
    mu = jnp.mean(y, axis=-1, keepdims=True)
    var = jnp.mean((y - mu) ** 2, axis=-1, keepdims=True)
    return (y - mu) * jax.lax.rsqrt(var + LN_EPS) * w + b


def _gelu_exact(x):
    return 0.5 * x * (1.0 + jax.lax.erf(x * (1.0 / math.sqrt(2.0))))


# ---------------- fused Pallas kernel: N layers + logits + masked CE --------
def ar_fused_kernel(x_ref, mask_ref, gt_ref,
                    in_w_ref, in_b_ref, out_wh_ref, out_b_ref,
                    ln1_w_ref, ln1_b_ref,
                    f1_w_ref, f1_b_ref, f2_w_ref, f2_b_ref,
                    ln2_w_ref, ln2_b_ref, emb_ref,
                    out_ref,
                    *, n_heads, n_layers, bb, seq_len, tc_code, tc_gt,
                    ignore_ind):
    T = seq_len
    x = x_ref[...]                     # (bb*T, d) f32, resident for all layers
    BT, d = x.shape
    dh = d // n_heads
    scale = 1.0 / math.sqrt(dh)
    NEG = jnp.float32(-1e30)

    # --- additive attention bias built ONCE in-kernel from iota (matches
    #     mask[:, :tc, -tc:]=0 and tril of the code block).  With batch folded
    #     into the sublane axis (bb > 1) the per-batch biases are assembled
    #     into a block-diagonal (bb*T, bb*T) bias with -1e30 off-diagonal so
    #     the softmax never mixes batch elements.
    r = jax.lax.broadcasted_iota(jnp.int32, (T, T), 0)
    c = jax.lax.broadcasted_iota(jnp.int32, (T, T), 1)
    code_col = c >= (T - tc_code)
    zero_out = code_col & ((r < tc_code) | ((r >= T - tc_code) & (c > r)))

    if bb == 1:
        bias = jnp.where(zero_out, 0.0, mask_ref[0])                # (T, T)
    else:
        neg_blk = jnp.full((T, T), NEG, jnp.float32)
        rows = []
        for j in range(bb):
            bj = jnp.where(zero_out, 0.0, mask_ref[j])
            rows.append(jnp.concatenate(
                [bj if k == j else neg_blk for k in range(bb)], axis=1))
        bias = jnp.concatenate(rows, axis=0)                        # (BT, BT)

    # --- hoist shared weights (bf16 matmul weights, f32 biases / LN params)
    in_w = in_w_ref[...]
    in_b = in_b_ref[...]
    out_b = out_b_ref[...]
    ln1_w = ln1_w_ref[...]
    ln1_b = ln1_b_ref[...]
    f1_w = f1_w_ref[...]
    f1_b = f1_b_ref[...]
    f2_w = f2_w_ref[...]
    f2_b = f2_b_ref[...]
    ln2_w = ln2_w_ref[...]
    ln2_b = ln2_b_ref[...]
    emb_w = emb_ref[...]

    # --- n_layers shared-weight transformer layers (statically unrolled)
    for _ in range(n_layers):
        xb = x.astype(jnp.bfloat16)
        qkv = _matmul_t(xb, in_w) + in_b                 # (BT, 3d) f32 acc
        # bf16 casts hoisted out of the head loop (one pack per tensor)
        q = qkv[:, :d].astype(jnp.bfloat16)
        k = qkv[:, d:2 * d].astype(jnp.bfloat16)
        v = qkv[:, 2 * d:].astype(jnp.bfloat16)

        attn = None                                      # f32 accumulator
        for h in range(n_heads):                         # small static count
            sl = slice(h * dh, (h + 1) * dh)
            s = _matmul_t(q[:, sl], k[:, sl]) * scale + bias   # (BT, BT) f32
            m = jnp.max(s, axis=-1, keepdims=True)
            e = jnp.exp(s - m)
            denom = jnp.sum(e, axis=-1, keepdims=True)
            o = jnp.dot(e.astype(jnp.bfloat16), v[:, sl],
                        preferred_element_type=jnp.float32)      # (BT, dh)
            # fold 1/denom into the small (BT, dh) output via EUP reciprocal,
            # then fold the head merge directly into the output projection:
            # attn += o_h @ W_out_h.T  (no attn_scratch, no concat)
            o = o * pl.reciprocal(denom, approx=True)
            contrib = _matmul_t(o.astype(jnp.bfloat16), out_wh_ref[h])
            attn = contrib if attn is None else attn + contrib
        attn = attn + out_b                              # (BT, d)

        # post-LN residual block 1 (dropout == identity)
        x1 = _layer_norm(x + attn, ln1_w, ln1_b)

        # FFN
        h1 = _matmul_t(x1.astype(jnp.bfloat16), f1_w) + f1_b      # (BT, 4d)
        g = _gelu_exact(h1)
        h2 = _matmul_t(g.astype(jnp.bfloat16), f2_w) + f2_b       # (BT, d)

        # post-LN residual block 2
        x = _layer_norm(x1 + h2, ln2_w, ln2_b)

    # --- logits + masked cross-entropy, reduced to per-step scalars
    xs_parts = [x[j * T + T - tc_gt - 1: j * T + T - 1, :] for j in range(bb)]
    xs = xs_parts[0] if bb == 1 else jnp.concatenate(xs_parts, axis=0)
    logits = _matmul_t(xs.astype(jnp.bfloat16), emb_w)   # (bb*tc_gt, V)

    pk_parts = [gt_ref[j] for j in range(bb)]            # each (tc_gt, 2)
    packed = pk_parts[0] if bb == 1 else jnp.concatenate(pk_parts, axis=0)
    y_raw = packed[:, 0:1]                               # (bb*tc_gt, 1) int32
    gtm_i = packed[:, 1:2]
    gtm_f = gtm_i.astype(jnp.float32)
    logits = logits * gtm_f                   # h = h * gt_mask[..., None]
    y = y_raw * gtm_i + ignore_ind * (1 - gtm_i)

    col = jax.lax.broadcasted_iota(jnp.int32, logits.shape, 1)
    onehot = (col == y).astype(jnp.float32)
    picked = jnp.sum(logits * onehot, axis=-1, keepdims=True)
    m = jnp.max(logits, axis=-1, keepdims=True)
    lse = m + jnp.log(jnp.sum(jnp.exp(logits - m), axis=-1, keepdims=True))
    valid = (y != ignore_ind).astype(jnp.float32)

    # single lane-packed (1, 2) store: [loss_sum, valid_count]
    out_ref[0] = jnp.concatenate(
        [jnp.sum((lse - picked) * valid, keepdims=True),
         jnp.sum(valid, keepdims=True)], axis=-1)


# ---------------- grid-shape heuristic ----------------
def _num_grid_steps(b):
    # Multi-TensorCore chips (v7x, v4/v5p megacore) want a "parallel" batch
    # grid so both cores stay busy; single-TC chips (v5e/v6e) prefer ONE fused
    # step with batch folded into the sublane dimension.
    try:
        kind = jax.devices()[0].device_kind.lower()
        multi_tc = ("7" in kind) or ("v4" in kind) or ("v5p" in kind)
    except Exception:   # never let detection break the kernel
        multi_tc = False
    return 2 if (multi_tc and b >= 2 and b % 2 == 0) else 1


# ---------------- AR.forward (infer=False branch) ----------------
def ar_forward_loss(text, prom, code, mask, gt, gt_mask, params,
                    n_heads=N_HEADS, n_layers=N_LAYERS, ignore_ind=IGNORE_IND):
    x = jnp.concatenate([text, prom, code], axis=1).astype(jnp.float32)
    b, T, d = x.shape
    tc_code = code.shape[1]
    tc_gt = gt.shape[1]
    dh = d // n_heads

    num_steps = _num_grid_steps(b)
    bb = b // num_steps                       # batch elements folded per step

    x2 = x.reshape(b * T, d)                  # batch folded into sublanes
    packed = jnp.stack([gt.astype(jnp.int32), gt_mask.astype(jnp.int32)],
                       axis=-1)               # (b, tc_gt, 2) one narrow DMA

    # output projection pre-split per head: (n_heads, d, dh) so the head merge
    # folds into per-head MXU accumulation inside the kernel.
    out_w_heads = params["out_w"].reshape(d, n_heads, dh).transpose(1, 0, 2)

    # bf16 copies of MXU matmul weights (halves weight DMA; f32 accumulation
    # requested in-kernel); biases / LayerNorm params stay f32.
    weights = (
        params["in_w"].astype(jnp.bfloat16), params["in_b"],
        out_w_heads.astype(jnp.bfloat16), params["out_b"],
        params["ln1_w"], params["ln1_b"],
        params["f1_w"].astype(jnp.bfloat16), params["f1_b"],
        params["f2_w"].astype(jnp.bfloat16), params["f2_b"],
        params["ln2_w"], params["ln2_b"],
        params["emb_w"].astype(jnp.bfloat16),
    )
    w_specs = [pl.BlockSpec(w.shape, lambda i, nd=w.ndim: (0,) * nd)
               for w in weights]

    out = pl.pallas_call(
        partial(ar_fused_kernel, n_heads=n_heads, n_layers=n_layers, bb=bb,
                seq_len=T, tc_code=tc_code, tc_gt=tc_gt,
                ignore_ind=ignore_ind),
        out_shape=jax.ShapeDtypeStruct((num_steps, 1, 2), jnp.float32),
        grid=(num_steps,),
        in_specs=[pl.BlockSpec((bb * T, d), lambda i: (i, 0)),
                  pl.BlockSpec((bb, T, T), lambda i: (i, 0, 0)),
                  pl.BlockSpec((bb, tc_gt, 2), lambda i: (i, 0, 0))] + w_specs,
        out_specs=pl.BlockSpec((1, 1, 2), lambda i: (i, 0, 0)),
        compiler_params=pltpu.CompilerParams(
            dimension_semantics=("parallel",)),
    )(x2, mask.astype(jnp.float32), packed, *weights)

    # final tiny reduction over grid steps (2 scalars each) is glue
    return jnp.sum(out[:, 0, 0]) / jnp.sum(out[:, 0, 1])


# ---------------- pure-JAX f32 reference (for validation) ----------------
def _ref_layer(x, mask, p, n_heads):
    b, T, d = x.shape
    dh = d // n_heads
    qkv = jnp.einsum('btd,ed->bte', x, p["in_w"]) + p["in_b"][0]
    q, k, v = qkv[..., :d], qkv[..., d:2 * d], qkv[..., 2 * d:]
    qh = q.reshape(b, T, n_heads, dh).transpose(0, 2, 1, 3) / math.sqrt(dh)
    kh = k.reshape(b, T, n_heads, dh).transpose(0, 2, 1, 3)
    vh = v.reshape(b, T, n_heads, dh).transpose(0, 2, 1, 3)
    s = jnp.einsum('bhqc,bhkc->bhqk', qh, kh) + mask[:, None, :, :]
    pa = jax.nn.softmax(s, axis=-1)
    o = jnp.einsum('bhqk,bhkc->bhqc', pa, vh).transpose(0, 2, 1, 3).reshape(b, T, d)
    o = jnp.einsum('btd,ed->bte', o, p["out_w"]) + p["out_b"][0]
    x1 = _layer_norm(x + o, p["ln1_w"][0], p["ln1_b"][0])
    h1 = jnp.einsum('btd,ed->bte', x1, p["f1_w"]) + p["f1_b"][0]
    g = _gelu_exact(h1)
    h2 = jnp.einsum('btd,ed->bte', g, p["f2_w"]) + p["f2_b"][0]
    return _layer_norm(x1 + h2, p["ln2_w"][0], p["ln2_b"][0])


def _ref_loss(text, prom, code, mask, gt, gt_mask, p):
    x = jnp.concatenate([text, prom, code], axis=1).astype(jnp.float32)
    tc = code.shape[1]
    mask = mask.astype(jnp.float32)
    mask = mask.at[:, :tc, -tc:].set(0.0)
    mask = mask.at[:, -tc:, -tc:].set(jnp.tril(mask[:, -tc:, -tc:]))
    for _ in range(N_LAYERS):
        x = _ref_layer(x, mask, p, N_HEADS)
    xs = x[:, -(gt.shape[1] + 1):-1, :]
    logits = jnp.einsum('btd,vd->btv', xs, p["emb_w"])
    gtm = gt_mask.astype(jnp.float32)
    logits = logits * gtm[..., None]
    gi = gt_mask.astype(gt.dtype)
    y = gt * gi + IGNORE_IND * (1 - gi)
    logp = jax.nn.log_softmax(logits, axis=-1)
    picked = jnp.take_along_axis(logp, y[..., None], axis=-1)[..., 0]
    valid = (y != IGNORE_IND).astype(jnp.float32)
    return -jnp.sum(picked * valid) / jnp.sum(valid)


# ---------------- deterministic parameter init ----------------
def init_params(key, d=D_MODEL, vocab=VOCAB):
    ks = jax.random.split(key, 8)

    def nrm(k, shape, s=0.05):
        return jax.random.normal(k, shape, jnp.float32) * s

    return {
        "in_w": nrm(ks[0], (3 * d, d)),
        "in_b": jnp.zeros((1, 3 * d), jnp.float32),
        "out_w": nrm(ks[1], (d, d)),
        "out_b": jnp.zeros((1, d), jnp.float32),
        "ln1_w": jnp.ones((1, d), jnp.float32),
        "ln1_b": jnp.zeros((1, d), jnp.float32),
        "f1_w": nrm(ks[2], (4 * d, d)),
        "f1_b": nrm(ks[3], (1, 4 * d), 0.01),
        "f2_w": nrm(ks[4], (d, 4 * d)),
        "f2_b": nrm(ks[5], (1, d), 0.01),
        "ln2_w": jnp.ones((1, d), jnp.float32),
        "ln2_b": jnp.zeros((1, d), jnp.float32),
        "emb_w": nrm(ks[6], (vocab, d), 0.1),   # wave_emb.weight (V, d)
    }


if __name__ == "__main__":
    key = jax.random.PRNGKey(0)
    kp, kt, kpr, kc, kg = jax.random.split(key, 5)
    params = init_params(kp)

    b, t_text, t_prom, t_code = 2, 6, 5, 5
    T = t_text + t_prom + t_code

    text = jax.random.normal(kt, (b, t_text, D_MODEL), jnp.float32) * 0.1
    prom = jax.random.normal(kpr, (b, t_prom, D_MODEL), jnp.float32) * 0.1
    code = jax.random.normal(kc, (b, t_code, D_MODEL), jnp.float32) * 0.1
    mask = jnp.ones((b, T, T), jnp.float32)   # float attn_mask -> additive bias
    gt = jax.random.randint(kg, (b, t_code), 0, START_IND).astype(jnp.int32)
    gt_mask = jnp.array([[1, 1, 1, 1, 0], [1, 1, 1, 0, 0]], dtype=jnp.bool_)

    loss = jax.jit(ar_forward_loss)(text, prom, code, mask, gt, gt_mask, params)
    loss = jax.block_until_ready(loss)

    ref = _ref_loss(text, prom, code, mask, gt, gt_mask, params)
    assert jnp.isfinite(loss), loss
    # kernel uses bf16 MXU operands (f32 accumulation) + approx reciprocal,
    # so tolerance vs. the pure-f32 reference is slightly relaxed.
    assert jnp.allclose(loss, ref, rtol=2e-3, atol=2e-3), (float(loss), float(ref))
    print("KERNEL_OK")
</pallas_src>

<mosaic_0001>
module attributes {stable_mosaic.version = 11 : i64} {
  func.func @ar_fused_kernel(%arg0: i32, %arg1: memref<32x32xf32, #tpu.memory_space<vmem>>, %arg2: memref<2x16x16xf32, #tpu.memory_space<vmem>>, %arg3: memref<2x5x2xi32, #tpu.memory_space<vmem>>, %arg4: memref<96x32xbf16, #tpu.memory_space<vmem>>, %arg5: memref<1x96xf32, #tpu.memory_space<vmem>>, %arg6: memref<4x32x8xbf16, #tpu.memory_space<vmem>>, %arg7: memref<1x32xf32, #tpu.memory_space<vmem>>, %arg8: memref<1x32xf32, #tpu.memory_space<vmem>>, %arg9: memref<1x32xf32, #tpu.memory_space<vmem>>, %arg10: memref<128x32xbf16, #tpu.memory_space<vmem>>, %arg11: memref<1x128xf32, #tpu.memory_space<vmem>>, %arg12: memref<32x128xbf16, #tpu.memory_space<vmem>>, %arg13: memref<1x32xf32, #tpu.memory_space<vmem>>, %arg14: memref<1x32xf32, #tpu.memory_space<vmem>>, %arg15: memref<1x32xf32, #tpu.memory_space<vmem>>, %arg16: memref<64x32xbf16, #tpu.memory_space<vmem>>, %arg17: memref<1x1x2xf32, #tpu.memory_space<vmem>>) attributes {dimension_semantics = [#tpu.dimension_semantics<parallel>], iteration_bounds = array<i64: 1>, scalar_prefetch = 0 : i64, scratch_operands = 0 : i64, tpu.core_type = #tpu.core_type<tc>, window_params = [{transform_indices = @transform_0, window_bounds = array<i64: 32, 32>}, {transform_indices = @transform_1, window_bounds = array<i64: 2, 16, 16>}, {transform_indices = @transform_2, window_bounds = array<i64: 2, 5, 2>}, {pipeline_mode = #tpu.pipeline_mode<synchronous>, transform_indices = @transform_3, window_bounds = array<i64: 96, 32>}, {pipeline_mode = #tpu.pipeline_mode<synchronous>, transform_indices = @transform_4, window_bounds = array<i64: 1, 96>}, {pipeline_mode = #tpu.pipeline_mode<synchronous>, transform_indices = @transform_5, window_bounds = array<i64: 4, 32, 8>}, {pipeline_mode = #tpu.pipeline_mode<synchronous>, transform_indices = @transform_6, window_bounds = array<i64: 1, 32>}, {pipeline_mode = #tpu.pipeline_mode<synchronous>, transform_indices = @transform_7, window_bounds = array<i64: 1, 32>}, {pipeline_mode = #tpu.pipeline_mode<synchronous>, transform_indices = @transform_8, window_bounds = array<i64: 1, 32>}, {pipeline_mode = #tpu.pipeline_mode<synchronous>, transform_indices = @transform_9, window_bounds = array<i64: 128, 32>}, {pipeline_mode = #tpu.pipeline_mode<synchronous>, transform_indices = @transform_10, window_bounds = array<i64: 1, 128>}, {pipeline_mode = #tpu.pipeline_mode<synchronous>, transform_indices = @transform_11, window_bounds = array<i64: 32, 128>}, {pipeline_mode = #tpu.pipeline_mode<synchronous>, transform_indices = @transform_12, window_bounds = array<i64: 1, 32>}, {pipeline_mode = #tpu.pipeline_mode<synchronous>, transform_indices = @transform_13, window_bounds = array<i64: 1, 32>}, {pipeline_mode = #tpu.pipeline_mode<synchronous>, transform_indices = @transform_14, window_bounds = array<i64: 1, 32>}, {pipeline_mode = #tpu.pipeline_mode<synchronous>, transform_indices = @transform_15, window_bounds = array<i64: 64, 32>}, {transform_indices = @transform_16, window_bounds = array<i64: 1, 1, 2>}]} {
    %c0 = arith.constant 0 : index
    %c0_0 = arith.constant 0 : index
    %0 = vector.load %arg1[%c0, %c0_0] : memref<32x32xf32, #tpu.memory_space<vmem>>, vector<32x32xf32>
    %1 = tpu.iota {dimensions = array<i32: 0>} : vector<16x16xi32>
    %2 = tpu.iota {dimensions = array<i32: 1>} : vector<16x16xi32>
    %c11_i32 = arith.constant 11 : i32
    %3 = vector.broadcast %c11_i32 : i32 to vector<16x16xi32>
    %4 = arith.cmpi sge, %2, %3 : vector<16x16xi32>
    %c5_i32 = arith.constant 5 : i32
    %5 = vector.broadcast %c5_i32 : i32 to vector<16x16xi32>
    %6 = arith.cmpi slt, %1, %5 : vector<16x16xi32>
    %c11_i32_1 = arith.constant 11 : i32
    %7 = vector.broadcast %c11_i32_1 : i32 to vector<16x16xi32>
    %8 = arith.cmpi sge, %1, %7 : vector<16x16xi32>
    %9 = arith.cmpi sgt, %2, %1 : vector<16x16xi32>
    %10 = arith.andi %8, %9 : vector<16x16xi1>
    %11 = arith.ori %6, %10 : vector<16x16xi1>
    %12 = arith.andi %4, %11 : vector<16x16xi1>
    %cst = arith.constant -1.000000e+30 : f32
    %13 = vector.broadcast %cst : f32 to vector<16x16xf32>
    %c0_2 = arith.constant 0 : index
    %c0_3 = arith.constant 0 : index
    %c0_4 = arith.constant 0 : index
    %14 = vector.load %arg2[%c0_2, %c0_3, %c0_4] : memref<2x16x16xf32, #tpu.memory_space<vmem>>, vector<1x16x16xf32>
    %15 = vector.shape_cast %14 : vector<1x16x16xf32> to vector<16x16xf32>
    %cst_5 = arith.constant 0.000000e+00 : f32
    %16 = vector.broadcast %cst_5 : f32 to vector<16x16xf32>
    %17 = arith.select %12, %16, %15 : vector<16x16xi1>, vector<16x16xf32>
    %18 = tpu.concatenate %17, %13 in 1 : vector<16x16xf32>, vector<16x16xf32> -> vector<16x32xf32>
    %c1 = arith.constant 1 : index
    %c0_6 = arith.constant 0 : index
    %c0_7 = arith.constant 0 : index
    %19 = vector.load %arg2[%c1, %c0_6, %c0_7] : memref<2x16x16xf32, #tpu.memory_space<vmem>>, vector<1x16x16xf32>
    %20 = vector.shape_cast %19 : vector<1x16x16xf32> to vector<16x16xf32>
    %cst_8 = arith.constant 0.000000e+00 : f32
    %21 = vector.broadcast %cst_8 : f32 to vector<16x16xf32>
    %22 = arith.select %12, %21, %20 : vector<16x16xi1>, vector<16x16xf32>
    %23 = tpu.concatenate %13, %22 in 1 : vector<16x16xf32>, vector<16x16xf32> -> vector<16x32xf32>
    %24 = tpu.concatenate %18, %23 in 0 : vector<16x32xf32>, vector<16x32xf32> -> vector<32x32xf32>
    %c0_9 = arith.constant 0 : index
    %c0_10 = arith.constant 0 : index
    %25 = vector.load %arg4[%c0_9, %c0_10] : memref<96x32xbf16, #tpu.memory_space<vmem>>, vector<96x32xbf16>
    %c0_11 = arith.constant 0 : index
    %c0_12 = arith.constant 0 : index
    %26 = vector.load %arg5[%c0_11, %c0_12] : memref<1x96xf32, #tpu.memory_space<vmem>>, vector<1x96xf32>
    %c0_13 = arith.constant 0 : index
    %c0_14 = arith.constant 0 : index
    %27 = vector.load %arg7[%c0_13, %c0_14] : memref<1x32xf32, #tpu.memory_space<vmem>>, vector<1x32xf32>
    %c0_15 = arith.constant 0 : index
    %c0_16 = arith.constant 0 : index
    %28 = vector.load %arg8[%c0_15, %c0_16] : memref<1x32xf32, #tpu.memory_space<vmem>>, vector<1x32xf32>
    %c0_17 = arith.constant 0 : index
    %c0_18 = arith.constant 0 : index
    %29 = vector.load %arg9[%c0_17, %c0_18] : memref<1x32xf32, #tpu.memory_space<vmem>>, vector<1x32xf32>
    %c0_19 = arith.constant 0 : index
    %c0_20 = arith.constant 0 : index
    %30 = vector.load %arg10[%c0_19, %c0_20] : memref<128x32xbf16, #tpu.memory_space<vmem>>, vector<128x32xbf16>
    %c0_21 = arith.constant 0 : index
    %c0_22 = arith.constant 0 : index
    %31 = vector.load %arg11[%c0_21, %c0_22] : memref<1x128xf32, #tpu.memory_space<vmem>>, vector<1x128xf32>
    %c0_23 = arith.constant 0 : index
    %c0_24 = arith.constant 0 : index
    %32 = vector.load %arg12[%c0_23, %c0_24] : memref<32x128xbf16, #tpu.memory_space<vmem>>, vector<32x128xbf16>
    %c0_25 = arith.constant 0 : index
    %c0_26 = arith.constant 0 : index
    %33 = vector.load %arg13[%c0_25, %c0_26] : memref<1x32xf32, #tpu.memory_space<vmem>>, vector<1x32xf32>
    %c0_27 = arith.constant 0 : index
    %c0_28 = arith.constant 0 : index
    %34 = vector.load %arg14[%c0_27, %c0_28] : memref<1x32xf32, #tpu.memory_space<vmem>>, vector<1x32xf32>
    %c0_29 = arith.constant 0 : index
    %c0_30 = arith.constant 0 : index
    %35 = vector.load %arg15[%c0_29, %c0_30] : memref<1x32xf32, #tpu.memory_space<vmem>>, vector<1x32xf32>
    %c0_31 = arith.constant 0 : index
    %c0_32 = arith.constant 0 : index
    %36 = vector.load %arg16[%c0_31, %c0_32] : memref<64x32xbf16, #tpu.memory_space<vmem>>, vector<64x32xbf16>
    %37 = arith.truncf %0 : vector<32x32xf32> to vector<32x32xbf16>
    %cst_33 = arith.constant dense<0.000000e+00> : vector<32x96xf32>
    %38 = tpu.matmul %37, %25, %cst_33 {dimension_numbers = #tpu.dot_dimension_numbers<[1], [1], [0], [0], [0, 0, 1, 0], [], []>} : vector<32x32xbf16>, vector<96x32xbf16>, vector<32x96xf32> -> vector<32x96xf32>
    %39 = vector.broadcast %26 : vector<1x96xf32> to vector<32x96xf32>
    %40 = arith.addf %38, %39 : vector<32x96xf32>
    %41 = vector.extract_strided_slice %40 {offsets = [0, 0], sizes = [32, 32], strides = [1, 1]} : vector<32x96xf32> to vector<32x32xf32>
    %42 = arith.truncf %41 : vector<32x32xf32> to vector<32x32xbf16>
    %43 = vector.extract_strided_slice %40 {offsets = [0, 32], sizes = [32, 32], strides = [1, 1]} : vector<32x96xf32> to vector<32x32xf32>
    %44 = arith.truncf %43 : vector<32x32xf32> to vector<32x32xbf16>
    %45 = vector.extract_strided_slice %40 {offsets = [0, 64], sizes = [32, 32], strides = [1, 1]} : vector<32x96xf32> to vector<32x32xf32>
    %46 = arith.truncf %45 : vector<32x32xf32> to vector<32x32xbf16>
    %47 = vector.extract_strided_slice %42 {offsets = [0, 0], sizes = [32, 8], strides = [1, 1]} : vector<32x32xbf16> to vector<32x8xbf16>
    %48 = vector.extract_strided_slice %44 {offsets = [0, 0], sizes = [32, 8], strides = [1, 1]} : vector<32x32xbf16> to vector<32x8xbf16>
    %cst_34 = arith.constant dense<0.000000e+00> : vector<32x32xf32>
    %49 = tpu.matmul %47, %48, %cst_34 {dimension_numbers = #tpu.dot_dimension_numbers<[1], [1], [0], [0], [0, 0, 1, 0], [], []>} : vector<32x8xbf16>, vector<32x8xbf16>, vector<32x32xf32> -> vector<32x32xf32>
    %cst_35 = arith.constant 0.353553385 : f32
    %50 = vector.broadcast %cst_35 : f32 to vector<32x32xf32>
    %51 = arith.mulf %49, %50 : vector<32x32xf32>
    %52 = arith.addf %51, %24 : vector<32x32xf32>
    %cst_36 = arith.constant dense<0xFF800000> : vector<32xf32>
    %53 = vector.multi_reduction <maximumf>, %52, %cst_36 [1] : vector<32x32xf32> to vector<32xf32>
    %54 = vector.shape_cast %53 : vector<32xf32> to vector<32x1xf32>
    %55 = vector.broadcast %54 : vector<32x1xf32> to vector<32x32xf32>
    %56 = arith.subf %52, %55 : vector<32x32xf32>
    %57 = math.exp %56 : vector<32x32xf32>
    %cst_37 = arith.constant dense<0.000000e+00> : vector<32xf32>
    %58 = vector.multi_reduction <add>, %57, %cst_37 [1] : vector<32x32xf32> to vector<32xf32>
    %59 = vector.shape_cast %58 : vector<32xf32> to vector<32x1xf32>
    %60 = arith.truncf %57 : vector<32x32xf32> to vector<32x32xbf16>
    %61 = vector.extract_strided_slice %46 {offsets = [0, 0], sizes = [32, 8], strides = [1, 1]} : vector<32x32xbf16> to vector<32x8xbf16>
    %cst_38 = arith.constant dense<0.000000e+00> : vector<32x8xf32>
    %62 = tpu.matmul %60, %61, %cst_38 {dimension_numbers = #tpu.dot_dimension_numbers<[1], [0], [0], [1], [0, 0, 1, 1], [], []>} : vector<32x32xbf16>, vector<32x8xbf16>, vector<32x8xf32> -> vector<32x8xf32>
    %63 = tpu.reciprocal %59 {approx = true} : vector<32x1xf32> -> vector<32x1xf32>
    %64 = vector.broadcast %63 : vector<32x1xf32> to vector<32x8xf32>
    %65 = arith.mulf %62, %64 : vector<32x8xf32>
    %66 = arith.truncf %65 : vector<32x8xf32> to vector<32x8xbf16>
    %c0_39 = arith.constant 0 : index
    %c0_40 = arith.constant 0 : index
    %c0_41 = arith.constant 0 : index
    %67 = vector.load %arg6[%c0_39, %c0_40, %c0_41] : memref<4x32x8xbf16, #tpu.memory_space<vmem>>, vector<1x32x8xbf16>
    %68 = vector.shape_cast %67 : vector<1x32x8xbf16> to vector<32x8xbf16>
    %cst_42 = arith.constant dense<0.000000e+00> : vector<32x32xf32>
    %69 = tpu.matmul %66, %68, %cst_42 {dimension_numbers = #tpu.dot_dimension_numbers<[1], [1], [0], [0], [0, 0, 1, 0], [], []>} : vector<32x8xbf16>, vector<32x8xbf16>, vector<32x32xf32> -> vector<32x32xf32>
    %70 = vector.extract_strided_slice %42 {offsets = [0, 8], sizes = [32, 8], strides = [1, 1]} : vector<32x32xbf16> to vector<32x8xbf16>
    %71 = vector.extract_strided_slice %44 {offsets = [0, 8], sizes = [32, 8], strides = [1, 1]} : vector<32x32xbf16> to vector<32x8xbf16>
    %cst_43 = arith.constant dense<0.000000e+00> : vector<32x32xf32>
    %72 = tpu.matmul %70, %71, %cst_43 {dimension_numbers = #tpu.dot_dimension_numbers<[1], [1], [0], [0], [0, 0, 1, 0], [], []>} : vector<32x8xbf16>, vector<32x8xbf16>, vector<32x32xf32> -> vector<32x32xf32>
    %cst_44 = arith.constant 0.353553385 : f32
    %73 = vector.broadcast %cst_44 : f32 to vector<32x32xf32>
    %74 = arith.mulf %72, %73 : vector<32x32xf32>
    %75 = arith.addf %74, %24 : vector<32x32xf32>
    %cst_45 = arith.constant dense<0xFF800000> : vector<32xf32>
    %76 = vector.multi_reduction <maximumf>, %75, %cst_45 [1] : vector<32x32xf32> to vector<32xf32>
    %77 = vector.shape_cast %76 : vector<32xf32> to vector<32x1xf32>
    %78 = vector.broadcast %77 : vector<32x1xf32> to vector<32x32xf32>
    %79 = arith.subf %75, %78 : vector<32x32xf32>
    %80 = math.exp %79 : vector<32x32xf32>
    %cst_46 = arith.constant dense<0.000000e+00> : vector<32xf32>
    %81 = vector.multi_reduction <add>, %80, %cst_46 [1] : vector<32x32xf32> to vector<32xf32>
    %82 = vector.shape_cast %81 : vector<32xf32> to vector<32x1xf32>
    %83 = arith.truncf %80 : vector<32x32xf32> to vector<32x32xbf16>
    %84 = vector.extract_strided_slice %46 {offsets = [0, 8], sizes = [32, 8], strides = [1, 1]} : vector<32x32xbf16> to vector<32x8xbf16>
    %cst_47 = arith.constant dense<0.000000e+00> : vector<32x8xf32>
    %85 = tpu.matmul %83, %84, %cst_47 {dimension_numbers = #tpu.dot_dimension_numbers<[1], [0], [0], [1], [0, 0, 1, 1], [], []>} : vector<32x32xbf16>, vector<32x8xbf16>, vector<32x8xf32> -> vector<32x8xf32>
    %86 = tpu.reciprocal %82 {approx = true} : vector<32x1xf32> -> vector<32x1xf32>
    %87 = vector.broadcast %86 : vector<32x1xf32> to vector<32x8xf32>
    %88 = arith.mulf %85, %87 : vector<32x8xf32>
    %89 = arith.truncf %88 : vector<32x8xf32> to vector<32x8xbf16>
    %c1_48 = arith.constant 1 : index
    %c0_49 = arith.constant 0 : index
    %c0_50 = arith.constant 0 : index
    %90 = vector.load %arg6[%c1_48, %c0_49, %c0_50] : memref<4x32x8xbf16, #tpu.memory_space<vmem>>, vector<1x32x8xbf16>
    %91 = vector.shape_cast %90 : vector<1x32x8xbf16> to vector<32x8xbf16>
    %cst_51 = arith.constant dense<0.000000e+00> : vector<32x32xf32>
    %92 = tpu.matmul %89, %91, %cst_51 {dimension_numbers = #tpu.dot_dimension_numbers<[1], [1], [0], [0], [0, 0, 1, 0], [], []>} : vector<32x8xbf16>, vector<32x8xbf16>, vector<32x32xf32> -> vector<32x32xf32>
    %93 = arith.addf %69, %92 : vector<32x32xf32>
    %94 = vector.extract_strided_slice %42 {offsets = [0, 16], sizes = [32, 8], strides = [1, 1]} : vector<32x32xbf16> to vector<32x8xbf16>
    %95 = vector.extract_strided_slice %44 {offsets = [0, 16], sizes = [32, 8], strides = [1, 1]} : vector<32x32xbf16> to vector<32x8xbf16>
    %cst_52 = arith.constant dense<0.000000e+00> : vector<32x32xf32>
    %96 = tpu.matmul %94, %95, %cst_52 {dimension_numbers = #tpu.dot_dimension_numbers<[1], [1], [0], [0], [0, 0, 1, 0], [], []>} : vector<32x8xbf16>, vector<32x8xbf16>, vector<32x32xf32> -> vector<32x32xf32>
    %cst_53 = arith.constant 0.353553385 : f32
    %97 = vector.broadcast %cst_53 : f32 to vector<32x32xf32>
    %98 = arith.mulf %96, %97 : vector<32x32xf32>
    %99 = arith.addf %98, %24 : vector<32x32xf32>
    %cst_54 = arith.constant dense<0xFF800000> : vector<32xf32>
    %100 = vector.multi_reduction <maximumf>, %99, %cst_54 [1] : vector<32x32xf32> to vector<32xf32>
    %101 = vector.shape_cast %100 : vector<32xf32> to vector<32x1xf32>
    %102 = vector.broadcast %101 : vector<32x1xf32> to vector<32x32xf32>
    %103 = arith.subf %99, %102 : vector<32x32xf32>
    %104 = math.exp %103 : vector<32x32xf32>
    %cst_55 = arith.constant dense<0.000000e+00> : vector<32xf32>
    %105 = vector.multi_reduction <add>, %104, %cst_55 [1] : vector<32x32xf32> to vector<32xf32>
    %106 = vector.shape_cast %105 : vector<32xf32> to vector<32x1xf32>
    %107 = arith.truncf %104 : vector<32x32xf32> to vector<32x32xbf16>
    %108 = vector.extract_strided_slice %46 {offsets = [0, 16], sizes = [32, 8], strides = [1, 1]} : vector<32x32xbf16> to vector<32x8xbf16>
    %cst_56 = arith.constant dense<0.000000e+00> : vector<32x8xf32>
    %109 = tpu.matmul %107, %108, %cst_56 {dimension_numbers = #tpu.dot_dimension_numbers<[1], [0], [0], [1], [0, 0, 1, 1], [], []>} : vector<32x32xbf16>, vector<32x8xbf16>, vector<32x8xf32> -> vector<32x8xf32>
    %110 = tpu.reciprocal %106 {approx = true} : vector<32x1xf32> -> vector<32x1xf32>
    %111 = vector.broadcast %110 : vector<32x1xf32> to vector<32x8xf32>
    %112 = arith.mulf %109, %111 : vector<32x8xf32>
    %113 = arith.truncf %112 : vector<32x8xf32> to vector<32x8xbf16>
    %c2 = arith.constant 2 : index
    %c0_57 = arith.constant 0 : index
    %c0_58 = arith.constant 0 : index
    %114 = vector.load %arg6[%c2, %c0_57, %c0_58] : memref<4x32x8xbf16, #tpu.memory_space<vmem>>, vector<1x32x8xbf16>
    %115 = vector.shape_cast %114 : vector<1x32x8xbf16> to vector<32x8xbf16>
    %cst_59 = arith.constant dense<0.000000e+00> : vector<32x32xf32>
    %116 = tpu.matmul %113, %115, %cst_59 {dimension_numbers = #tpu.dot_dimension_numbers<[1], [1], [0], [0], [0, 0, 1, 0], [], []>} : vector<32x8xbf16>, vector<32x8xbf16>, vector<32x32xf32> -> vector<32x32xf32>
    %117 = arith.addf %93, %116 : vector<32x32xf32>
    %118 = vector.extract_strided_slice %42 {offsets = [0, 24], sizes = [32, 8], strides = [1, 1]} : vector<32x32xbf16> to vector<32x8xbf16>
    %119 = vector.extract_strided_slice %44 {offsets = [0, 24], sizes = [32, 8], strides = [1, 1]} : vector<32x32xbf16> to vector<32x8xbf16>
    %cst_60 = arith.constant dense<0.000000e+00> : vector<32x32xf32>
    %120 = tpu.matmul %118, %119, %cst_60 {dimension_numbers = #tpu.dot_dimension_numbers<[1], [1], [0], [0], [0, 0, 1, 0], [], []>} : vector<32x8xbf16>, vector<32x8xbf16>, vector<32x32xf32> -> vector<32x32xf32>
    %cst_61 = arith.constant 0.353553385 : f32
    %121 = vector.broadcast %cst_61 : f32 to vector<32x32xf32>
    %122 = arith.mulf %120, %121 : vector<32x32xf32>
    %123 = arith.addf %122, %24 : vector<32x32xf32>
    %cst_62 = arith.constant dense<0xFF800000> : vector<32xf32>
    %124 = vector.multi_reduction <maximumf>, %123, %cst_62 [1] : vector<32x32xf32> to vector<32xf32>
    %125 = vector.shape_cast %124 : vector<32xf32> to vector<32x1xf32>
    %126 = vector.broadcast %125 : vector<32x1xf32> to vector<32x32xf32>
    %127 = arith.subf %123, %126 : vector<32x32xf32>
    %128 = math.exp %127 : vector<32x32xf32>
    %cst_63 = arith.constant dense<0.000000e+00> : vector<32xf32>
    %129 = vector.multi_reduction <add>, %128, %cst_63 [1] : vector<32x32xf32> to vector<32xf32>
    %130 = vector.shape_cast %129 : vector<32xf32> to vector<32x1xf32>
    %131 = arith.truncf %128 : vector<32x32xf32> to vector<32x32xbf16>
    %132 = vector.extract_strided_slice %46 {offsets = [0, 24], sizes = [32, 8], strides = [1, 1]} : vector<32x32xbf16> to vector<32x8xbf16>
    %cst_64 = arith.constant dense<0.000000e+00> : vector<32x8xf32>
    %133 = tpu.matmul %131, %132, %cst_64 {dimension_numbers = #tpu.dot_dimension_numbers<[1], [0], [0], [1], [0, 0, 1, 1], [], []>} : vector<32x32xbf16>, vector<32x8xbf16>, vector<32x8xf32> -> vector<32x8xf32>
    %134 = tpu.reciprocal %130 {approx = true} : vector<32x1xf32> -> vector<32x1xf32>
    %135 = vector.broadcast %134 : vector<32x1xf32> to vector<32x8xf32>
    %136 = arith.mulf %133, %135 : vector<32x8xf32>
    %137 = arith.truncf %136 : vector<32x8xf32> to vector<32x8xbf16>
    %c3 = arith.constant 3 : index
    %c0_65 = arith.constant 0 : index
    %c0_66 = arith.constant 0 : index
    %138 = vector.load %arg6[%c3, %c0_65, %c0_66] : memref<4x32x8xbf16, #tpu.memory_space<vmem>>, vector<1x32x8xbf16>
    %139 = vector.shape_cast %138 : vector<1x32x8xbf16> to vector<32x8xbf16>
    %cst_67 = arith.constant dense<0.000000e+00> : vector<32x32xf32>
    %140 = tpu.matmul %137, %139, %cst_67 {dimension_numbers = #tpu.dot_dimension_numbers<[1], [1], [0], [0], [0, 0, 1, 0], [], []>} : vector<32x8xbf16>, vector<32x8xbf16>, vector<32x32xf32> -> vector<32x32xf32>
    %141 = arith.addf %117, %140 : vector<32x32xf32>
    %142 = vector.broadcast %27 : vector<1x32xf32> to vector<32x32xf32>
    %143 = arith.addf %141, %142 : vector<32x32xf32>
    %144 = arith.addf %0, %143 : vector<32x32xf32>
    %cst_68 = arith.constant dense<0.000000e+00> : vector<32xf32>
    %145 = vector.multi_reduction <add>, %144, %cst_68 [1] : vector<32x32xf32> to vector<32xf32>
    %146 = vector.shape_cast %145 : vector<32xf32> to vector<32x1xf32>
    %cst_69 = arith.constant 3.200000e+01 : f32
    %147 = vector.broadcast %cst_69 : f32 to vector<32x1xf32>
    %148 = arith.divf %146, %147 : vector<32x1xf32>
    %149 = vector.broadcast %148 : vector<32x1xf32> to vector<32x32xf32>
    %150 = arith.subf %144, %149 : vector<32x32xf32>
    %151 = arith.mulf %150, %150 : vector<32x32xf32>
    %cst_70 = arith.constant dense<0.000000e+00> : vector<32xf32>
    %152 = vector.multi_reduction <add>, %151, %cst_70 [1] : vector<32x32xf32> to vector<32xf32>
    %153 = vector.shape_cast %152 : vector<32xf32> to vector<32x1xf32>
    %cst_71 = arith.constant 3.200000e+01 : f32
    %154 = vector.broadcast %cst_71 : f32 to vector<32x1xf32>
    %155 = arith.divf %153, %154 : vector<32x1xf32>
    %156 = vector.broadcast %148 : vector<32x1xf32> to vector<32x32xf32>
    %157 = arith.subf %144, %156 : vector<32x32xf32>
    %cst_72 = arith.constant 9.99999974E-6 : f32
    %158 = vector.broadcast %cst_72 : f32 to vector<32x1xf32>
    %159 = arith.addf %155, %158 : vector<32x1xf32>
    %160 = math.rsqrt %159 : vector<32x1xf32>
    %161 = vector.broadcast %160 : vector<32x1xf32> to vector<32x32xf32>
    %162 = arith.mulf %157, %161 : vector<32x32xf32>
    %163 = vector.broadcast %28 : vector<1x32xf32> to vector<32x32xf32>
    %164 = arith.mulf %162, %163 : vector<32x32xf32>
    %165 = vector.broadcast %29 : vector<1x32xf32> to vector<32x32xf32>
    %166 = arith.addf %164, %165 : vector<32x32xf32>
    %167 = arith.truncf %166 : vector<32x32xf32> to vector<32x32xbf16>
    %cst_73 = arith.constant dense<0.000000e+00> : vector<32x128xf32>
    %168 = tpu.matmul %167, %30, %cst_73 {dimension_numbers = #tpu.dot_dimension_numbers<[1], [1], [0], [0], [0, 0, 1, 0], [], []>} : vector<32x32xbf16>, vector<128x32xbf16>, vector<32x128xf32> -> vector<32x128xf32>
    %169 = vector.broadcast %31 : vector<1x128xf32> to vector<32x128xf32>
    %170 = arith.addf %168, %169 : vector<32x128xf32>
    %cst_74 = arith.constant 5.000000e-01 : f32
    %171 = vector.broadcast %cst_74 : f32 to vector<32x128xf32>
    %172 = arith.mulf %171, %170 : vector<32x128xf32>
    %cst_75 = arith.constant 0.707106769 : f32
    %173 = vector.broadcast %cst_75 : f32 to vector<32x128xf32>
    %174 = arith.mulf %170, %173 : vector<32x128xf32>
    %175 = math.erf %174 : vector<32x128xf32>
    %cst_76 = arith.constant 1.000000e+00 : f32
    %176 = vector.broadcast %cst_76 : f32 to vector<32x128xf32>
    %177 = arith.addf %176, %175 : vector<32x128xf32>
    %178 = arith.mulf %172, %177 : vector<32x128xf32>
    %179 = arith.truncf %178 : vector<32x128xf32> to vector<32x128xbf16>
    %cst_77 = arith.constant dense<0.000000e+00> : vector<32x32xf32>
    %180 = tpu.matmul %179, %32, %cst_77 {dimension_numbers = #tpu.dot_dimension_numbers<[1], [1], [0], [0], [0, 0, 1, 0], [], []>} : vector<32x128xbf16>, vector<32x128xbf16>, vector<32x32xf32> -> vector<32x32xf32>
    %181 = vector.broadcast %33 : vector<1x32xf32> to vector<32x32xf32>
    %182 = arith.addf %180, %181 : vector<32x32xf32>
    %183 = arith.addf %166, %182 : vector<32x32xf32>
    %cst_78 = arith.constant dense<0.000000e+00> : vector<32xf32>
    %184 = vector.multi_reduction <add>, %183, %cst_78 [1] : vector<32x32xf32> to vector<32xf32>
    %185 = vector.shape_cast %184 : vector<32xf32> to vector<32x1xf32>
    %cst_79 = arith.constant 3.200000e+01 : f32
    %186 = vector.broadcast %cst_79 : f32 to vector<32x1xf32>
    %187 = arith.divf %185, %186 : vector<32x1xf32>
    %188 = vector.broadcast %187 : vector<32x1xf32> to vector<32x32xf32>
    %189 = arith.subf %183, %188 : vector<32x32xf32>
    %190 = arith.mulf %189, %189 : vector<32x32xf32>
    %cst_80 = arith.constant dense<0.000000e+00> : vector<32xf32>
    %191 = vector.multi_reduction <add>, %190, %cst_80 [1] : vector<32x32xf32> to vector<32xf32>
    %192 = vector.shape_cast %191 : vector<32xf32> to vector<32x1xf32>
    %cst_81 = arith.constant 3.200000e+01 : f32
    %193 = vector.broadcast %cst_81 : f32 to vector<32x1xf32>
    %194 = arith.divf %192, %193 : vector<32x1xf32>
    %195 = vector.broadcast %187 : vector<32x1xf32> to vector<32x32xf32>
    %196 = arith.subf %183, %195 : vector<32x32xf32>
    %cst_82 = arith.constant 9.99999974E-6 : f32
    %197 = vector.broadcast %cst_82 : f32 to vector<32x1xf32>
    %198 = arith.addf %194, %197 : vector<32x1xf32>
    %199 = math.rsqrt %198 : vector<32x1xf32>
    %200 = vector.broadcast %199 : vector<32x1xf32> to vector<32x32xf32>
    %201 = arith.mulf %196, %200 : vector<32x32xf32>
    %202 = vector.broadcast %34 : vector<1x32xf32> to vector<32x32xf32>
    %203 = arith.mulf %201, %202 : vector<32x32xf32>
    %204 = vector.broadcast %35 : vector<1x32xf32> to vector<32x32xf32>
    %205 = arith.addf %203, %204 : vector<32x32xf32>
    %206 = arith.truncf %205 : vector<32x32xf32> to vector<32x32xbf16>
    %cst_83 = arith.constant dense<0.000000e+00> : vector<32x96xf32>
    %207 = tpu.matmul %206, %25, %cst_83 {dimension_numbers = #tpu.dot_dimension_numbers<[1], [1], [0], [0], [0, 0, 1, 0], [], []>} : vector<32x32xbf16>, vector<96x32xbf16>, vector<32x96xf32> -> vector<32x96xf32>
    %208 = vector.broadcast %26 : vector<1x96xf32> to vector<32x96xf32>
    %209 = arith.addf %207, %208 : vector<32x96xf32>
    %210 = vector.extract_strided_slice %209 {offsets = [0, 0], sizes = [32, 32], strides = [1, 1]} : vector<32x96xf32> to vector<32x32xf32>
    %211 = arith.truncf %210 : vector<32x32xf32> to vector<32x32xbf16>
    %212 = vector.extract_strided_slice %209 {offsets = [0, 32], sizes = [32, 32], strides = [1, 1]} : vector<32x96xf32> to vector<32x32xf32>
    %213 = arith.truncf %212 : vector<32x32xf32> to vector<32x32xbf16>
    %214 = vector.extract_strided_slice %209 {offsets = [0, 64], sizes = [32, 32], strides = [1, 1]} : vector<32x96xf32> to vector<32x32xf32>
    %215 = arith.truncf %214 : vector<32x32xf32> to vector<32x32xbf16>
    %216 = vector.extract_strided_slice %211 {offsets = [0, 0], sizes = [32, 8], strides = [1, 1]} : vector<32x32xbf16> to vector<32x8xbf16>
    %217 = vector.extract_strided_slice %213 {offsets = [0, 0], sizes = [32, 8], strides = [1, 1]} : vector<32x32xbf16> to vector<32x8xbf16>
    %cst_84 = arith.constant dense<0.000000e+00> : vector<32x32xf32>
    %218 = tpu.matmul %216, %217, %cst_84 {dimension_numbers = #tpu.dot_dimension_numbers<[1], [1], [0], [0], [0, 0, 1, 0], [], []>} : vector<32x8xbf16>, vector<32x8xbf16>, vector<32x32xf32> -> vector<32x32xf32>
    %cst_85 = arith.constant 0.353553385 : f32
    %219 = vector.broadcast %cst_85 : f32 to vector<32x32xf32>
    %220 = arith.mulf %218, %219 : vector<32x32xf32>
    %221 = arith.addf %220, %24 : vector<32x32xf32>
    %cst_86 = arith.constant dense<0xFF800000> : vector<32xf32>
    %222 = vector.multi_reduction <maximumf>, %221, %cst_86 [1] : vector<32x32xf32> to vector<32xf32>
    %223 = vector.shape_cast %222 : vector<32xf32> to vector<32x1xf32>
    %224 = vector.broadcast %223 : vector<32x1xf32> to vector<32x32xf32>
    %225 = arith.subf %221, %224 : vector<32x32xf32>
    %226 = math.exp %225 : vector<32x32xf32>
    %cst_87 = arith.constant dense<0.000000e+00> : vector<32xf32>
    %227 = vector.multi_reduction <add>, %226, %cst_87 [1] : vector<32x32xf32> to vector<32xf32>
    %228 = vector.shape_cast %227 : vector<32xf32> to vector<32x1xf32>
    %229 = arith.truncf %226 : vector<32x32xf32> to vector<32x32xbf16>
    %230 = vector.extract_strided_slice %215 {offsets = [0, 0], sizes = [32, 8], strides = [1, 1]} : vector<32x32xbf16> to vector<32x8xbf16>
    %cst_88 = arith.constant dense<0.000000e+00> : vector<32x8xf32>
    %231 = tpu.matmul %229, %230, %cst_88 {dimension_numbers = #tpu.dot_dimension_numbers<[1], [0], [0], [1], [0, 0, 1, 1], [], []>} : vector<32x32xbf16>, vector<32x8xbf16>, vector<32x8xf32> -> vector<32x8xf32>
    %232 = tpu.reciprocal %228 {approx = true} : vector<32x1xf32> -> vector<32x1xf32>
    %233 = vector.broadcast %232 : vector<32x1xf32> to vector<32x8xf32>
    %234 = arith.mulf %231, %233 : vector<32x8xf32>
    %235 = arith.truncf %234 : vector<32x8xf32> to vector<32x8xbf16>
    %c0_89 = arith.constant 0 : index
    %c0_90 = arith.constant 0 : index
    %c0_91 = arith.constant 0 : index
    %236 = vector.load %arg6[%c0_89, %c0_90, %c0_91] : memref<4x32x8xbf16, #tpu.memory_space<vmem>>, vector<1x32x8xbf16>
    %237 = vector.shape_cast %236 : vector<1x32x8xbf16> to vector<32x8xbf16>
    %cst_92 = arith.constant dense<0.000000e+00> : vector<32x32xf32>
    %238 = tpu.matmul %235, %237, %cst_92 {dimension_numbers = #tpu.dot_dimension_numbers<[1], [1], [0], [0], [0, 0, 1, 0], [], []>} : vector<32x8xbf16>, vector<32x8xbf16>, vector<32x32xf32> -> vector<32x32xf32>
    %239 = vector.extract_strided_slice %211 {offsets = [0, 8], sizes = [32, 8], strides = [1, 1]} : vector<32x32xbf16> to vector<32x8xbf16>
    %240 = vector.extract_strided_slice %213 {offsets = [0, 8], sizes = [32, 8], strides = [1, 1]} : vector<32x32xbf16> to vector<32x8xbf16>
    %cst_93 = arith.constant dense<0.000000e+00> : vector<32x32xf32>
    %241 = tpu.matmul %239, %240, %cst_93 {dimension_numbers = #tpu.dot_dimension_numbers<[1], [1], [0], [0], [0, 0, 1, 0], [], []>} : vector<32x8xbf16>, vector<32x8xbf16>, vector<32x32xf32> -> vector<32x32xf32>
    %cst_94 = arith.constant 0.353553385 : f32
    %242 = vector.broadcast %cst_94 : f32 to vector<32x32xf32>
    %243 = arith.mulf %241, %242 : vector<32x32xf32>
    %244 = arith.addf %243, %24 : vector<32x32xf32>
    %cst_95 = arith.constant dense<0xFF800000> : vector<32xf32>
    %245 = vector.multi_reduction <maximumf>, %244, %cst_95 [1] : vector<32x32xf32> to vector<32xf32>
    %246 = vector.shape_cast %245 : vector<32xf32> to vector<32x1xf32>
    %247 = vector.broadcast %246 : vector<32x1xf32> to vector<32x32xf32>
    %248 = arith.subf %244, %247 : vector<32x32xf32>
    %249 = math.exp %248 : vector<32x32xf32>
    %cst_96 = arith.constant dense<0.000000e+00> : vector<32xf32>
    %250 = vector.multi_reduction <add>, %249, %cst_96 [1] : vector<32x32xf32> to vector<32xf32>
    %251 = vector.shape_cast %250 : vector<32xf32> to vector<32x1xf32>
    %252 = arith.truncf %249 : vector<32x32xf32> to vector<32x32xbf16>
    %253 = vector.extract_strided_slice %215 {offsets = [0, 8], sizes = [32, 8], strides = [1, 1]} : vector<32x32xbf16> to vector<32x8xbf16>
    %cst_97 = arith.constant dense<0.000000e+00> : vector<32x8xf32>
    %254 = tpu.matmul %252, %253, %cst_97 {dimension_numbers = #tpu.dot_dimension_numbers<[1], [0], [0], [1], [0, 0, 1, 1], [], []>} : vector<32x32xbf16>, vector<32x8xbf16>, vector<32x8xf32> -> vector<32x8xf32>
    %255 = tpu.reciprocal %251 {approx = true} : vector<32x1xf32> -> vector<32x1xf32>
    %256 = vector.broadcast %255 : vector<32x1xf32> to vector<32x8xf32>
    %257 = arith.mulf %254, %256 : vector<32x8xf32>
    %258 = arith.truncf %257 : vector<32x8xf32> to vector<32x8xbf16>
    %c1_98 = arith.constant 1 : index
    %c0_99 = arith.constant 0 : index
    %c0_100 = arith.constant 0 : index
    %259 = vector.load %arg6[%c1_98, %c0_99, %c0_100] : memref<4x32x8xbf16, #tpu.memory_space<vmem>>, vector<1x32x8xbf16>
    %260 = vector.shape_cast %259 : vector<1x32x8xbf16> to vector<32x8xbf16>
    %cst_101 = arith.constant dense<0.000000e+00> : vector<32x32xf32>
    %261 = tpu.matmul %258, %260, %cst_101 {dimension_numbers = #tpu.dot_dimension_numbers<[1], [1], [0], [0], [0, 0, 1, 0], [], []>} : vector<32x8xbf16>, vector<32x8xbf16>, vector<32x32xf32> -> vector<32x32xf32>
    %262 = arith.addf %238, %261 : vector<32x32xf32>
    %263 = vector.extract_strided_slice %211 {offsets = [0, 16], sizes = [32, 8], strides = [1, 1]} : vector<32x32xbf16> to vector<32x8xbf16>
    %264 = vector.extract_strided_slice %213 {offsets = [0, 16], sizes = [32, 8], strides = [1, 1]} : vector<32x32xbf16> to vector<32x8xbf16>
    %cst_102 = arith.constant dense<0.000000e+00> : vector<32x32xf32>
    %265 = tpu.matmul %263, %264, %cst_102 {dimension_numbers = #tpu.dot_dimension_numbers<[1], [1], [0], [0], [0, 0, 1, 0], [], []>} : vector<32x8xbf16>, vector<32x8xbf16>, vector<32x32xf32> -> vector<32x32xf32>
    %cst_103 = arith.constant 0.353553385 : f32
    %266 = vector.broadcast %cst_103 : f32 to vector<32x32xf32>
    %267 = arith.mulf %265, %266 : vector<32x32xf32>
    %268 = arith.addf %267, %24 : vector<32x32xf32>
    %cst_104 = arith.constant dense<0xFF800000> : vector<32xf32>
    %269 = vector.multi_reduction <maximumf>, %268, %cst_104 [1] : vector<32x32xf32> to vector<32xf32>
    %270 = vector.shape_cast %269 : vector<32xf32> to vector<32x1xf32>
    %271 = vector.broadcast %270 : vector<32x1xf32> to vector<32x32xf32>
    %272 = arith.subf %268, %271 : vector<32x32xf32>
    %273 = math.exp %272 : vector<32x32xf32>
    %cst_105 = arith.constant dense<0.000000e+00> : vector<32xf32>
    %274 = vector.multi_reduction <add>, %273, %cst_105 [1] : vector<32x32xf32> to vector<32xf32>
    %275 = vector.shape_cast %274 : vector<32xf32> to vector<32x1xf32>
    %276 = arith.truncf %273 : vector<32x32xf32> to vector<32x32xbf16>
    %277 = vector.extract_strided_slice %215 {offsets = [0, 16], sizes = [32, 8], strides = [1, 1]} : vector<32x32xbf16> to vector<32x8xbf16>
    %cst_106 = arith.constant dense<0.000000e+00> : vector<32x8xf32>
    %278 = tpu.matmul %276, %277, %cst_106 {dimension_numbers = #tpu.dot_dimension_numbers<[1], [0], [0], [1], [0, 0, 1, 1], [], []>} : vector<32x32xbf16>, vector<32x8xbf16>, vector<32x8xf32> -> vector<32x8xf32>
    %279 = tpu.reciprocal %275 {approx = true} : vector<32x1xf32> -> vector<32x1xf32>
    %280 = vector.broadcast %279 : vector<32x1xf32> to vector<32x8xf32>
    %281 = arith.mulf %278, %280 : vector<32x8xf32>
    %282 = arith.truncf %281 : vector<32x8xf32> to vector<32x8xbf16>
    %c2_107 = arith.constant 2 : index
    %c0_108 = arith.constant 0 : index
    %c0_109 = arith.constant 0 : index
    %283 = vector.load %arg6[%c2_107, %c0_108, %c0_109] : memref<4x32x8xbf16, #tpu.memory_space<vmem>>, vector<1x32x8xbf16>
    %284 = vector.shape_cast %283 : vector<1x32x8xbf16> to vector<32x8xbf16>
    %cst_110 = arith.constant dense<0.000000e+00> : vector<32x32xf32>
    %285 = tpu.matmul %282, %284, %cst_110 {dimension_numbers = #tpu.dot_dimension_numbers<[1], [1], [0], [0], [0, 0, 1, 0], [], []>} : vector<32x8xbf16>, vector<32x8xbf16>, vector<32x32xf32> -> vector<32x32xf32>
    %286 = arith.addf %262, %285 : vector<32x32xf32>
    %287 = vector.extract_strided_slice %211 {offsets = [0, 24], sizes = [32, 8], strides = [1, 1]} : vector<32x32xbf16> to vector<32x8xbf16>
    %288 = vector.extract_strided_slice %213 {offsets = [0, 24], sizes = [32, 8], strides = [1, 1]} : vector<32x32xbf16> to vector<32x8xbf16>
    %cst_111 = arith.constant dense<0.000000e+00> : vector<32x32xf32>
    %289 = tpu.matmul %287, %288, %cst_111 {dimension_numbers = #tpu.dot_dimension_numbers<[1], [1], [0], [0], [0, 0, 1, 0], [], []>} : vector<32x8xbf16>, vector<32x8xbf16>, vector<32x32xf32> -> vector<32x32xf32>
    %cst_112 = arith.constant 0.353553385 : f32
    %290 = vector.broadcast %cst_112 : f32 to vector<32x32xf32>
    %291 = arith.mulf %289, %290 : vector<32x32xf32>
    %292 = arith.addf %291, %24 : vector<32x32xf32>
    %cst_113 = arith.constant dense<0xFF800000> : vector<32xf32>
    %293 = vector.multi_reduction <maximumf>, %292, %cst_113 [1] : vector<32x32xf32> to vector<32xf32>
    %294 = vector.shape_cast %293 : vector<32xf32> to vector<32x1xf32>
    %295 = vector.broadcast %294 : vector<32x1xf32> to vector<32x32xf32>
    %296 = arith.subf %292, %295 : vector<32x32xf32>
    %297 = math.exp %296 : vector<32x32xf32>
    %cst_114 = arith.constant dense<0.000000e+00> : vector<32xf32>
    %298 = vector.multi_reduction <add>, %297, %cst_114 [1] : vector<32x32xf32> to vector<32xf32>
    %299 = vector.shape_cast %298 : vector<32xf32> to vector<32x1xf32>
    %300 = arith.truncf %297 : vector<32x32xf32> to vector<32x32xbf16>
    %301 = vector.extract_strided_slice %215 {offsets = [0, 24], sizes = [32, 8], strides = [1, 1]} : vector<32x32xbf16> to vector<32x8xbf16>
    %cst_115 = arith.constant dense<0.000000e+00> : vector<32x8xf32>
    %302 = tpu.matmul %300, %301, %cst_115 {dimension_numbers = #tpu.dot_dimension_numbers<[1], [0], [0], [1], [0, 0, 1, 1], [], []>} : vector<32x32xbf16>, vector<32x8xbf16>, vector<32x8xf32> -> vector<32x8xf32>
    %303 = tpu.reciprocal %299 {approx = true} : vector<32x1xf32> -> vector<32x1xf32>
    %304 = vector.broadcast %303 : vector<32x1xf32> to vector<32x8xf32>
    %305 = arith.mulf %302, %304 : vector<32x8xf32>
    %306 = arith.truncf %305 : vector<32x8xf32> to vector<32x8xbf16>
    %c3_116 = arith.constant 3 : index
    %c0_117 = arith.constant 0 : index
    %c0_118 = arith.constant 0 : index
    %307 = vector.load %arg6[%c3_116, %c0_117, %c0_118] : memref<4x32x8xbf16, #tpu.memory_space<vmem>>, vector<1x32x8xbf16>
    %308 = vector.shape_cast %307 : vector<1x32x8xbf16> to vector<32x8xbf16>
    %cst_119 = arith.constant dense<0.000000e+00> : vector<32x32xf32>
    %309 = tpu.matmul %306, %308, %cst_119 {dimension_numbers = #tpu.dot_dimension_numbers<[1], [1], [0], [0], [0, 0, 1, 0], [], []>} : vector<32x8xbf16>, vector<32x8xbf16>, vector<32x32xf32> -> vector<32x32xf32>
    %310 = arith.addf %286, %309 : vector<32x32xf32>
    %311 = vector.broadcast %27 : vector<1x32xf32> to vector<32x32xf32>
    %312 = arith.addf %310, %311 : vector<32x32xf32>
    %313 = arith.addf %205, %312 : vector<32x32xf32>
    %cst_120 = arith.constant dense<0.000000e+00> : vector<32xf32>
    %314 = vector.multi_reduction <add>, %313, %cst_120 [1] : vector<32x32xf32> to vector<32xf32>
    %315 = vector.shape_cast %314 : vector<32xf32> to vector<32x1xf32>
    %cst_121 = arith.constant 3.200000e+01 : f32
    %316 = vector.broadcast %cst_121 : f32 to vector<32x1xf32>
    %317 = arith.divf %315, %316 : vector<32x1xf32>
    %318 = vector.broadcast %317 : vector<32x1xf32> to vector<32x32xf32>
    %319 = arith.subf %313, %318 : vector<32x32xf32>
    %320 = arith.mulf %319, %319 : vector<32x32xf32>
    %cst_122 = arith.constant dense<0.000000e+00> : vector<32xf32>
    %321 = vector.multi_reduction <add>, %320, %cst_122 [1] : vector<32x32xf32> to vector<32xf32>
    %322 = vector.shape_cast %321 : vector<32xf32> to vector<32x1xf32>
    %cst_123 = arith.constant 3.200000e+01 : f32
    %323 = vector.broadcast %cst_123 : f32 to vector<32x1xf32>
    %324 = arith.divf %322, %323 : vector<32x1xf32>
    %325 = vector.broadcast %317 : vector<32x1xf32> to vector<32x32xf32>
    %326 = arith.subf %313, %325 : vector<32x32xf32>
    %cst_124 = arith.constant 9.99999974E-6 : f32
    %327 = vector.broadcast %cst_124 : f32 to vector<32x1xf32>
    %328 = arith.addf %324, %327 : vector<32x1xf32>
    %329 = math.rsqrt %328 : vector<32x1xf32>
    %330 = vector.broadcast %329 : vector<32x1xf32> to vector<32x32xf32>
    %331 = arith.mulf %326, %330 : vector<32x32xf32>
    %332 = vector.broadcast %28 : vector<1x32xf32> to vector<32x32xf32>
    %333 = arith.mulf %331, %332 : vector<32x32xf32>
    %334 = vector.broadcast %29 : vector<1x32xf32> to vector<32x32xf32>
    %335 = arith.addf %333, %334 : vector<32x32xf32>
    %336 = arith.truncf %335 : vector<32x32xf32> to vector<32x32xbf16>
    %cst_125 = arith.constant dense<0.000000e+00> : vector<32x128xf32>
    %337 = tpu.matmul %336, %30, %cst_125 {dimension_numbers = #tpu.dot_dimension_numbers<[1], [1], [0], [0], [0, 0, 1, 0], [], []>} : vector<32x32xbf16>, vector<128x32xbf16>, vector<32x128xf32> -> vector<32x128xf32>
    %338 = vector.broadcast %31 : vector<1x128xf32> to vector<32x128xf32>
    %339 = arith.addf %337, %338 : vector<32x128xf32>
    %cst_126 = arith.constant 5.000000e-01 : f32
    %340 = vector.broadcast %cst_126 : f32 to vector<32x128xf32>
    %341 = arith.mulf %340, %339 : vector<32x128xf32>
    %cst_127 = arith.constant 0.707106769 : f32
    %342 = vector.broadcast %cst_127 : f32 to vector<32x128xf32>
    %343 = arith.mulf %339, %342 : vector<32x128xf32>
    %344 = math.erf %343 : vector<32x128xf32>
    %cst_128 = arith.constant 1.000000e+00 : f32
    %345 = vector.broadcast %cst_128 : f32 to vector<32x128xf32>
    %346 = arith.addf %345, %344 : vector<32x128xf32>
    %347 = arith.mulf %341, %346 : vector<32x128xf32>
    %348 = arith.truncf %347 : vector<32x128xf32> to vector<32x128xbf16>
    %cst_129 = arith.constant dense<0.000000e+00> : vector<32x32xf32>
    %349 = tpu.matmul %348, %32, %cst_129 {dimension_numbers = #tpu.dot_dimension_numbers<[1], [1], [0], [0], [0, 0, 1, 0], [], []>} : vector<32x128xbf16>, vector<32x128xbf16>, vector<32x32xf32> -> vector<32x32xf32>
    %350 = vector.broadcast %33 : vector<1x32xf32> to vector<32x32xf32>
    %351 = arith.addf %349, %350 : vector<32x32xf32>
    %352 = arith.addf %335, %351 : vector<32x32xf32>
    %cst_130 = arith.constant dense<0.000000e+00> : vector<32xf32>
    %353 = vector.multi_reduction <add>, %352, %cst_130 [1] : vector<32x32xf32> to vector<32xf32>
    %354 = vector.shape_cast %353 : vector<32xf32> to vector<32x1xf32>
    %cst_131 = arith.constant 3.200000e+01 : f32
    %355 = vector.broadcast %cst_131 : f32 to vector<32x1xf32>
    %356 = arith.divf %354, %355 : vector<32x1xf32>
    %357 = vector.broadcast %356 : vector<32x1xf32> to vector<32x32xf32>
    %358 = arith.subf %352, %357 : vector<32x32xf32>
    %359 = arith.mulf %358, %358 : vector<32x32xf32>
    %cst_132 = arith.constant dense<0.000000e+00> : vector<32xf32>
    %360 = vector.multi_reduction <add>, %359, %cst_132 [1] : vector<32x32xf32> to vector<32xf32>
    %361 = vector.shape_cast %360 : vector<32xf32> to vector<32x1xf32>
    %cst_133 = arith.constant 3.200000e+01 : f32
    %362 = vector.broadcast %cst_133 : f32 to vector<32x1xf32>
    %363 = arith.divf %361, %362 : vector<32x1xf32>
    %364 = vector.broadcast %356 : vector<32x1xf32> to vector<32x32xf32>
    %365 = arith.subf %352, %364 : vector<32x32xf32>
    %cst_134 = arith.constant 9.99999974E-6 : f32
    %366 = vector.broadcast %cst_134 : f32 to vector<32x1xf32>
    %367 = arith.addf %363, %366 : vector<32x1xf32>
    %368 = math.rsqrt %367 : vector<32x1xf32>
    %369 = vector.broadcast %368 : vector<32x1xf32> to vector<32x32xf32>
    %370 = arith.mulf %365, %369 : vector<32x32xf32>
    %371 = vector.broadcast %34 : vector<1x32xf32> to vector<32x32xf32>
    %372 = arith.mulf %370, %371 : vector<32x32xf32>
    %373 = vector.broadcast %35 : vector<1x32xf32> to vector<32x32xf32>
    %374 = arith.addf %372, %373 : vector<32x32xf32>
    %375 = vector.extract_strided_slice %374 {offsets = [10, 0], sizes = [5, 32], strides = [1, 1]} : vector<32x32xf32> to vector<5x32xf32>
    %376 = vector.extract_strided_slice %374 {offsets = [26, 0], sizes = [5, 32], strides = [1, 1]} : vector<32x32xf32> to vector<5x32xf32>
    %377 = tpu.concatenate %375, %376 in 0 : vector<5x32xf32>, vector<5x32xf32> -> vector<10x32xf32>
    %378 = arith.truncf %377 : vector<10x32xf32> to vector<10x32xbf16>
    %cst_135 = arith.constant dense<0.000000e+00> : vector<10x64xf32>
    %379 = tpu.matmul %378, %36, %cst_135 {dimension_numbers = #tpu.dot_dimension_numbers<[1], [1], [0], [0], [0, 0, 1, 0], [], []>} : vector<10x32xbf16>, vector<64x32xbf16>, vector<10x64xf32> -> vector<10x64xf32>
    %c0_136 = arith.constant 0 : index
    %c0_137 = arith.constant 0 : index
    %c0_138 = arith.constant 0 : index
    %380 = vector.load %arg3[%c0_136, %c0_137, %c0_138] : memref<2x5x2xi32, #tpu.memory_space<vmem>>, vector<1x5x2xi32>
    %381 = vector.shape_cast %380 : vector<1x5x2xi32> to vector<5x2xi32>
    %c1_139 = arith.constant 1 : index
    %c0_140 = arith.constant 0 : index
    %c0_141 = arith.constant 0 : index
    %382 = vector.load %arg3[%c1_139, %c0_140, %c0_141] : memref<2x5x2xi32, #tpu.memory_space<vmem>>, vector<1x5x2xi32>
    %383 = vector.shape_cast %382 : vector<1x5x2xi32> to vector<5x2xi32>
    %384 = tpu.concatenate %381, %383 in 0 : vector<5x2xi32>, vector<5x2xi32> -> vector<10x2xi32>
    %385 = vector.extract_strided_slice %384 {offsets = [0, 0], sizes = [10, 1], strides = [1, 1]} : vector<10x2xi32> to vector<10x1xi32>
    %386 = vector.extract_strided_slice %384 {offsets = [0, 1], sizes = [10, 1], strides = [1, 1]} : vector<10x2xi32> to vector<10x1xi32>
    %387 = arith.sitofp %386 : vector<10x1xi32> to vector<10x1xf32>
    %388 = vector.broadcast %387 : vector<10x1xf32> to vector<10x64xf32>
    %389 = arith.mulf %379, %388 : vector<10x64xf32>
    %390 = arith.muli %385, %386 : vector<10x1xi32>
    %c1_i32 = arith.constant 1 : i32
    %391 = vector.broadcast %c1_i32 : i32 to vector<10x1xi32>
    %392 = arith.subi %391, %386 : vector<10x1xi32>
    %c63_i32 = arith.constant 63 : i32
    %393 = vector.broadcast %c63_i32 : i32 to vector<10x1xi32>
    %394 = arith.muli %393, %392 : vector<10x1xi32>
    %395 = arith.addi %390, %394 : vector<10x1xi32>
    %396 = tpu.iota {dimensions = array<i32: 1>} : vector<10x64xi32>
    %397 = vector.broadcast %395 : vector<10x1xi32> to vector<10x64xi32>
    %398 = arith.cmpi eq, %396, %397 : vector<10x64xi32>
    %399 = arith.extui %398 : vector<10x64xi1> to vector<10x64xi32>
    %400 = arith.sitofp %399 : vector<10x64xi32> to vector<10x64xf32>
    %401 = arith.mulf %389, %400 : vector<10x64xf32>
    %cst_142 = arith.constant dense<0.000000e+00> : vector<10xf32>
    %402 = vector.multi_reduction <add>, %401, %cst_142 [1] : vector<10x64xf32> to vector<10xf32>
    %403 = vector.shape_cast %402 : vector<10xf32> to vector<10x1xf32>
    %cst_143 = arith.constant dense<0xFF800000> : vector<10xf32>
    %404 = vector.multi_reduction <maximumf>, %389, %cst_143 [1] : vector<10x64xf32> to vector<10xf32>
    %405 = vector.shape_cast %404 : vector<10xf32> to vector<10x1xf32>
    %406 = vector.broadcast %405 : vector<10x1xf32> to vector<10x64xf32>
    %407 = arith.subf %389, %406 : vector<10x64xf32>
    %408 = math.exp %407 : vector<10x64xf32>
    %cst_144 = arith.constant dense<0.000000e+00> : vector<10xf32>
    %409 = vector.multi_reduction <add>, %408, %cst_144 [1] : vector<10x64xf32> to vector<10xf32>
    %410 = vector.shape_cast %409 : vector<10xf32> to vector<10x1xf32>
    %411 = math.log %410 : vector<10x1xf32>
    %412 = arith.addf %405, %411 : vector<10x1xf32>
    %c63_i32_145 = arith.constant 63 : i32
    %413 = vector.broadcast %c63_i32_145 : i32 to vector<10x1xi32>
    %414 = arith.cmpi ne, %395, %413 : vector<10x1xi32>
    %415 = arith.extui %414 : vector<10x1xi1> to vector<10x1xi32>
    %416 = arith.sitofp %415 : vector<10x1xi32> to vector<10x1xf32>
    %417 = arith.subf %412, %403 : vector<10x1xf32>
    %418 = arith.mulf %417, %416 : vector<10x1xf32>
    %419 = vector.shape_cast %418 : vector<10x1xf32> to vector<1x10x1xf32>
    %cst_146 = arith.constant dense<0.000000e+00> : vector<1xf32>
    %420 = vector.multi_reduction <add>, %419, %cst_146 [1, 2] : vector<1x10x1xf32> to vector<1xf32>
    %421 = vector.shape_cast %420 : vector<1xf32> to vector<1x1x1xf32>
    %422 = vector.extract %421[0, 0, 0] : f32 from vector<1x1x1xf32>
    %423 = vector.broadcast %422 : f32 to vector<1x1xf32>
    %424 = vector.shape_cast %416 : vector<10x1xf32> to vector<1x10x1xf32>
    %cst_147 = arith.constant dense<0.000000e+00> : vector<1xf32>
    %425 = vector.multi_reduction <add>, %424, %cst_147 [1, 2] : vector<1x10x1xf32> to vector<1xf32>
    %426 = vector.shape_cast %425 : vector<1xf32> to vector<1x1x1xf32>
    %427 = vector.extract %426[0, 0, 0] : f32 from vector<1x1x1xf32>
    %428 = vector.broadcast %427 : f32 to vector<1x1xf32>
    %429 = tpu.concatenate %423, %428 in 1 : vector<1x1xf32>, vector<1x1xf32> -> vector<1x2xf32>
    %c0_148 = arith.constant 0 : index
    %c0_149 = arith.constant 0 : index
    %c0_150 = arith.constant 0 : index
    %430 = vector.load %arg17[%c0_148, %c0_149, %c0_150] : memref<1x1x2xf32, #tpu.memory_space<vmem>>, vector<1x1x2xf32>
    %431 = vector.shape_cast %430 : vector<1x1x2xf32> to vector<1x2xf32>
    %432 = vector.shape_cast %429 : vector<1x2xf32> to vector<1x1x2xf32>
    tpu.vector_store %arg17[%c0_148, %c0_149, %c0_150], %432 {strides = array<i32>} : memref<1x1x2xf32, #tpu.memory_space<vmem>>, vector<1x1x2xf32>,
    return
  }
  func.func @transform_0(%arg0: i32) -> (i32, i32) {
    %c0_i32 = arith.constant 0 : i32
    %c0_i32_0 = arith.constant 0 : i32
    return %arg0, %c0_i32 : i32, i32
  }
  func.func @transform_1(%arg0: i32) -> (i32, i32, i32) {
    %c0_i32 = arith.constant 0 : i32
    %c0_i32_0 = arith.constant 0 : i32
    %c0_i32_1 = arith.constant 0 : i32
    return %arg0, %c0_i32, %c0_i32_0 : i32, i32, i32
  }
  func.func @transform_2(%arg0: i32) -> (i32, i32, i32) {
    %c0_i32 = arith.constant 0 : i32
    %c0_i32_0 = arith.constant 0 : i32
    %c0_i32_1 = arith.constant 0 : i32
    return %arg0, %c0_i32, %c0_i32_0 : i32, i32, i32
  }
  func.func @transform_3(%arg0: i32) -> (i32, i32) {
    %c0_i32 = arith.constant 0 : i32
    %c0_i32_0 = arith.constant 0 : i32
    %c0_i32_1 = arith.constant 0 : i32
    return %c0_i32, %c0_i32_0 : i32, i32
  }
  func.func @transform_4(%arg0: i32) -> (i32, i32) {
    %c0_i32 = arith.constant 0 : i32
    %c0_i32_0 = arith.constant 0 : i32
    %c0_i32_1 = arith.constant 0 : i32
    return %c0_i32, %c0_i32_0 : i32, i32
  }
  func.func @transform_5(%arg0: i32) -> (i32, i32, i32) {
    %c0_i32 = arith.constant 0 : i32
    %c0_i32_0 = arith.constant 0 : i32
    %c0_i32_1 = arith.constant 0 : i32
    %c0_i32_2 = arith.constant 0 : i32
    return %c0_i32, %c0_i32_0, %c0_i32_1 : i32, i32, i32
  }
  func.func @transform_6(%arg0: i32) -> (i32, i32) {
    %c0_i32 = arith.constant 0 : i32
    %c0_i32_0 = arith.constant 0 : i32
    %c0_i32_1 = arith.constant 0 : i32
    return %c0_i32, %c0_i32_0 : i32, i32
  }
  func.func @transform_7(%arg0: i32) -> (i32, i32) {
    %c0_i32 = arith.constant 0 : i32
    %c0_i32_0 = arith.constant 0 : i32
    %c0_i32_1 = arith.constant 0 : i32
    return %c0_i32, %c0_i32_0 : i32, i32
  }
  func.func @transform_8(%arg0: i32) -> (i32, i32) {
    %c0_i32 = arith.constant 0 : i32
    %c0_i32_0 = arith.constant 0 : i32
    %c0_i32_1 = arith.constant 0 : i32
    return %c0_i32, %c0_i32_0 : i32, i32
  }
  func.func @transform_9(%arg0: i32) -> (i32, i32) {
    %c0_i32 = arith.constant 0 : i32
    %c0_i32_0 = arith.constant 0 : i32
    %c0_i32_1 = arith.constant 0 : i32
    return %c0_i32, %c0_i32_0 : i32, i32
  }
  func.func @transform_10(%arg0: i32) -> (i32, i32) {
    %c0_i32 = arith.constant 0 : i32
    %c0_i32_0 = arith.constant 0 : i32
    %c0_i32_1 = arith.constant 0 : i32
    return %c0_i32, %c0_i32_0 : i32, i32
  }
  func.func @transform_11(%arg0: i32) -> (i32, i32) {
    %c0_i32 = arith.constant 0 : i32
    %c0_i32_0 = arith.constant 0 : i32
    %c0_i32_1 = arith.constant 0 : i32
    return %c0_i32, %c0_i32_0 : i32, i32
  }
  func.func @transform_12(%arg0: i32) -> (i32, i32) {
    %c0_i32 = arith.constant 0 : i32
    %c0_i32_0 = arith.constant 0 : i32
    %c0_i32_1 = arith.constant 0 : i32
    return %c0_i32, %c0_i32_0 : i32, i32
  }
  func.func @transform_13(%arg0: i32) -> (i32, i32) {
    %c0_i32 = arith.constant 0 : i32
    %c0_i32_0 = arith.constant 0 : i32
    %c0_i32_1 = arith.constant 0 : i32
    return %c0_i32, %c0_i32_0 : i32, i32
  }
  func.func @transform_14(%arg0: i32) -> (i32, i32) {
    %c0_i32 = arith.constant 0 : i32
    %c0_i32_0 = arith.constant 0 : i32
    %c0_i32_1 = arith.constant 0 : i32
    return %c0_i32, %c0_i32_0 : i32, i32
  }
  func.func @transform_15(%arg0: i32) -> (i32, i32) {
    %c0_i32 = arith.constant 0 : i32
    %c0_i32_0 = arith.constant 0 : i32
    %c0_i32_1 = arith.constant 0 : i32
    return %c0_i32, %c0_i32_0 : i32, i32
  }
  func.func @transform_16(%arg0: i32) -> (i32, i32, i32) {
    %c0_i32 = arith.constant 0 : i32
    %c0_i32_0 = arith.constant 0 : i32
    %c0_i32_1 = arith.constant 0 : i32
    return %arg0, %c0_i32, %c0_i32_0 : i32, i32, i32
  }
}

</mosaic_0001>

<bundles_post_ra>
// kernel: ar_forward_loss.1
= control target key start
LH: loop header
LB: loop body
LE: loop exit
PB: predicated region body
PF: predicated region fallthrough
CT: control target
= control target key end

     0   :  { %vm184_vm0 = vcmask 261120   ;;  %v58_v0 = vlaneseq  ;;  %s4059_s19 = smov 16   ;;  %vm266_vm8 = vcmask 64512   ;;  %s5186_s21 = smov 64   ;;  %vm80_vm9 = vcmask 130048   ;;  %s5164_s3 = inlined_call_operand.vmem [shape: bf16[96,32], index: 3, kind: input, shape index: {}]   ;;  %s5165_s0 = inlined_call_operand.vmem [shape: f32[32,32], index: 0, kind: input, shape index: {}]   ;;  %s5166_s1 = inlined_call_operand.vmem [shape: f32[2,16,16], index: 1, kind: input, shape index: {}]   ;;  %s5167_s4 = inlined_call_operand.vmem [shape: f32[1,96], index: 4, kind: input, shape index: {}]   ;;  %s5168_s5 = inlined_call_operand.vmem [shape: bf16[4,32,8], index: 5, kind: input, shape index: {}]   ;;  %s5169_s6 = inlined_call_operand.vmem [shape: f32[1,32], index: 6, kind: input, shape index: {}]   ;;  %s5170_s9 = inlined_call_operand.vmem [shape: bf16[128,32], index: 9, kind: input, shape index: {}]   ;;  %s5171_s7 = inlined_call_operand.vmem [shape: f32[1,32], index: 7, kind: input, shape index: {}]   ;;  %s5172_s8 = inlined_call_operand.vmem [shape: f32[1,32], index: 8, kind: input, shape index: {}]   ;;  %s5173_s11 = inlined_call_operand.vmem [shape: bf16[32,128], index: 11, kind: input, shape index: {}]   ;;  %s5174_s10 = inlined_call_operand.vmem [shape: f32[1,128], index: 10, kind: input, shape index: {}]   ;;  %s5175_s12 = inlined_call_operand.vmem [shape: f32[1,32], index: 12, kind: input, shape index: {}]   ;;  %s5176_s13 = inlined_call_operand.vmem [shape: f32[1,32], index: 13, kind: input, shape index: {}]   ;;  %s5177_s14 = inlined_call_operand.vmem [shape: f32[1,32], index: 14, kind: input, shape index: {}]   ;;  %s5178_s15 = inlined_call_operand.vmem [shape: bf16[64,32], index: 15, kind: input, shape index: {}]   ;;  %s5179_s2 = inlined_call_operand.vmem [shape: s32[2,5,2], index: 2, kind: input, shape index: {}]   ;;  %s5180_s16 = inlined_call_operand.vmem [shape: f32[1,1,2], index: 16, kind: output, shape index: {}]  }
   0x1   :  { %5188 = sst [smem:[#allocation2_spill]] %s5164_s3  ;;  %v54_v5 = vld [vmem:[%s5165_s0] sm:$0xff]  ;;  %v55_v6 = vld [vmem:[%s5165_s0 + $0x8] sm:$0xff]  ;;  %v3159_v9 = vld [vmem:[%s5166_s1 + $0x10] sm:$0xff]  ;;  %s4063_s27 = smov 120   ;;  %vm4072_vm10 = vmmov 0  }
   0x2   :  { %s5189_s23 = sld [smem:[#allocation2_spill]]  ;;  %v59_v4 = vshrl.u32 %v58_v0, 7  ;;  %v4179_v7 = vand.u32 127, %v58_v0  ;;  %v146_v8 = vpack.c.bf16 %v55_v6, %v54_v5  ;;  %v4233_v21 = vld [vmem:[%s5165_s0 + $0x10] sm:$0xff]  ;;  %v4238_v22 = vld [vmem:[%s5165_s0 + $0x18] sm:$0xff]  ;;  %v76_v46 = vld [vmem:[%s5166_s1] sm:$0xff] }
   0x3   :  { %v147_v23 = vpack.c.bf16 %v4238_v22, %v4233_v21  ;;  %v3160_v26 = vld [vmem:[%s5166_s1 + $0x18] sm:$0xff]  ;;  %v3161_v29 = vld [vmem:[%s5167_s4] ss:$0 sm:$0xff]  ;;  %v77_v47 = vld [vmem:[%s5166_s1 + $0x8] sm:$0xff]  ;;  %s4062_s1 = smov 88   ;;  %s5184_s28 = smov 56  }
   0x4   :  { %vm64_vm1 = vcmp.lt.s32.totalorder %v59_v4, 5  ;;  %vm63_vm2 = vcmp.ge.s32.totalorder %v4179_v7, 11  ;;  %3428 = vmatprep.mubr.msk.bf16.mxu0 %vm184_vm0, %v146_v8  ;;  %v60_v24 = vadd.s32 8, %v59_v4  ;;  %s4065_s29 = smov 80   ;;  %s4066_s30 = smov 112   ;;  %vm2954_vm11 = vcmask 1044480  }
   0x5   :  { %vm4194_vm3 = vmand %vm63_vm2, %vm64_vm1  ;;  %s4067_s3 = smov 48   ;;  %s4068_s17 = smov 72   ;;  %vm3082_vm12 = vcmask 523264   ;;  %vm3086_vm13 = vcmask 517120  }
   0x6   :  { %v86_v13 = vsel %vm4194_vm3, 0.0, %v3159_v9  ;;  %vm67_vm4 = vcmp.ge.s32.totalorder %v60_v24, 11  ;;  %vm69_vm5 = vcmp.gt.s32.totalorder %v4179_v7, %v60_v24  ;;  %v78_v48 = vsel %vm4194_vm3, 0.0, %v76_v46  ;;  %s4069_s18 = smov 104   ;;  %s5182_s20 = smov 40  }
   0x7   :  { %90 = vrot.lane.b32.xlu1 %v86_v13, %s4059_s19  ;;  %vm71_vm6 = vmand %vm67_vm4, %vm69_vm5  ;;  %v4290_v54 = vsel %vm80_vm9, %v78_v48, -1e+30  ;;  %vm3126_vm3 = vcmask 1024   ;;  %vm3153_vm4 = vcmask 8192  }
   0x8   :  { %v3817_v1 = vld [vmem:[%s5189_s23] sm:$0xff]   ;;  %v3818_v2 = vld [vmem:[%s5189_s23 + $0x8] sm:$0xff]   ;;  %v3819_v11 = vld [vmem:[%s5189_s23 + $0x10] sm:$0xff]  }
   0x9   :  { %3732 = vmatprep.subr.msk.bf16.mxu0 %vm184_vm0, %v3817_v1  ;;  %v4169_v3 = vsel %vm184_vm0, %v3817_v1, 0  ;;  %v4185_v10 = vsel %vm184_vm0, %v3818_v2, 0  ;;  %v4203_v14 = vsel %vm184_vm0, %v3819_v11, 0  ;;  %v3820_v15 = vld [vmem:[%s5189_s23 + $0x18] sm:$0xff]   ;;  %v3821_v17 = vld [vmem:[%s5189_s23 + $0x20] sm:$0xff]   ;;  %v3822_v19 = vld [vmem:[%s5189_s23 + $0x28] sm:$0xff]  }
   0xa   :  { %3417 = vmatpush3.bf16.xpose.msra.mxu0 %v4169_v3  ;;  %v4211_v16 = vsel %vm184_vm0, %v3820_v15, 0  ;;  %v4219_v18 = vsel %vm184_vm0, %v3821_v17, 0  ;;  %v4227_v20 = vsel %vm184_vm0, %v3822_v19, 0  ;;  %vm4246_vm7 = vmand %vm63_vm2, %vm71_vm6  ;;  %vm3124_vm2 = vcmask 7168  }
   0xb   :  { %3733 = vmatprep.subr.msk.bf16.mxu0 %vm184_vm0, %v3818_v2  ;;  %v87_v27 = vsel %vm4246_vm7, 0.0, %v3160_v26  ;;  %v79_v49 = vsel %vm4246_vm7, 0.0, %v77_v47 }
   0xc   :  { %92 = vrot.lane.b32.xlu1 %v87_v27, %s4059_s19  ;;  %s4061_s19 = smov 96   ;;  %v4293_v57 = vsel %vm80_vm9, %v79_v49, -1e+30 }
  0x12   :  { %3419 = vmatpush3.bf16.xpose.msra.mxu0 %v4185_v10 }
  0x13   :  { %3734 = vmatprep.subr.msk.bf16.mxu0 %vm184_vm0, %v3819_v11 }
  0x1a   :  { %3421 = vmatpush3.bf16.xpose.msra.mxu0 %v4203_v14 }
  0x1b   :  { %3735 = vmatprep.subr.msk.bf16.mxu0 %vm184_vm0, %v3820_v15 }
  0x22   :  { %3423 = vmatpush3.bf16.xpose.msra.mxu0 %v4211_v16 }
  0x23   :  { %3736 = vmatprep.subr.msk.bf16.mxu0 %vm184_vm0, %v3821_v17 }
  0x2a   :  { %3425 = vmatpush3.bf16.xpose.msra.mxu0 %v4219_v18 }
  0x2b   :  { %3737 = vmatprep.subr.msk.bf16.mxu0 %vm184_vm0, %v3822_v19 }
  0x32   :  { %3427 = vmatpush3.bf16.xpose.msra.mxu0 %v4227_v20 }
  0x39   :  { %3429 = vmatmul.mubr.msk.bf16.vlgmr.msra.gmra.mrb[0].mxu0 %vm184_vm0, %v147_v23 }
  0x79   :  { %v91_v39 = vpop.permute.xlu1 %90 }
  0x7a   :  { %v4287_v50 = vsel %vm80_vm9, -1e+30, %v91_v39 }
  0x7e   :  { %v93_v42 = vpop.permute.xlu1 %92 }
  0x7f   :  { %v4299_v0 = vsel %vm80_vm9, -1e+30, %v93_v42 }
 0x10c   :  { %v3430_v28 = vpop.f32.mrb[0].mxu0 }
 0x10d   :  { %v243_v30 = vpop.f32.mrb[1].mxu0  ;;  %v252_v32 = vadd.f32 %v3430_v28, %v3161_v29 }
 0x10e   :  { %v3431_v31 = vpop.f32.mrb[2].mxu0  ;;  %v244_v35 = vadd.f32 %v3161_v29, %v243_v30 }
 0x10f   :  { %v255_v33 = vadd.f32 %v3431_v31, %v3161_v29  ;;  %v246_v34 = vpop.f32.mrb[3].mxu0 }
 0x110   :  { %v247_v36 = vadd.f32 %v3161_v29, %v246_v34 }
 0x111   :  { %v4258_v37 = vpack.c.bf16 %v255_v33, %v252_v32 }
 0x112   :  { %v4260_v38 = vpack.c.bf16 %v247_v36, %v244_v35 }
 0x114   :  { %374 = vrot.lane.b32.xlu1 %v4260_v38, %s5186_s21  ;;  %262 = vrot.lane.b32.xlu0 %v4260_v38, %s4061_s19 }
 0x115   :  { %3436 = vmatprep.mubr.msk.bf16.mxu1 %vm266_vm8, %v4260_v38 }
 0x118   :  { %264 = vrot.lane.b32.xlu0 %v4258_v37, %s4061_s19 }
 0x186   :  { %v263_v40 = vpop.permute.xlu0 %262  ;;  %v375_v45 = vpop.permute.xlu1 %374 }
 0x187   :  { %3738 = vmatprep.subr.msk.bf16.mxu1 %vm266_vm8, %v263_v40  ;;  %v274_v41 = vsel %vm266_vm8, %v263_v40, 0 }
 0x188   :  { %3433 = vmatpush3.bf16.xpose.msra.mxu1 %v274_v41 }
 0x18a   :  { %v265_v43 = vpop.permute.xlu0 %264 }
 0x18b   :  { %3739 = vmatprep.subr.msk.bf16.mxu1 %vm266_vm8, %v265_v43  ;;  %v277_v44 = vsel %vm266_vm8, %v265_v43, 0 }
 0x190   :  { %3435 = vmatpush3.bf16.xpose.msra.mxu1 %v277_v44 }
 0x191   :  { %3440 = vmatprep.subr.bf16.mxu1 %v375_v45 }
 0x197   :  { %3437 = vmatmul.mubr.msk.bf16.vlgmr.msra.gmra.mrb[0].mxu1 %vm266_vm8, %v4258_v37 }
 0x198   :  { %3441 = vmatpush3.bf16.msra.mxu1 %v375_v45 }
 0x26a   :  { %v3438_v51 = vpop.f32.mrb[0].mxu1 }
 0x26b   :  { %v330_v52 = vmul.f32 0.35355338, %v3438_v51  ;;  %v313_v53 = vpop.f32.mrb[1].mxu1 }
 0x26c   :  { %v328_v55 = vmul.f32 0.35355338, %v313_v53  ;;  %v3439_v56 = vpop.f32.mrb[2].mxu1 }
 0x26d   :  { %v316_v58 = vpop.f32.mrb[3].mxu1  ;;  %v334_v59 = vadd.f32 %v330_v52, %v4287_v50  ;;  %v331_v61 = vmul.f32 0.35355338, %v3439_v56 }
 0x26e   :  { %v329_v60 = vmul.f32 0.35355338, %v316_v58  ;;  %v332_v63 = vadd.f32 %v328_v55, %v4290_v54 }
 0x26f   :  { %v342_v62 = vsel %vm184_vm0, %v334_v59, -inf  ;;  %v335_v5 = vadd.f32 %v331_v61, %v4299_v0 }
 0x270   :  { %343 = vmax.xlane.f32.xlu0 %v342_v62  ;;  %v333_v1 = vadd.f32 %v329_v60, %v4293_v57  ;;  %v336_v4 = vsel %vm184_vm0, %v332_v63, -inf }
 0x271   :  { %v345_v6 = vsel %vm184_vm0, %v335_v5, -inf }
 0x272   :  { %v339_v2 = vsel %vm184_vm0, %v333_v1, -inf }
 0x273   :  { %340 = vmax.xlane.f32.xlu1 %v339_v2 }
 0x274   :  { %337 = vmax.xlane.f32.xlu0 %v336_v4 }
 0x278   :  { %346 = vmax.xlane.f32.xlu0 %v345_v6 }
 0x284   :  { %453 = vrot.lane.b32.xlu1 %v4260_v38, %s4062_s1 }
 0x288   :  { %455 = vrot.lane.b32.xlu1 %v4258_v37, %s4062_s1 }
 0x28c   :  { %451 = vrot.lane.b32.xlu1 %v4258_v37, %s4063_s27 }
 0x28e   :  { %376 = vrot.lane.b32.xlu0 %v4258_v37, %s5186_s21 }
 0x290   :  { %564 = vrot.lane.b32.xlu1 %v4260_v38, %s5184_s28 }
 0x292   :  { %449 = vrot.lane.b32.xlu0 %v4260_v38, %s4063_s27 }
 0x2fd   :  { %v344_v8 = vpop.xlane.xlu0 %343 }
 0x2fe   :  { %v350_v11 = vsub.f32 %v334_v59, %v344_v8 }
 0x300   :  { %v341_v9 = vpop.xlane.xlu1 %340  ;;  %v356_v23 = vmul.f32 1.442695, %v350_v11 }
 0x301   :  { %v349_v12 = vsub.f32 %v333_v1, %v341_v9  ;;  %v338_v13 = vpop.xlane.xlu0 %337 }
 0x302   :  { %v348_v15 = vsub.f32 %v332_v63, %v338_v13 }
 0x303   :  { %v354_v17 = vmul.f32 1.442695, %v349_v12 }
 0x304   :  { %v352_v19 = vmul.f32 1.442695, %v348_v15  ;;  %v454_v28 = vpop.permute.xlu1 %453 }
 0x305   :  { %3845 = vpow2.f32 %v354_v17  ;;  %v347_v24 = vpop.xlane.xlu0 %346  ;;  %v464_v39 = vsel %vm266_vm8, %v454_v28, 0 }
 0x306   :  { %3847 = vpow2.f32 %v352_v19  ;;  %v351_v25 = vsub.f32 %v335_v5, %v347_v24 }
 0x307   :  { %3849 = vpow2.f32 %v356_v23 }
 0x308   :  { %v358_v26 = vmul.f32 1.442695, %v351_v25  ;;  %v456_v34 = vpop.permute.xlu1 %455 }
 0x309   :  { %v377_v27 = vpop.permute.xlu0 %376  ;;  %v467_v41 = vsel %vm266_vm8, %v456_v34, 0 }
 0x30a   :  { %3851 = vpow2.f32 %v358_v26  ;;  %3442 = vmatprep.subr.bf16.mxu1 %v377_v27 }
 0x30b   :  { %3443 = vmatpush3.bf16.msra.mxu1 %v377_v27 }
 0x30c   :  { %3740 = vmatprep.subr.msk.bf16.mxu1 %vm266_vm8, %v454_v28  ;;  %v452_v40 = vpop.permute.xlu1 %451 }
 0x30d   :  { %v450_v36 = vpop.permute.xlu0 %449 }
 0x30f   :  { %v4319_v29 = vpop.eup %3845 }
 0x310   :  { %v4321_v30 = vpop.eup %3847  ;;  %v565_v42 = vpop.permute.xlu1 %564 }
 0x311   :  { %v372_v31 = vpack.c.bf16 %v4319_v29, %v4321_v30  ;;  %v4325_v32 = vpop.eup %3849 }
 0x313   :  { %3444 = vmatprep.mubr.msk.bf16.mxu1 %vm184_vm0, %v372_v31 }
 0x314   :  { %v4328_v33 = vpop.eup %3851 }
 0x315   :  { %v373_v35 = vpack.c.bf16 %v4328_v33, %v4325_v32 }
 0x317   :  { %3445 = vmatmul.mubr.msk.bf16.vlgmr.msra.gmra.mrb[4].mxu1 %vm184_vm0, %v373_v35 }
 0x318   :  { %3449 = vmatpush3.bf16.xpose.msra.mxu1 %v464_v39  ;;  %3452 = vmatprep.mubr.msk.bf16.mxu1 %vm266_vm8, %v450_v36 }
 0x319   :  { %3741 = vmatprep.subr.msk.bf16.mxu1 %vm266_vm8, %v456_v34 }
 0x320   :  { %3451 = vmatpush3.bf16.xpose.msra.mxu1 %v467_v41 }
 0x321   :  { %3456 = vmatprep.subr.bf16.mxu1 %v565_v42 }
 0x327   :  { %3453 = vmatmul.mubr.msk.bf16.vlgmr.msra.gmra.mrb[8].mxu1 %vm266_vm8, %v452_v40 }
 0x328   :  { %3457 = vmatpush3.bf16.msra.mxu1 %v565_v42 }
 0x3ea   :  { %v4338_v43 = vpop.f32.mrb[4].mxu1 }
 0x3eb   :  { %v4340_v44 = vpop.f32.mrb[5].mxu1 }
 0x3ec   :  { %v4342_v45 = vpop.f32.mrb[6].mxu1 }
 0x3ed   :  { %v4344_v46 = vpop.f32.mrb[7].mxu1 }
 0x3fa   :  { %v3454_v47 = vpop.f32.mrb[8].mxu1 }
 0x3fb   :  { %v520_v48 = vmul.f32 0.35355338, %v3454_v47  ;;  %v503_v49 = vpop.f32.mrb[9].mxu1 }
 0x3fc   :  { %v518_v51 = vmul.f32 0.35355338, %v503_v49  ;;  %v3455_v52 = vpop.f32.mrb[10].mxu1 }
 0x3fd   :  { %v506_v53 = vpop.f32.mrb[11].mxu1  ;;  %v524_v55 = vadd.f32 %v520_v48, %v4287_v50  ;;  %v521_v58 = vmul.f32 0.35355338, %v3455_v52 }
 0x3fe   :  { %v519_v56 = vmul.f32 0.35355338, %v506_v53  ;;  %v522_v60 = vadd.f32 %v518_v51, %v4290_v54 }
 0x3ff   :  { %v532_v59 = vsel %vm184_vm0, %v524_v55, -inf  ;;  %v525_v1 = vadd.f32 %v521_v58, %v4299_v0 }
 0x400   :  { %533 = vmax.xlane.f32.xlu0 %v532_v59  ;;  %v523_v61 = vadd.f32 %v519_v56, %v4293_v57  ;;  %v526_v63 = vsel %vm184_vm0, %v522_v60, -inf }
 0x401   :  { %v535_v2 = vsel %vm184_vm0, %v525_v1, -inf }
 0x402   :  { %v529_v62 = vsel %vm184_vm0, %v523_v61, -inf }
 0x403   :  { %530 = vmax.xlane.f32.xlu1 %v529_v62 }
 0x404   :  { %527 = vmax.xlane.f32.xlu0 %v526_v63 }
 0x408   :  { %536 = vmax.xlane.f32.xlu0 %v535_v2 }
 0x414   :  { %786 = vrot.lane.b32.xlu1 %v4260_v38, %s4065_s29 }
 0x418   :  { %788 = vrot.lane.b32.xlu1 %v4258_v37, %s4065_s29 }
 0x41c   :  { %784 = vrot.lane.b32.xlu1 %v4258_v37, %s4066_s30 }
 0x41e   :  { %566 = vrot.lane.b32.xlu0 %v4258_v37, %s5184_s28 }
 0x420   :  { %897 = vrot.lane.b32.xlu1 %v4260_v38, %s4067_s3 }
 0x422   :  { %782 = vrot.lane.b32.xlu0 %v4260_v38, %s4066_s30 }
 0x48d   :  { %v534_v4 = vpop.xlane.xlu0 %533 }
 0x48e   :  { %v540_v6 = vsub.f32 %v524_v55, %v534_v4 }
 0x490   :  { %v531_v5 = vpop.xlane.xlu1 %530  ;;  %v546_v15 = vmul.f32 1.442695, %v540_v6 }
 0x491   :  { %v539_v8 = vsub.f32 %v523_v61, %v531_v5  ;;  %v528_v9 = vpop.xlane.xlu0 %527 }
 0x492   :  { %v538_v11 = vsub.f32 %v522_v60, %v528_v9 }
 0x493   :  { %v544_v12 = vmul.f32 1.442695, %v539_v8 }
 0x494   :  { %v542_v13 = vmul.f32 1.442695, %v538_v11  ;;  %v787_v25 = vpop.permute.xlu1 %786 }
 0x495   :  { %3853 = vpow2.f32 %v544_v12  ;;  %v537_v17 = vpop.xlane.xlu0 %536  ;;  %v797_v40 = vsel %vm266_vm8, %v787_v25, 0 }
 0x496   :  { %3855 = vpow2.f32 %v542_v13  ;;  %v541_v19 = vsub.f32 %v525_v1, %v537_v17 }
 0x497   :  { %3857 = vpow2.f32 %v546_v15 }
 0x498   :  { %v548_v23 = vmul.f32 1.442695, %v541_v19  ;;  %v789_v35 = vpop.permute.xlu1 %788 }
 0x499   :  { %v567_v24 = vpop.permute.xlu0 %566  ;;  %v800_v42 = vsel %vm266_vm8, %v789_v35, 0 }
 0x49a   :  { %3859 = vpow2.f32 %v548_v23  ;;  %3458 = vmatprep.subr.bf16.mxu1 %v567_v24 }
 0x49b   :  { %3459 = vmatpush3.bf16.msra.mxu1 %v567_v24 }
 0x49c   :  { %3746 = vmatprep.subr.msk.bf16.mxu1 %vm266_vm8, %v787_v25  ;;  %v785_v41 = vpop.permute.xlu1 %784 }
 0x49d   :  { %v783_v39 = vpop.permute.xlu0 %782 }
 0x49f   :  { %v4367_v26 = vpop.eup %3853 }
 0x4a0   :  { %v4369_v27 = vpop.eup %3855  ;;  %v898_v47 = vpop.permute.xlu1 %897 }
 0x4a1   :  { %v562_v28 = vpack.c.bf16 %v4367_v26, %v4369_v27  ;;  %v4373_v31 = vpop.eup %3857 }
 0x4a3   :  { %3460 = vmatprep.mubr.msk.bf16.mxu1 %vm184_vm0, %v562_v28 }
 0x4a4   :  { %v4376_v34 = vpop.eup %3859 }
 0x4a5   :  { %v563_v36 = vpack.c.bf16 %v4376_v34, %v4373_v31 }
 0x4a7   :  { %3461 = vmatmul.mubr.msk.bf16.vlgmr.msra.gmra.mrb[12].mxu1 %vm184_vm0, %v563_v36 }
 0x4a8   :  { %3481 = vmatpush3.bf16.xpose.msra.mxu1 %v797_v40  ;;  %3484 = vmatprep.mubr.msk.bf16.mxu1 %vm266_vm8, %v783_v39 }
 0x4a9   :  { %3747 = vmatprep.subr.msk.bf16.mxu1 %vm266_vm8, %v789_v35 }
 0x4b0   :  { %3483 = vmatpush3.bf16.xpose.msra.mxu1 %v800_v42 }
 0x4b1   :  { %3488 = vmatprep.subr.bf16.mxu1 %v898_v47 }
 0x4b7   :  { %3485 = vmatmul.mubr.msk.bf16.vlgmr.msra.gmra.mrb[16].mxu1 %vm266_vm8, %v785_v41 }
 0x4b8   :  { %3489 = vmatpush3.bf16.msra.mxu1 %v898_v47 }
 0x57a   :  { %v4386_v48 = vpop.f32.mrb[12].mxu1 }
 0x57b   :  { %v4388_v49 = vpop.f32.mrb[13].mxu1 }
 0x57c   :  { %v4390_v51 = vpop.f32.mrb[14].mxu1 }
 0x57d   :  { %v4392_v52 = vpop.f32.mrb[15].mxu1 }
 0x58a   :  { %v3486_v53 = vpop.f32.mrb[16].mxu1 }
 0x58b   :  { %v853_v55 = vmul.f32 0.35355338, %v3486_v53  ;;  %v836_v56 = vpop.f32.mrb[17].mxu1 }
 0x58c   :  { %v851_v58 = vmul.f32 0.35355338, %v836_v56  ;;  %v3487_v59 = vpop.f32.mrb[18].mxu1 }
 0x58d   :  { %v839_v60 = vpop.f32.mrb[19].mxu1  ;;  %v857_v61 = vadd.f32 %v853_v55, %v4287_v50  ;;  %v854_v63 = vmul.f32 0.35355338, %v3487_v59 }
 0x58e   :  { %v852_v62 = vmul.f32 0.35355338, %v839_v60  ;;  %v855_v2 = vadd.f32 %v851_v58, %v4290_v54 }
 0x58f   :  { %v865_v1 = vsel %vm184_vm0, %v857_v61, -inf  ;;  %v858_v8 = vadd.f32 %v854_v63, %v4299_v0 }
 0x590   :  { %866 = vmax.xlane.f32.xlu0 %v865_v1  ;;  %v856_v4 = vadd.f32 %v852_v62, %v4293_v57  ;;  %v859_v6 = vsel %vm184_vm0, %v855_v2, -inf }
 0x591   :  { %v868_v9 = vsel %vm184_vm0, %v858_v8, -inf }
 0x592   :  { %v862_v5 = vsel %vm184_vm0, %v856_v4, -inf }
 0x593   :  { %863 = vmax.xlane.f32.xlu1 %v862_v5 }
 0x594   :  { %860 = vmax.xlane.f32.xlu0 %v859_v6 }
 0x598   :  { %869 = vmax.xlane.f32.xlu0 %v868_v9 }
 0x5a4   :  { %1052 = vrot.lane.b32.xlu1 %v4260_v38, %s4068_s17 }
 0x5a8   :  { %1054 = vrot.lane.b32.xlu1 %v4258_v37, %s4068_s17 }
 0x5ac   :  { %1050 = vrot.lane.b32.xlu1 %v4258_v37, %s4069_s18 }
 0x5ae   :  { %899 = vrot.lane.b32.xlu0 %v4258_v37, %s4067_s3 }
 0x5b2   :  { %1048 = vrot.lane.b32.xlu0 %v4260_v38, %s4069_s18 }
 0x61d   :  { %v867_v11 = vpop.xlane.xlu0 %866 }
 0x61e   :  { %v873_v13 = vsub.f32 %v857_v61, %v867_v11 }
 0x620   :  { %v864_v12 = vpop.xlane.xlu1 %863  ;;  %v879_v25 = vmul.f32 1.442695, %v873_v13 }
 0x621   :  { %v872_v15 = vsub.f32 %v856_v4, %v864_v12  ;;  %v861_v17 = vpop.xlane.xlu0 %860 }
 0x622   :  { %v871_v19 = vsub.f32 %v855_v2, %v861_v17 }
 0x623   :  { %v877_v23 = vmul.f32 1.442695, %v872_v15 }
 0x624   :  { %v875_v24 = vmul.f32 1.442695, %v871_v19  ;;  %v1053_v40 = vpop.permute.xlu1 %1052 }
 0x625   :  { %3861 = vpow2.f32 %v877_v23  ;;  %v870_v28 = vpop.xlane.xlu0 %869  ;;  %v1063_v59 = vsel %vm266_vm8, %v1053_v40, 0 }
 0x626   :  { %3863 = vpow2.f32 %v875_v24  ;;  %v874_v35 = vsub.f32 %v858_v8, %v870_v28 }
 0x627   :  { %3865 = vpow2.f32 %v879_v25 }
 0x628   :  { %v881_v36 = vmul.f32 1.442695, %v874_v35  ;;  %v1055_v60 = vpop.permute.xlu1 %1054 }
 0x629   :  { %v900_v39 = vpop.permute.xlu0 %899  ;;  %v1066_v61 = vsel %vm266_vm8, %v1055_v60, 0 }
 0x62a   :  { %3867 = vpow2.f32 %v881_v36  ;;  %3490 = vmatprep.subr.bf16.mxu1 %v900_v39 }
 0x62b   :  { %3491 = vmatpush3.bf16.msra.mxu1 %v900_v39  ;;  %v550_v39 = vsel %vm184_vm0, %v4369_v27, 0.0  ;;  %v363_v27 = vsel %vm184_vm0, %v4319_v29, 0.0 }
 0x62c   :  { %3750 = vmatprep.subr.msk.bf16.mxu1 %vm266_vm8, %v1053_v40  ;;  %v1051_v62 = vpop.permute.xlu1 %1050  ;;  %v556_v40 = vsel %vm184_vm0, %v4373_v31, 0.0 }
 0x62d   :  { %v1049_v58 = vpop.permute.xlu0 %1048 }
 0x62f   :  { %v4413_v41 = vpop.eup %3861 }
 0x630   :  { %v3864_v42 = vpop.eup %3863 }
 0x631   :  { %v895_v47 = vpack.c.bf16 %v4413_v41, %v3864_v42  ;;  %v3866_v53 = vpop.eup %3865  ;;  %v883_v31 = vsel %vm184_vm0, %v3864_v42, 0.0 }
 0x633   :  { %3492 = vmatprep.mubr.msk.bf16.mxu1 %vm184_vm0, %v895_v47  ;;  %v553_v47 = vsel %vm184_vm0, %v4367_v26, 0.0  ;;  %v369_v26 = vsel %vm184_vm0, %v4328_v33, 0.0  ;;  %v3824_v33 = vld [vmem:[%s5168_s5 + $0x18] sm:$0xff]  }
 0x634   :  { %v4417_v55 = vpop.eup %3867 }
 0x635   :  { %v896_v56 = vpack.c.bf16 %v4417_v55, %v3866_v53  ;;  %v892_v29 = vsel %vm184_vm0, %v4417_v55, 0.0 }
 0x637   :  { %3493 = vmatmul.mubr.msk.bf16.vlgmr.msra.gmra.mrb[20].mxu1 %vm184_vm0, %v896_v56  ;;  %v360_v56 = vsel %vm184_vm0, %v4321_v30, 0.0  ;;  %v889_v30 = vsel %vm184_vm0, %v3866_v53, 0.0  ;;  %v4487_v53 = vld [vmem:[%s5168_s5] sm:$0xff]  }
 0x638   :  { %3505 = vmatpush3.bf16.xpose.msra.mxu1 %v1063_v59  ;;  %3508 = vmatprep.mubr.msk.bf16.mxu1 %vm266_vm8, %v1049_v58 }
 0x639   :  { %3751 = vmatprep.subr.msk.bf16.mxu1 %vm266_vm8, %v1055_v60 }
 0x640   :  { %3507 = vmatpush3.bf16.xpose.msra.mxu1 %v1066_v61 }
 0x647   :  { %3509 = vmatmul.mubr.msk.bf16.vlgmr.msra.gmra.mrb[24].mxu1 %vm266_vm8, %v1051_v62 }
 0x70a   :  { %v4426_v63 = vpop.f32.mrb[20].mxu1 }
 0x70b   :  { %v4428_v1 = vpop.f32.mrb[21].mxu1 }
 0x70c   :  { %v4430_v2 = vpop.f32.mrb[22].mxu1 }
 0x70d   :  { %v4432_v4 = vpop.f32.mrb[23].mxu1 }
 0x71a   :  { %v3510_v5 = vpop.f32.mrb[24].mxu1 }
 0x71b   :  { %v1119_v6 = vmul.f32 0.35355338, %v3510_v5  ;;  %v1102_v8 = vpop.f32.mrb[25].mxu1 }
 0x71c   :  { %v1117_v9 = vmul.f32 0.35355338, %v1102_v8  ;;  %v3511_v11 = vpop.f32.mrb[26].mxu1 }
 0x71d   :  { %v1105_v12 = vpop.f32.mrb[27].mxu1  ;;  %v1123_v13 = vadd.f32 %v1119_v6, %v4287_v50  ;;  %v1120_v17 = vmul.f32 0.35355338, %v3511_v11 }
 0x71e   :  { %v1118_v15 = vmul.f32 0.35355338, %v1105_v12  ;;  %v1121_v23 = vadd.f32 %v1117_v9, %v4290_v54 }
 0x71f   :  { %v1131_v19 = vsel %vm184_vm0, %v1123_v13, -inf  ;;  %v1124_v35 = vadd.f32 %v1120_v17, %v4299_v0 }
 0x720   :  { %1132 = vmax.xlane.f32.xlu0 %v1131_v19  ;;  %v1122_v24 = vadd.f32 %v1118_v15, %v4293_v57  ;;  %v1125_v28 = vsel %vm184_vm0, %v1121_v23, -inf }
 0x721   :  { %v1134_v36 = vsel %vm184_vm0, %v1124_v35, -inf }
 0x722   :  { %v1128_v25 = vsel %vm184_vm0, %v1122_v24, -inf }
 0x723   :  { %1129 = vmax.xlane.f32.xlu1 %v1128_v25 }
 0x724   :  { %1126 = vmax.xlane.f32.xlu0 %v1125_v28 }
 0x728   :  { %1135 = vmax.xlane.f32.xlu0 %v1134_v36 }
 0x734   :  { %1163 = vrot.lane.b32.xlu1 %v4260_v38, %s5182_s20  ;;  %v559_v38 = vsel %vm184_vm0, %v4376_v34, 0.0  ;;  %v886_v34 = vsel %vm184_vm0, %v4413_v41, 0.0  ;;  %v4481_v41 = vsel %vm266_vm8, %v3824_v33, 0 }
 0x73e   :  { %1165 = vrot.lane.b32.xlu0 %v4258_v37, %s5182_s20  ;;  %v366_v37 = vsel %vm184_vm0, %v4325_v32, 0.0  ;;  %v3823_v32 = vld [vmem:[%s5168_s5 + $0x10] sm:$0xff]  }
 0x73f   :  { %3742 = vmatprep.subr.msk.bf16.mxu0 %vm266_vm8, %v3823_v32  ;;  %v4473_v42 = vsel %vm266_vm8, %v3823_v32, 0 }
 0x740   :  { %3465 = vmatpush3.bf16.xpose.msra.mxu0 %v4473_v42 }
 0x741   :  { %3743 = vmatprep.subr.msk.bf16.mxu0 %vm266_vm8, %v3824_v33 }
 0x748   :  { %3467 = vmatpush3.bf16.xpose.msra.mxu0 %v4481_v41 }
 0x749   :  { %3744 = vmatprep.subr.msk.bf16.mxu0 %vm266_vm8, %v4487_v53 }
 0x758   :  { %551 = vadd.xlane.f32.xlu1 %v550_v39 }
 0x75c   :  { %557 = vadd.xlane.f32.xlu1 %v556_v40 }
 0x75d   :  { %554 = vadd.xlane.f32.xlu0 %v553_v47 }
 0x760   :  { %361 = vadd.xlane.f32.xlu1 %v360_v56 }
 0x761   :  { %560 = vadd.xlane.f32.xlu0 %v559_v38 }
 0x764   :  { %367 = vadd.xlane.f32.xlu1 %v366_v37 }
 0x765   :  { %364 = vadd.xlane.f32.xlu0 %v363_v27 }
 0x768   :  { %884 = vadd.xlane.f32.xlu1 %v883_v31 }
 0x769   :  { %370 = vadd.xlane.f32.xlu0 %v369_v26 }
 0x76c   :  { %890 = vadd.xlane.f32.xlu1 %v889_v30 }
 0x76d   :  { %887 = vadd.xlane.f32.xlu0 %v886_v34 }
 0x771   :  { %893 = vadd.xlane.f32.xlu0 %v892_v29 }
 0x7ad   :  { %v1133_v55 = vpop.xlane.xlu0 %1132 }
 0x7ae   :  { %v1139_v58 = vsub.f32 %v1123_v13, %v1133_v55 }
 0x7b0   :  { %v1130_v59 = vpop.xlane.xlu1 %1129  ;;  %v1145_v6 = vmul.f32 1.442695, %v1139_v58 }
 0x7b1   :  { %v1138_v60 = vsub.f32 %v1122_v24, %v1130_v59  ;;  %v1127_v61 = vpop.xlane.xlu0 %1126 }
 0x7b2   :  { %v1137_v62 = vsub.f32 %v1121_v23, %v1127_v61 }
 0x7b3   :  { %v1143_v5 = vmul.f32 1.442695, %v1138_v60 }
 0x7b4   :  { %v1141_v8 = vmul.f32 1.442695, %v1137_v62  ;;  %v1164_v9 = vpop.permute.xlu1 %1163 }
 0x7b5   :  { %3869 = vpow2.f32 %v1143_v5  ;;  %v1136_v11 = vpop.xlane.xlu0 %1135  ;;  %3512 = vmatprep.subr.bf16.mxu1 %v1164_v9 }
 0x7b6   :  { %3871 = vpow2.f32 %v1141_v8  ;;  %v1140_v12 = vsub.f32 %v1124_v35, %v1136_v11  ;;  %3513 = vmatpush3.bf16.msra.mxu1 %v1164_v9 }
 0x7b7   :  { %3873 = vpow2.f32 %v1145_v6 }
 0x7b8   :  { %v1147_v15 = vmul.f32 1.442695, %v1140_v12 }
 0x7b9   :  { %v1166_v17 = vpop.permute.xlu0 %1165 }
 0x7ba   :  { %3875 = vpow2.f32 %v1147_v15  ;;  %3514 = vmatprep.subr.bf16.mxu1 %v1166_v17 }
 0x7bb   :  { %3515 = vmatpush3.bf16.msra.mxu1 %v1166_v17 }
 0x7bf   :  { %v3870_v13 = vpop.eup %3869 }
 0x7c0   :  { %v3872_v19 = vpop.eup %3871  ;;  %v1152_v23 = vsel %vm184_vm0, %v3870_v13, 0.0 }
 0x7c1   :  { %1153 = vadd.xlane.f32.xlu0 %v1152_v23  ;;  %v1149_v24 = vsel %vm184_vm0, %v3872_v19, 0.0  ;;  %v1161_v25 = vpack.c.bf16 %v3870_v13, %v3872_v19  ;;  %v3874_v28 = vpop.eup %3873 }
 0x7c2   :  { %1150 = vadd.xlane.f32.xlu1 %v1149_v24  ;;  %v1155_v36 = vsel %vm184_vm0, %v3874_v28, 0.0 }
 0x7c3   :  { %3516 = vmatprep.mubr.msk.bf16.mxu1 %vm184_vm0, %v1161_v25 }
 0x7c4   :  { %v3876_v35 = vpop.eup %3875 }
 0x7c5   :  { %v1158_v39 = vsel %vm184_vm0, %v3876_v35, 0.0  ;;  %v1162_v40 = vpack.c.bf16 %v3876_v35, %v3874_v28 }
 0x7c6   :  { %1156 = vadd.xlane.f32.xlu1 %v1155_v36  ;;  %1159 = vadd.xlane.f32.xlu0 %v1158_v39 }
 0x7c7   :  { %3517 = vmatmul.mubr.msk.bf16.vlgmr.msra.gmra.mrb[28].mxu1 %vm184_vm0, %v1162_v40 }
 0x7e5   :  { %v552_v47 = vpop.xlane.xlu1 %551 }
 0x7e6   :  { %3877 = vrcp.f32 %v552_v47 }
 0x7e9   :  { %v558_v56 = vpop.xlane.xlu1 %557 }
 0x7ea   :  { %v555_v38 = vpop.xlane.xlu0 %554 }
 0x7eb   :  { %3879 = vrcp.f32 %v555_v38  ;;  %v3830_v38 = vld [vmem:[%s5168_s5 + $0x38] sm:$0xff]  }
 0x7ec   :  { %3881 = vrcp.f32 %v558_v56 }
 0x7ed   :  { %v362_v37 = vpop.xlane.xlu1 %361 }
 0x7ee   :  { %v561_v27 = vpop.xlane.xlu0 %560 }
 0x7ef   :  { %3883 = vrcp.f32 %v561_v27 }
 0x7f0   :  { %3885 = vrcp.f32 %v362_v37  ;;  %v3878_v30 = vpop.eup %3877  ;;  %v4557_v37 = vsel %vm266_vm8, %v3830_v38, 0 }
 0x7f1   :  { %v368_v31 = vpop.xlane.xlu1 %367  ;;  %v629_v33 = vmul.f32 %v3878_v30, %v4388_v49  ;;  %v4504_v49 = vsel %vm266_vm8, %v4487_v53, 0 }
 0x7f2   :  { %v365_v26 = vpop.xlane.xlu0 %364 }
 0x7f3   :  { %3887 = vrcp.f32 %v365_v26 }
 0x7f4   :  { %3889 = vrcp.f32 %v368_v31 }
 0x7f5   :  { %v3880_v34 = vpop.eup %3879  ;;  %v885_v32 = vpop.xlane.xlu1 %884 }
 0x7f6   :  { %v371_v29 = vpop.xlane.xlu0 %370  ;;  %v630_v55 = vmul.f32 %v3880_v34, %v4392_v52  ;;  %v3882_v58 = vpop.eup %3881  ;;  %v3826_v52 = vld [vmem:[%s5168_s5 + $0x8] sm:$0xff]  }
 0x7f7   :  { %3891 = vrcp.f32 %v371_v29  ;;  %v631_v61 = vmul.f32 %v3882_v58, %v4386_v48  ;;  %v4518_v24 = vsel %vm266_vm8, %v3826_v52, 0 }
 0x7f8   :  { %v633_v59 = vpack.c.bf16 %v630_v55, %v629_v33  ;;  %3893 = vrcp.f32 %v885_v32 }
 0x7f9   :  { %v3884_v60 = vpop.eup %3883  ;;  %v891_v5 = vpop.xlane.xlu1 %890 }
 0x7fa   :  { %v632_v62 = vmul.f32 %v3884_v60, %v4390_v51  ;;  %v888_v6 = vpop.xlane.xlu0 %887  ;;  %3468 = vmatprep.mubr.msk.bf16.mxu0 %vm266_vm8, %v633_v59  ;;  %v3886_v8 = vpop.eup %3885 }
 0x7fb   :  { %3895 = vrcp.f32 %v888_v6  ;;  %v439_v51 = vmul.f32 %v3886_v8, %v4340_v44 }
 0x7fc   :  { %v634_v9 = vpack.c.bf16 %v632_v62, %v631_v61  ;;  %3897 = vrcp.f32 %v891_v5 }
 0x7fd   :  { %v3888_v11 = vpop.eup %3887 }
 0x7fe   :  { %v894_v48 = vpop.xlane.xlu0 %893  ;;  %3469 = vmatmul.mubr.msk.bf16.vlgmr.msra.gmra.mrb[4].mxu0 %vm266_vm8, %v634_v9  ;;  %v440_v12 = vmul.f32 %v3888_v11, %v4344_v46  ;;  %v3890_v15 = vpop.eup %3889  ;;  %v3827_v46 = vld [vmem:[%s5168_s5 + $0x20] sm:$0xff]  }
 0x7ff   :  { %3899 = vrcp.f32 %v894_v48  ;;  %3473 = vmatpush3.bf16.xpose.msra.mxu0 %v4504_v49  ;;  %v441_v13 = vmul.f32 %v3890_v15, %v4338_v43  ;;  %v4530_v47 = vsel %vm266_vm8, %v3827_v46, 0 }
 0x800   :  { %v443_v17 = vpack.c.bf16 %v440_v12, %v439_v51  ;;  %3745 = vmatprep.subr.msk.bf16.mxu0 %vm266_vm8, %v3826_v52  ;;  %v3214_v52 = vld [vmem:[%s5169_s6] ss:$0 sm:$0xff] }
 0x801   :  { %v3892_v53 = vpop.eup %3891 }
 0x802   :  { %v442_v19 = vmul.f32 %v3892_v53, %v4342_v45  ;;  %3476 = vmatprep.mubr.msk.bf16.mxu0 %vm266_vm8, %v443_v17  ;;  %v3894_v23 = vpop.eup %3893 }
 0x803   :  { %v962_v28 = vmul.f32 %v3894_v23, %v4428_v1  ;;  %v3828_v1 = vld [vmem:[%s5168_s5 + $0x28] sm:$0xff]  }
 0x804   :  { %v444_v44 = vpack.c.bf16 %v442_v19, %v441_v13  ;;  %v4025_v19 = vld [vmem:[%s5165_s0] sm:$0xff] }
 0x805   :  { %v3896_v25 = vpop.eup %3895 }
 0x806   :  { %v963_v35 = vmul.f32 %v3896_v25, %v4432_v4  ;;  %v3898_v36 = vpop.eup %3897 }
 0x807   :  { %3475 = vmatpush3.bf16.xpose.msra.mxu0 %v4518_v24  ;;  %v964_v39 = vmul.f32 %v3898_v36, %v4426_v63  ;;  %v4540_v63 = vsel %vm266_vm8, %v3828_v1, 0 }
 0x808   :  { %3748 = vmatprep.subr.msk.bf16.mxu0 %vm266_vm8, %v3827_v46  ;;  %v966_v43 = vpack.c.bf16 %v963_v35, %v962_v28  ;;  %v4026_v46 = vld [vmem:[%s5165_s0 + $0x8] sm:$0xff] }
 0x809   :  { %v3900_v45 = vpop.eup %3899 }
 0x80a   :  { %v965_v40 = vmul.f32 %v3900_v45, %v4430_v2  ;;  %v3829_v2 = vld [vmem:[%s5168_s5 + $0x30] sm:$0xff]  }
 0x80b   :  { %v4548_v4 = vsel %vm266_vm8, %v3829_v2, 0 }
 0x80c   :  { %v967_v56 = vpack.c.bf16 %v965_v40, %v964_v39  ;;  %v3831_v39 = vld [vmem:[%s5170_s9] sm:$0xff]  }
 0x80d   :  { %3754 = vmatprep.subr.msk.bf16.mxu1 %vm184_vm0, %v3831_v39  ;;  %v4585_v40 = vsel %vm184_vm0, %v3831_v39, 0 }
 0x80e   :  { %3477 = vmatmul.mubr.msk.bf16.vlgmr.msra.gmra.mrb[4].mxu0 %vm266_vm8, %v444_v44  ;;  %3529 = vmatpush3.bf16.xpose.msra.mxu1 %v4585_v40 }
 0x80f   :  { %3497 = vmatpush3.bf16.xpose.msra.mxu0 %v4530_v47  ;;  %3500 = vmatprep.mubr.msk.bf16.mxu0 %vm266_vm8, %v966_v43 }
 0x810   :  { %3749 = vmatprep.subr.msk.bf16.mxu0 %vm266_vm8, %v3828_v1  ;;  %v3833_v1 = vld [vmem:[%s5170_s9 + $0x10] sm:$0xff]  }
 0x817   :  { %3499 = vmatpush3.bf16.xpose.msra.mxu0 %v4540_v63 }
 0x818   :  { %3752 = vmatprep.subr.msk.bf16.mxu0 %vm266_vm8, %v3829_v2  ;;  %v3834_v2 = vld [vmem:[%s5170_s9 + $0x18] sm:$0xff]  }
 0x81e   :  { %3501 = vmatmul.mubr.msk.bf16.vlgmr.msra.gmra.mrb[4].mxu0 %vm266_vm8, %v967_v56  ;;  %v4598_v56 = vsel %vm184_vm0, %v3833_v1, 0 }
 0x81f   :  { %3521 = vmatpush3.bf16.xpose.msra.mxu0 %v4548_v4 }
 0x820   :  { %3753 = vmatprep.subr.msk.bf16.mxu0 %vm266_vm8, %v3830_v38  ;;  %v4606_v38 = vsel %vm184_vm0, %v3834_v2, 0 }
 0x827   :  { %3523 = vmatpush3.bf16.xpose.msra.mxu0 %v4557_v37 }
 0x84e   :  { %v1154_v27 = vpop.xlane.xlu0 %1153 }
 0x84f   :  { %v1151_v31 = vpop.xlane.xlu1 %1150  ;;  %3901 = vrcp.f32 %v1154_v27  ;;  %v3835_v27 = vld [vmem:[%s5170_s9 + $0x20] sm:$0xff]  }
 0x853   :  { %v1160_v26 = vpop.xlane.xlu0 %1159  ;;  %v1157_v30 = vpop.xlane.xlu1 %1156 }
 0x854   :  { %3903 = vrcp.f32 %v1160_v26 }
 0x855   :  { %3905 = vrcp.f32 %v1157_v30 }
 0x856   :  { %3907 = vrcp.f32 %v1151_v31  ;;  %v4614_v31 = vsel %vm184_vm0, %v3835_v27, 0 }
 0x859   :  { %v3902_v34 = vpop.eup %3901 }
 0x85e   :  { %v3904_v29 = vpop.eup %3903 }
 0x85f   :  { %v3906_v55 = vpop.eup %3905 }
 0x860   :  { %v3908_v59 = vpop.eup %3907 }
 0x89a   :  { %v3518_v32 = vpop.f32.mrb[28].mxu1 }
 0x89b   :  { %v1209_v33 = vpop.f32.mrb[29].mxu1  ;;  %v1230_v60 = vmul.f32 %v3906_v55, %v3518_v32 }
 0x89c   :  { %v3519_v58 = vpop.f32.mrb[30].mxu1  ;;  %v1228_v5 = vmul.f32 %v3908_v59, %v1209_v33 }
 0x89d   :  { %v1231_v61 = vmul.f32 %v3904_v29, %v3519_v58  ;;  %v1212_v62 = vpop.f32.mrb[31].mxu1 }
 0x89e   :  { %v1229_v6 = vmul.f32 %v3902_v34, %v1212_v62 }
 0x89f   :  { %v1233_v8 = vpack.c.bf16 %v1231_v61, %v1230_v60 }
 0x8a0   :  { %v1232_v9 = vpack.c.bf16 %v1229_v6, %v1228_v5 }
 0x8a2   :  { %3524 = vmatprep.mubr.msk.bf16.mxu0 %vm266_vm8, %v1232_v9 }
 0x8a3   :  { %3525 = vmatmul.mubr.msk.bf16.vlgmr.msra.gmra.mrb[4].mxu0 %vm266_vm8, %v1233_v8 }
 0x976   :  { %v3526_v11 = vpop.f32.mrb[4].mxu0 }
 0x977   :  { %v1295_v48 = vpop.f32.mrb[5].mxu0  ;;  %v1322_v51 = vadd.f32 %v3526_v11, %v3214_v52 }
 0x978   :  { %v1320_v12 = vadd.f32 %v3214_v52, %v1295_v48  ;;  %v3527_v15 = vpop.f32.mrb[6].mxu0 }
 0x979   :  { %v1298_v17 = vpop.f32.mrb[7].mxu0  ;;  %v1323_v53 = vadd.f32 %v3527_v15, %v3214_v52  ;;  %v1326_v28 = vadd.f32 %v1322_v51, %v4233_v21  ;;  %v3832_v21 = vld [vmem:[%s5170_s9 + $0x8] sm:$0xff]  }
 0x97a   :  { %v1321_v13 = vadd.f32 %v3214_v52, %v1298_v17  ;;  %v1324_v23 = vadd.f32 %v4025_v19, %v1320_v12  ;;  %3755 = vmatprep.subr.msk.bf16.mxu1 %vm184_vm0, %v3832_v21  ;;  %v3836_v12 = vld [vmem:[%s5170_s9 + $0x28] sm:$0xff]   ;;  %v3837_v17 = vld [vmem:[%s5170_s9 + $0x30] sm:$0xff]  }
 0x97b   :  { %v1327_v36 = vadd.f32 %v1323_v53, %v4238_v22  ;;  %v1334_v43 = vsel %vm184_vm0, %v1326_v28, 0.0  ;;  %v4590_v22 = vsel %vm184_vm0, %v3832_v21, 0  ;;  %v4626_v15 = vsel %vm184_vm0, %v3836_v12, 0 }
 0x97c   :  { %v1328_v44 = vsel %vm184_vm0, %v1324_v23, 0.0  ;;  %v1325_v25 = vadd.f32 %v4026_v46, %v1321_v13  ;;  %3531 = vmatpush3.bf16.xpose.msra.mxu1 %v4590_v22  ;;  %v4634_v53 = vsel %vm184_vm0, %v3837_v17, 0  ;;  %v3838_v13 = vld [vmem:[%s5170_s9 + $0x38] sm:$0xff]  }
 0x97d   :  { %1329 = vadd.xlane.f32.xlu1 %v1328_v44  ;;  %v1337_v45 = vsel %vm184_vm0, %v1327_v36, 0.0  ;;  %3756 = vmatprep.subr.msk.bf16.mxu1 %vm184_vm0, %v3833_v1  ;;  %v4642_v19 = vsel %vm184_vm0, %v3838_v13, 0 }
 0x97e   :  { %v1331_v35 = vsel %vm184_vm0, %v1325_v25, 0.0 }
 0x97f   :  { %1332 = vadd.xlane.f32.xlu0 %v1331_v35 }
 0x981   :  { %1335 = vadd.xlane.f32.xlu1 %v1334_v43 }
 0x983   :  { %1338 = vadd.xlane.f32.xlu0 %v1337_v45 }
 0x984   :  { %3533 = vmatpush3.bf16.xpose.msra.mxu1 %v4598_v56 }
 0x985   :  { %3757 = vmatprep.subr.msk.bf16.mxu1 %vm184_vm0, %v3834_v2 }
 0x98c   :  { %3535 = vmatpush3.bf16.xpose.msra.mxu1 %v4606_v38 }
 0x98d   :  { %3758 = vmatprep.subr.msk.bf16.mxu1 %vm184_vm0, %v3835_v27  ;;  %v3215_v27 = vld [vmem:[%s5171_s7] ss:$0 sm:$0xff] }
 0x994   :  { %3537 = vmatpush3.bf16.xpose.msra.mxu1 %v4614_v31 }
 0x995   :  { %3759 = vmatprep.subr.msk.bf16.mxu1 %vm184_vm0, %v3836_v12  ;;  %v4027_v12 = vld [vmem:[%s5189_s23] sm:$0xff]  }
 0x99c   :  { %3539 = vmatpush3.bf16.xpose.msra.mxu1 %v4626_v15 }
 0x99d   :  { %3760 = vmatprep.subr.msk.bf16.mxu1 %vm184_vm0, %v3837_v17  ;;  %v3217_v17 = vld [vmem:[%s5174_s10] ss:$0 sm:$0xff] }
 0x9a4   :  { %3541 = vmatpush3.bf16.xpose.msra.mxu1 %v4634_v53 }
 0x9a5   :  { %3761 = vmatprep.subr.msk.bf16.mxu1 %vm184_vm0, %v3838_v13 }
 0x9ac   :  { %3543 = vmatpush3.bf16.xpose.msra.mxu1 %v4642_v19 }
 0xa0a   :  { %v1330_v26 = vpop.xlane.xlu1 %1329 }
 0xa0b   :  { %v1341_v30 = vmul.f32 0.03125, %v1330_v26 }
 0xa0c   :  { %v1333_v34 = vpop.xlane.xlu0 %1332 }
 0xa0d   :  { %v1345_v32 = vsub.f32 %v1324_v23, %v1341_v30  ;;  %v1342_v29 = vmul.f32 0.03125, %v1333_v34 }
 0xa0e   :  { %v1336_v33 = vpop.xlane.xlu1 %1335 }
 0xa0f   :  { %v1346_v55 = vsub.f32 %v1325_v25, %v1342_v29  ;;  %v1343_v58 = vmul.f32 0.03125, %v1336_v33  ;;  %v1349_v59 = vmul.f32 %v1345_v32, %v1345_v32 }
 0xa10   :  { %v1339_v60 = vpop.xlane.xlu0 %1338 }
 0xa11   :  { %v1347_v61 = vsub.f32 %v1326_v28, %v1343_v58  ;;  %v1344_v62 = vmul.f32 0.03125, %v1339_v60  ;;  %v1353_v5 = vsel %vm184_vm0, %v1349_v59, 0.0  ;;  %v1350_v6 = vmul.f32 %v1346_v55, %v1346_v55  ;;  %v3216_v58 = vld [vmem:[%s5172_s8] ss:$0 sm:$0xff] }
 0xa12   :  { %1354 = vadd.xlane.f32.xlu1 %v1353_v5 }
 0xa13   :  { %v1348_v8 = vsub.f32 %v1327_v36, %v1344_v62  ;;  %v1356_v9 = vsel %vm184_vm0, %v1350_v6, 0.0  ;;  %v1351_v52 = vmul.f32 %v1347_v61, %v1347_v61 }
 0xa14   :  { %1357 = vadd.xlane.f32.xlu0 %v1356_v9 }
 0xa15   :  { %v1359_v11 = vsel %vm184_vm0, %v1351_v52, 0.0  ;;  %v1352_v48 = vmul.f32 %v1348_v8, %v1348_v8 }
 0xa16   :  { %1360 = vadd.xlane.f32.xlu1 %v1359_v11 }
 0xa17   :  { %v1362_v51 = vsel %vm184_vm0, %v1352_v48, 0.0 }
 0xa18   :  { %1363 = vadd.xlane.f32.xlu0 %v1362_v51  ;;  %v3840_v51 = vld [vmem:[%s5173_s11 + $0x8] sm:$0xff]  }
 0xa9f   :  { %v1355_v23 = vpop.xlane.xlu1 %1354 }
 0xaa0   :  { %v1365_v44 = vmul.f32 0.03125, %v1355_v23 }
 0xaa1   :  { %v1358_v46 = vpop.xlane.xlu0 %1357 }
 0xaa2   :  { %v1369_v25 = vadd.f32 1e-05, %v1365_v44  ;;  %v1366_v28 = vmul.f32 0.03125, %v1358_v46 }
 0xaa3   :  { %v1361_v35 = vpop.xlane.xlu1 %1360 }
 0xaa4   :  { %3909 = vrsqrt.f32 %v1369_v25  ;;  %v1370_v36 = vadd.f32 1e-05, %v1366_v28  ;;  %v1367_v43 = vmul.f32 0.03125, %v1361_v35 }
 0xaa5   :  { %v1364_v45 = vpop.xlane.xlu0 %1363 }
 0xaa6   :  { %3911 = vrsqrt.f32 %v1370_v36  ;;  %v1371_v39 = vadd.f32 1e-05, %v1367_v43  ;;  %v1368_v21 = vmul.f32 0.03125, %v1364_v45 }
 0xaa8   :  { %3913 = vrsqrt.f32 %v1371_v39  ;;  %v1372_v1 = vadd.f32 1e-05, %v1368_v21 }
 0xaaa   :  { %3915 = vrsqrt.f32 %v1372_v1 }
 0xaae   :  { %v3910_v2 = vpop.eup %3909 }
 0xaaf   :  { %v1377_v26 = vmul.f32 %v3910_v2, %v1345_v32 }
 0xab0   :  { %v3912_v30 = vpop.eup %3911 }
 0xab1   :  { %v1378_v34 = vmul.f32 %v3912_v30, %v1346_v55  ;;  %v1387_v29 = vmul.f32 %v3215_v27, %v1377_v26 }
 0xab2   :  { %v3914_v33 = vpop.eup %3913 }
 0xab3   :  { %v1379_v59 = vmul.f32 %v3914_v33, %v1347_v61  ;;  %v1388_v60 = vmul.f32 %v3215_v27, %v1378_v34  ;;  %v4651_v9 = vadd.f32 %v3216_v58, %v1387_v29 }
 0xab4   :  { %v3916_v62 = vpop.eup %3915 }
 0xab5   :  { %v1389_v5 = vmul.f32 %v3215_v27, %v1379_v59  ;;  %v1380_v6 = vmul.f32 %v3916_v62, %v1348_v8  ;;  %v4653_v52 = vadd.f32 %v3216_v58, %v1388_v60  ;;  %v3839_v8 = vld [vmem:[%s5173_s11] sm:$0xff]  }
 0xab6   :  { %3548 = vmatprep.subr.bf16.mxu0 %v3839_v8 }
 0xab7   :  { %v1390_v11 = vmul.f32 %v3215_v27, %v1380_v6  ;;  %v1401_v32 = vpack.c.bf16 %v4653_v52, %v4651_v9  ;;  %v4658_v55 = vadd.f32 %v3216_v58, %v1389_v5  ;;  %3549 = vmatpush3.bf16.xpose.msra.mxu0 %v3839_v8 }
 0xab8   :  { %3550 = vmatprep.subr.bf16.mxu0 %v3840_v51 }
 0xab9   :  { %3544 = vmatprep.mubr.msk.bf16.mxu1 %vm184_vm0, %v1401_v32  ;;  %v4660_v48 = vadd.f32 %v3216_v58, %v1390_v11 }
 0xabb   :  { %v1402_v61 = vpack.c.bf16 %v4660_v48, %v4658_v55 }
 0xabd   :  { %3545 = vmatmul.mubr.msk.bf16.vlgmr.msra.gmra.mrb[32].mxu1 %vm184_vm0, %v1402_v61 }
 0xabf   :  { %3551 = vmatpush3.bf16.xpose.msra.mxu0 %v3840_v51  ;;  %v4028_v51 = vld [vmem:[%s5189_s23 + $0x8] sm:$0xff]  }
 0xac0   :  { %3762 = vmatprep.subr.msk.bf16.mxu0 %vm184_vm0, %v4027_v12  ;;  %v4029_v12 = vld [vmem:[%s5189_s23 + $0x10] sm:$0xff]  }
 0xb90   :  { %v3546_v13 = vpop.f32.mrb[32].mxu1 }
 0xb91   :  { %v1522_v23 = vadd.f32 %v3546_v13, %v3217_v17  ;;  %v1513_v44 = vpop.f32.mrb[33].mxu1 }
 0xb92   :  { %v1514_v46 = vadd.f32 %v3217_v17, %v1513_v44  ;;  %v3547_v25 = vpop.f32.mrb[34].mxu1 }
 0xb93   :  { %v1534_v28 = vmul.f32 0.70710677, %v1522_v23  ;;  %v1525_v35 = vadd.f32 %v3547_v25, %v3217_v17  ;;  %v1516_v36 = vpop.f32.mrb[35].mxu1  ;;  %v1530_v29 = vmul.f32 0.5, %v1522_v23 }
 0xb94   :  { %v1532_v43 = vmul.f32 0.70710677, %v1514_v46  ;;  %v1517_v45 = vadd.f32 %v3217_v17, %v1516_v36  ;;  %v1528_v59 = vmul.f32 0.5, %v1514_v46 }
 0xb95   :  { %3917 = verf.f32 %v1534_v28  ;;  %v1535_v39 = vmul.f32 0.70710677, %v1525_v35  ;;  %v1531_v33 = vmul.f32 0.5, %v1525_v35 }
 0xb96   :  { %3919 = verf.f32 %v1532_v43  ;;  %v1533_v21 = vmul.f32 0.70710677, %v1517_v45  ;;  %v1529_v60 = vmul.f32 0.5, %v1517_v45 }
 0xb97   :  { %3921 = verf.f32 %v1535_v39 }
 0xb98   :  { %3923 = verf.f32 %v1533_v21 }
 0xb9f   :  { %v3918_v1 = vpop.eup %3917 }
 0xba0   :  { %v3920_v2 = vpop.eup %3919  ;;  %v1542_v27 = vadd.f32 1.0, %v3918_v1 }
 0xba1   :  { %v3922_v26 = vpop.eup %3921  ;;  %v1540_v30 = vadd.f32 1.0, %v3920_v2 }
 0xba2   :  { %v3924_v34 = vpop.eup %3923  ;;  %v1543_v58 = vadd.f32 1.0, %v3922_v26  ;;  %v1546_v5 = vmul.f32 %v1542_v27, %v1530_v29 }
 0xba3   :  { %v1541_v62 = vadd.f32 1.0, %v3924_v34  ;;  %v1544_v11 = vmul.f32 %v1540_v30, %v1528_v59 }
 0xba4   :  { %v1547_v6 = vmul.f32 %v1543_v58, %v1531_v33 }
 0xba5   :  { %v1545_v32 = vmul.f32 %v1541_v62, %v1529_v60 }
 0xba6   :  { %v1549_v61 = vpack.c.bf16 %v1547_v6, %v1546_v5 }
 0xba7   :  { %v1548_v8 = vpack.c.bf16 %v1545_v32, %v1544_v11 }
 0xba9   :  { %3552 = vmatprep.mubr.bf16.mxu0 %v1548_v8 }
 0xbaa   :  { %3553 = vmatmul.mubr.bf16.vlgmr.msra.gmra.mrb[8].mxu0 %v1549_v61 }
 0xbab   :  { %3557 = vmatpush3.bf16.xpose.msra.mxu0 %v4169_v3  ;;  %v4030_v3 = vld [vmem:[%s5189_s23 + $0x18] sm:$0xff]  }
 0xbac   :  { %3763 = vmatprep.subr.msk.bf16.mxu0 %vm184_vm0, %v4028_v51 }
 0xbb3   :  { %3559 = vmatpush3.bf16.xpose.msra.mxu0 %v4185_v10  ;;  %v4031_v10 = vld [vmem:[%s5189_s23 + $0x20] sm:$0xff]  }
 0xbb4   :  { %3764 = vmatprep.subr.msk.bf16.mxu0 %vm184_vm0, %v4029_v12 }
 0xbbb   :  { %3561 = vmatpush3.bf16.xpose.msra.mxu0 %v4203_v14  ;;  %v4032_v14 = vld [vmem:[%s5189_s23 + $0x28] sm:$0xff]  }
 0xbbc   :  { %3765 = vmatprep.subr.msk.bf16.mxu0 %vm184_vm0, %v4030_v3 }
 0xbc3   :  { %3563 = vmatpush3.bf16.xpose.msra.mxu0 %v4211_v16  ;;  %v3228_v16 = vld [vmem:[%s5175_s12] ss:$0 sm:$0xff] }
 0xbc4   :  { %3766 = vmatprep.subr.msk.bf16.mxu0 %vm184_vm0, %v4031_v10 }
 0xbcb   :  { %3565 = vmatpush3.bf16.xpose.msra.mxu0 %v4219_v18 }
 0xbcc   :  { %3767 = vmatprep.subr.msk.bf16.mxu0 %vm184_vm0, %v4032_v14 }
 0xbd3   :  { %3567 = vmatpush3.bf16.xpose.msra.mxu0 %v4227_v20 }
 0xc7d   :  { %v3554_v17 = vpop.f32.mrb[8].mxu0 }
 0xc7e   :  { %v1602_v13 = vpop.f32.mrb[9].mxu0  ;;  %v1611_v23 = vadd.f32 %v3554_v17, %v3228_v16 }
 0xc7f   :  { %v1603_v44 = vadd.f32 %v3228_v16, %v1602_v13  ;;  %v3555_v46 = vpop.f32.mrb[10].mxu0 }
 0xc80   :  { %v1605_v25 = vpop.f32.mrb[11].mxu0  ;;  %v1614_v28 = vadd.f32 %v3555_v46, %v3228_v16  ;;  %v1619_v20 = vadd.f32 %v1611_v23, %v4658_v55 }
 0xc81   :  { %v1606_v18 = vadd.f32 %v3228_v16, %v1605_v25  ;;  %v1617_v35 = vadd.f32 %v1603_v44, %v4651_v9 }
 0xc82   :  { %v1620_v39 = vadd.f32 %v1614_v28, %v4660_v48  ;;  %v1627_v21 = vsel %vm184_vm0, %v1619_v20, 0.0  ;;  %v3231_v28 = vld [vmem:[%s5176_s13] ss:$0 sm:$0xff] }
 0xc83   :  { %v1621_v36 = vsel %vm184_vm0, %v1617_v35, 0.0  ;;  %v1618_v43 = vadd.f32 %v1606_v18, %v4653_v52 }
 0xc84   :  { %1622 = vadd.xlane.f32.xlu1 %v1621_v36  ;;  %v1630_v1 = vsel %vm184_vm0, %v1620_v39, 0.0 }
 0xc85   :  { %v1624_v45 = vsel %vm184_vm0, %v1618_v43, 0.0 }
 0xc86   :  { %1625 = vadd.xlane.f32.xlu0 %v1624_v45  ;;  %v3232_v45 = vld [vmem:[%s5177_s14] ss:$0 sm:$0xff] }
 0xc88   :  { %1628 = vadd.xlane.f32.xlu1 %v1627_v21 }
 0xc8a   :  { %1631 = vadd.xlane.f32.xlu0 %v1630_v1 }
 0xd11   :  { %v1623_v2 = vpop.xlane.xlu1 %1622 }
 0xd12   :  { %v1633_v9 = vmul.f32 0.03125, %v1623_v2 }
 0xd13   :  { %v1626_v27 = vpop.xlane.xlu0 %1625 }
 0xd14   :  { %v1637_v26 = vsub.f32 %v1617_v35, %v1633_v9  ;;  %v1634_v30 = vmul.f32 0.03125, %v1626_v27 }
 0xd15   :  { %v1629_v52 = vpop.xlane.xlu1 %1628 }
 0xd16   :  { %v1638_v34 = vsub.f32 %v1618_v43, %v1634_v30  ;;  %v1635_v55 = vmul.f32 0.03125, %v1629_v52  ;;  %v1641_v29 = vmul.f32 %v1637_v26, %v1637_v26 }
 0xd17   :  { %v1632_v33 = vpop.xlane.xlu0 %1631 }
 0xd18   :  { %v1639_v58 = vsub.f32 %v1619_v20, %v1635_v55  ;;  %v1636_v59 = vmul.f32 0.03125, %v1632_v33  ;;  %v1645_v48 = vsel %vm184_vm0, %v1641_v29, 0.0  ;;  %v1642_v60 = vmul.f32 %v1638_v34, %v1638_v34 }
 0xd19   :  { %1646 = vadd.xlane.f32.xlu1 %v1645_v48  ;;  %v4033_v48 = vld [vmem:[%s5167_s4] ss:$0 sm:$0xff]  ;;  %s5194_s4 = smov 64  }
 0xd1a   :  { %v1640_v62 = vsub.f32 %v1620_v39, %v1636_v59  ;;  %v1648_v5 = vsel %vm184_vm0, %v1642_v60, 0.0  ;;  %v1643_v6 = vmul.f32 %v1639_v58, %v1639_v58 }
 0xd1b   :  { %1649 = vadd.xlane.f32.xlu0 %v1648_v5 }
 0xd1c   :  { %v1651_v11 = vsel %vm184_vm0, %v1643_v6, 0.0  ;;  %v1644_v32 = vmul.f32 %v1640_v62, %v1640_v62 }
 0xd1d   :  { %1652 = vadd.xlane.f32.xlu1 %v1651_v11 }
 0xd1e   :  { %v1654_v61 = vsel %vm184_vm0, %v1644_v32, 0.0 }
 0xd1f   :  { %1655 = vadd.xlane.f32.xlu0 %v1654_v61 }
 0xda6   :  { %v1647_v8 = vpop.xlane.xlu1 %1646 }
 0xda7   :  { %v1657_v51 = vmul.f32 0.03125, %v1647_v8 }
 0xda8   :  { %v1650_v12 = vpop.xlane.xlu0 %1649 }
 0xda9   :  { %v1661_v3 = vadd.f32 1e-05, %v1657_v51  ;;  %v1658_v10 = vmul.f32 0.03125, %v1650_v12 }
 0xdaa   :  { %v1653_v14 = vpop.xlane.xlu1 %1652 }
 0xdab   :  { %3925 = vrsqrt.f32 %v1661_v3  ;;  %v1662_v16 = vadd.f32 1e-05, %v1658_v10  ;;  %v1659_v17 = vmul.f32 0.03125, %v1653_v14 }
 0xdac   :  { %v1656_v13 = vpop.xlane.xlu0 %1655 }
 0xdad   :  { %3927 = vrsqrt.f32 %v1662_v16  ;;  %v1663_v23 = vadd.f32 1e-05, %v1659_v17  ;;  %v1660_v44 = vmul.f32 0.03125, %v1656_v13 }
 0xdaf   :  { %3929 = vrsqrt.f32 %v1663_v23  ;;  %v1664_v46 = vadd.f32 1e-05, %v1660_v44 }
 0xdb1   :  { %3931 = vrsqrt.f32 %v1664_v46 }
 0xdb5   :  { %v3926_v25 = vpop.eup %3925 }
 0xdb6   :  { %v1669_v18 = vmul.f32 %v3926_v25, %v1637_v26 }
 0xdb7   :  { %v3928_v35 = vpop.eup %3927 }
 0xdb8   :  { %v1670_v36 = vmul.f32 %v3928_v35, %v1638_v34  ;;  %v1679_v43 = vmul.f32 %v3231_v28, %v1669_v18 }
 0xdb9   :  { %v3930_v20 = vpop.eup %3929 }
 0xdba   :  { %v1671_v39 = vmul.f32 %v3930_v20, %v1639_v58  ;;  %v1680_v21 = vmul.f32 %v3231_v28, %v1670_v36  ;;  %v4725_v27 = vadd.f32 %v3232_v45, %v1679_v43 }
 0xdbb   :  { %v3932_v1 = vpop.eup %3931 }
 0xdbc   :  { %v1681_v2 = vmul.f32 %v3231_v28, %v1671_v39  ;;  %v1672_v9 = vmul.f32 %v3932_v1, %v1640_v62  ;;  %v4727_v30 = vadd.f32 %v3232_v45, %v1680_v21 }
 0xdbe   :  { %v1682_v52 = vmul.f32 %v3231_v28, %v1672_v9  ;;  %v1693_v26 = vpack.c.bf16 %v4727_v30, %v4725_v27  ;;  %v4732_v34 = vadd.f32 %v3232_v45, %v1681_v2 }
 0xdc0   :  { %3568 = vmatprep.mubr.msk.bf16.mxu0 %vm184_vm0, %v1693_v26  ;;  %v4734_v55 = vadd.f32 %v3232_v45, %v1682_v52 }
 0xdc2   :  { %v1694_v29 = vpack.c.bf16 %v4734_v55, %v4732_v34 }
 0xdc4   :  { %3569 = vmatmul.mubr.msk.bf16.vlgmr.msra.gmra.mrb[12].mxu0 %vm184_vm0, %v1694_v29 }
 0xe97   :  { %v3570_v33 = vpop.f32.mrb[12].mxu0 }
 0xe98   :  { %v1735_v58 = vpop.f32.mrb[13].mxu0  ;;  %v1744_v60 = vadd.f32 %v4033_v48, %v3570_v33 }
 0xe99   :  { %v3571_v59 = vpop.f32.mrb[14].mxu0  ;;  %v1736_v6 = vadd.f32 %v4033_v48, %v1735_v58 }
 0xe9a   :  { %v1747_v62 = vadd.f32 %v4033_v48, %v3571_v59  ;;  %v1738_v5 = vpop.f32.mrb[15].mxu0 }
 0xe9b   :  { %v1739_v11 = vadd.f32 %v4033_v48, %v1738_v5 }
 0xe9c   :  { %v4742_v32 = vpack.c.bf16 %v1747_v62, %v1744_v60 }
 0xe9d   :  { %v4744_v61 = vpack.c.bf16 %v1739_v11, %v1736_v6 }
 0xe9e   :  { %1756 = vrot.lane.b32.xlu0 %v4742_v32, %s4061_s19 }
 0xe9f   :  { %1754 = vrot.lane.b32.xlu1 %v4744_v61, %s4061_s19  ;;  %3576 = vmatprep.mubr.msk.bf16.mxu1 %vm266_vm8, %v4744_v61  ;;  %s5195_s19 = smov 56  }
 0xea2   :  { %1936 = vrot.lane.b32.xlu0 %v4744_v61, %s4063_s27 }
 0xea3   :  { %1940 = vrot.lane.b32.xlu1 %v4744_v61, %s4062_s1 }
 0xea6   :  { %1938 = vrot.lane.b32.xlu0 %v4742_v32, %s4063_s27 }
 0xea7   :  { %1942 = vrot.lane.b32.xlu1 %v4742_v32, %s4062_s1 }
 0xeaa   :  { %2232 = vrot.lane.b32.xlu0 %v4744_v61, %s4066_s30 }
 0xeab   :  { %2236 = vrot.lane.b32.xlu1 %v4744_v61, %s4065_s29 }
 0xeaf   :  { %2238 = vrot.lane.b32.xlu1 %v4742_v32, %s4065_s29 }
 0xeb3   :  { %2234 = vrot.lane.b32.xlu1 %v4742_v32, %s4066_s30 }
 0xeb7   :  { %2347 = vrot.lane.b32.xlu1 %v4744_v61, %s4067_s3 }
 0xf10   :  { %v1757_v12 = vpop.permute.xlu0 %1756 }
 0xf11   :  { %v1755_v8 = vpop.permute.xlu1 %1754  ;;  %v1768_v3 = vsel %vm266_vm8, %v1757_v12, 0 }
 0xf12   :  { %v1765_v51 = vsel %vm266_vm8, %v1755_v8, 0  ;;  %3768 = vmatprep.subr.msk.bf16.mxu1 %vm266_vm8, %v1755_v8 }
 0xf13   :  { %3573 = vmatpush3.bf16.xpose.msra.mxu1 %v1765_v51 }
 0xf14   :  { %3769 = vmatprep.subr.msk.bf16.mxu1 %vm266_vm8, %v1757_v12  ;;  %v1937_v14 = vpop.permute.xlu0 %1936 }
 0xf15   :  { %v1941_v10 = vpop.permute.xlu1 %1940 }
 0xf16   :  { %v1951_v16 = vsel %vm266_vm8, %v1941_v10, 0 }
 0xf18   :  { %v1939_v44 = vpop.permute.xlu0 %1938 }
 0xf19   :  { %v1943_v17 = vpop.permute.xlu1 %1942 }
 0xf1a   :  { %v1954_v23 = vsel %vm266_vm8, %v1943_v17, 0 }
 0xf1b   :  { %3575 = vmatpush3.bf16.xpose.msra.mxu1 %v1768_v3 }
 0xf1c   :  { %3770 = vmatprep.subr.msk.bf16.mxu1 %vm266_vm8, %v1941_v10  ;;  %v2233_v25 = vpop.permute.xlu0 %2232 }
 0xf1d   :  { %v2237_v13 = vpop.permute.xlu1 %2236 }
 0xf1e   :  { %v2247_v28 = vsel %vm266_vm8, %v2237_v13, 0 }
 0xf21   :  { %v2239_v46 = vpop.permute.xlu1 %2238 }
 0xf22   :  { %3577 = vmatmul.mubr.msk.bf16.vlgmr.msra.gmra.mrb[36].mxu1 %vm266_vm8, %v4742_v32  ;;  %v2250_v35 = vsel %vm266_vm8, %v2239_v46, 0 }
 0xf23   :  { %3589 = vmatpush3.bf16.xpose.msra.mxu1 %v1951_v16  ;;  %3592 = vmatprep.mubr.msk.bf16.mxu1 %vm266_vm8, %v1937_v14 }
 0xf24   :  { %3771 = vmatprep.subr.msk.bf16.mxu1 %vm266_vm8, %v1943_v17 }
 0xf25   :  { %v2235_v18 = vpop.permute.xlu1 %2234 }
 0xf29   :  { %v2348_v36 = vpop.permute.xlu1 %2347 }
 0xf2b   :  { %3591 = vmatpush3.bf16.xpose.msra.mxu1 %v1954_v23 }
 0xf2c   :  { %3776 = vmatprep.subr.msk.bf16.mxu1 %vm266_vm8, %v2237_v13 }
 0xf32   :  { %3593 = vmatmul.mubr.msk.bf16.vlgmr.msra.gmra.mrb[40].mxu1 %vm266_vm8, %v1939_v44 }
 0xf33   :  { %3621 = vmatpush3.bf16.xpose.msra.mxu1 %v2247_v28  ;;  %3624 = vmatprep.mubr.msk.bf16.mxu1 %vm266_vm8, %v2233_v25 }
 0xf34   :  { %3777 = vmatprep.subr.msk.bf16.mxu1 %vm266_vm8, %v2239_v46 }
 0xf3b   :  { %3623 = vmatpush3.bf16.xpose.msra.mxu1 %v2250_v35 }
 0xf3c   :  { %3628 = vmatprep.subr.bf16.mxu1 %v2348_v36 }
 0xf42   :  { %3625 = vmatmul.mubr.msk.bf16.vlgmr.msra.gmra.mrb[44].mxu1 %vm266_vm8, %v2235_v18 }
 0xf43   :  { %3629 = vmatpush3.bf16.msra.mxu1 %v2348_v36 }
 0xff5   :  { %v3578_v43 = vpop.f32.mrb[36].mxu1 }
 0xff6   :  { %v1804_v20 = vpop.f32.mrb[37].mxu1  ;;  %v1821_v13 = vmul.f32 0.35355338, %v3578_v43 }
 0xff7   :  { %v3579_v45 = vpop.f32.mrb[38].mxu1  ;;  %v1819_v14 = vmul.f32 0.35355338, %v1804_v20 }
 0xff8   :  { %v1807_v39 = vpop.f32.mrb[39].mxu1  ;;  %v1822_v28 = vmul.f32 0.35355338, %v3579_v45  ;;  %v4823_v35 = vadd.f32 %v1821_v13, %v4287_v50 }
 0xff9   :  { %v1820_v10 = vmul.f32 0.35355338, %v1807_v39  ;;  %v4813_v23 = vadd.f32 %v1819_v14, %v4290_v54 }
 0xffa   :  { %v1833_v39 = vsel %vm184_vm0, %v4823_v35, -inf  ;;  %v4833_v45 = vadd.f32 %v1822_v28, %v4299_v0 }
 0xffb   :  { %v4810_v17 = vadd.f32 %v1820_v10, %v4293_v57  ;;  %v1827_v18 = vsel %vm184_vm0, %v4813_v23, -inf }
 0xffd   :  { %v1830_v46 = vsel %vm184_vm0, %v4810_v17, -inf }
0x1005   :  { %v3594_v21 = vpop.f32.mrb[40].mxu1 }
0x1006   :  { %v1990_v1 = vpop.f32.mrb[41].mxu1  ;;  %v2007_v44 = vmul.f32 0.35355338, %v3594_v21 }
0x1007   :  { %v3595_v2 = vpop.f32.mrb[42].mxu1  ;;  %v2005_v16 = vmul.f32 0.35355338, %v1990_v1 }
0x1008   :  { %v1993_v9 = vpop.f32.mrb[43].mxu1  ;;  %v4828_v43 = vadd.f32 %v2007_v44, %v4287_v50  ;;  %v2008_v1 = vmul.f32 0.35355338, %v3595_v2 }
0x1009   :  { %v4818_v25 = vadd.f32 %v2005_v16, %v4290_v54  ;;  %v2006_v20 = vmul.f32 0.35355338, %v1993_v9 }
0x100a   :  { %v2019_v21 = vsel %vm184_vm0, %v4828_v43, -inf  ;;  %v4843_v9 = vadd.f32 %v2008_v1, %v4299_v0 }
0x100b   :  { %v2013_v36 = vsel %vm184_vm0, %v4818_v25, -inf }
0x1015   :  { %v3626_v52 = vpop.f32.mrb[44].mxu1 }
0x1016   :  { %v2303_v26 = vmul.f32 0.35355338, %v3626_v52  ;;  %v2286_v29 = vpop.f32.mrb[45].mxu1  ;;  %v4838_v52 = vadd.f32 %v2006_v20, %v4293_v57 }
0x1017   :  { %v2301_v33 = vmul.f32 0.35355338, %v2286_v29  ;;  %v3627_v58 = vpop.f32.mrb[46].mxu1 }
0x1018   :  { %v2289_v59 = vpop.f32.mrb[47].mxu1  ;;  %v4789_v48 = vadd.f32 %v2303_v26, %v4287_v50  ;;  %v2304_v62 = vmul.f32 0.35355338, %v3627_v58  ;;  %v1836_v26 = vsel %vm184_vm0, %v4833_v45, -inf  ;;  %v2016_v29 = vsel %vm184_vm0, %v4838_v52, -inf }
0x1019   :  { %v2302_v60 = vmul.f32 0.35355338, %v2289_v59  ;;  %v2305_v6 = vadd.f32 %v2301_v33, %v4290_v54  ;;  %v2022_v33 = vsel %vm184_vm0, %v4843_v9, -inf }
0x101a   :  { %v2315_v5 = vsel %vm184_vm0, %v4789_v48, -inf  ;;  %v2308_v12 = vadd.f32 %v2304_v62, %v4299_v0 }
0x101b   :  { %2316 = vmax.xlane.f32.xlu0 %v2315_v5  ;;  %v2306_v11 = vadd.f32 %v2302_v60, %v4293_v57  ;;  %v2309_v51 = vsel %vm184_vm0, %v2305_v6, -inf }
0x101c   :  { %v2318_v3 = vsel %vm184_vm0, %v2308_v12, -inf }
0x101d   :  { %v2312_v8 = vsel %vm184_vm0, %v2306_v11, -inf }
0x101e   :  { %2313 = vmax.xlane.f32.xlu1 %v2312_v8 }
0x101f   :  { %2310 = vmax.xlane.f32.xlu0 %v2309_v51 }
0x1023   :  { %2319 = vmax.xlane.f32.xlu0 %v2318_v3 }
0x102f   :  { %2481 = vrot.lane.b32.xlu1 %v4744_v61, %s4068_s17 }
0x1033   :  { %2483 = vrot.lane.b32.xlu1 %v4742_v32, %s4068_s17 }
0x1037   :  { %2479 = vrot.lane.b32.xlu1 %v4742_v32, %s4069_s18 }
0x1039   :  { %2349 = vrot.lane.b32.xlu0 %v4742_v32, %s4067_s3 }
0x103d   :  { %2477 = vrot.lane.b32.xlu0 %v4744_v61, %s4069_s18  ;;  %s5196_s18 = smov 40  }
0x105b   :  { %1831 = vmax.xlane.f32.xlu1 %v1830_v46 }
0x105c   :  { %1828 = vmax.xlane.f32.xlu0 %v1827_v18 }
0x105f   :  { %2014 = vmax.xlane.f32.xlu1 %v2013_v36 }
0x1060   :  { %1834 = vmax.xlane.f32.xlu0 %v1833_v39 }
0x1063   :  { %2020 = vmax.xlane.f32.xlu1 %v2019_v21 }
0x1064   :  { %1837 = vmax.xlane.f32.xlu0 %v1836_v26 }
0x1068   :  { %2017 = vmax.xlane.f32.xlu0 %v2016_v29 }
0x106c   :  { %2023 = vmax.xlane.f32.xlu0 %v2022_v33 }
0x1074   :  { %1865 = vrot.lane.b32.xlu1 %v4744_v61, %s5194_s4 }
0x1078   :  { %2051 = vrot.lane.b32.xlu1 %v4744_v61, %s5195_s19 }
0x107c   :  { %2053 = vrot.lane.b32.xlu1 %v4742_v32, %s5195_s19 }
0x1082   :  { %1867 = vrot.lane.b32.xlu0 %v4742_v32, %s5194_s4 }
0x10a8   :  { %v2317_v2 = vpop.xlane.xlu0 %2316 }
0x10a9   :  { %v2323_v59 = vsub.f32 %v4789_v48, %v2317_v2 }
0x10ab   :  { %v2314_v58 = vpop.xlane.xlu1 %2313  ;;  %v2329_v3 = vmul.f32 1.442695, %v2323_v59 }
0x10ac   :  { %v2322_v60 = vsub.f32 %v2306_v11, %v2314_v58  ;;  %v2311_v62 = vpop.xlane.xlu0 %2310 }
0x10ad   :  { %v2321_v5 = vsub.f32 %v2305_v6, %v2311_v62 }
0x10ae   :  { %v2327_v8 = vmul.f32 1.442695, %v2322_v60 }
0x10af   :  { %v2325_v51 = vmul.f32 1.442695, %v2321_v5  ;;  %v2482_v44 = vpop.permute.xlu1 %2481 }
0x10b0   :  { %3933 = vpow2.f32 %v2327_v8  ;;  %v2320_v10 = vpop.xlane.xlu0 %2319  ;;  %v2492_v18 = vsel %vm266_vm8, %v2482_v44, 0 }
0x10b1   :  { %3935 = vpow2.f32 %v2325_v51  ;;  %v2324_v14 = vsub.f32 %v2308_v12, %v2320_v10 }
0x10b2   :  { %3937 = vpow2.f32 %v2329_v3 }
0x10b3   :  { %v2331_v16 = vmul.f32 1.442695, %v2324_v14  ;;  %v2484_v20 = vpop.permute.xlu1 %2483 }
0x10b4   :  { %v2350_v13 = vpop.permute.xlu0 %2349  ;;  %v2495_v39 = vsel %vm266_vm8, %v2484_v20, 0 }
0x10b5   :  { %3939 = vpow2.f32 %v2331_v16  ;;  %3630 = vmatprep.subr.bf16.mxu1 %v2350_v13 }
0x10b6   :  { %3631 = vmatpush3.bf16.msra.mxu1 %v2350_v13 }
0x10b7   :  { %3780 = vmatprep.subr.msk.bf16.mxu1 %vm266_vm8, %v2482_v44  ;;  %v2480_v21 = vpop.permute.xlu1 %2479 }
0x10b8   :  { %v2478_v36 = vpop.permute.xlu0 %2477 }
0x10ba   :  { %v4859_v48 = vpop.eup %3933 }
0x10bb   :  { %v4861_v11 = vpop.eup %3935 }
0x10bc   :  { %v2345_v6 = vpack.c.bf16 %v4859_v48, %v4861_v11  ;;  %v4865_v46 = vpop.eup %3937 }
0x10be   :  { %3632 = vmatprep.mubr.msk.bf16.mxu1 %vm184_vm0, %v2345_v6 }
0x10bf   :  { %v4868_v12 = vpop.eup %3939 }
0x10c0   :  { %v2346_v28 = vpack.c.bf16 %v4868_v12, %v4865_v46 }
0x10c2   :  { %3633 = vmatmul.mubr.msk.bf16.vlgmr.msra.gmra.mrb[48].mxu1 %vm184_vm0, %v2346_v28 }
0x10c3   :  { %3645 = vmatpush3.bf16.xpose.msra.mxu1 %v2492_v18  ;;  %3648 = vmatprep.mubr.msk.bf16.mxu1 %vm266_vm8, %v2478_v36 }
0x10c4   :  { %3781 = vmatprep.subr.msk.bf16.mxu1 %vm266_vm8, %v2484_v20 }
0x10cb   :  { %3647 = vmatpush3.bf16.xpose.msra.mxu1 %v2495_v39 }
0x10d2   :  { %3649 = vmatmul.mubr.msk.bf16.vlgmr.msra.gmra.mrb[52].mxu1 %vm266_vm8, %v2480_v21 }
0x10e8   :  { %v1832_v1 = vpop.xlane.xlu1 %1831 }
0x10e9   :  { %v1840_v26 = vsub.f32 %v4810_v17, %v1832_v1  ;;  %v1829_v29 = vpop.xlane.xlu0 %1828 }
0x10ea   :  { %v1839_v33 = vsub.f32 %v4813_v23, %v1829_v29 }
0x10eb   :  { %v1845_v2 = vmul.f32 1.442695, %v1840_v26 }
0x10ec   :  { %v1843_v58 = vmul.f32 1.442695, %v1839_v33  ;;  %v2015_v59 = vpop.xlane.xlu1 %2014 }
0x10ed   :  { %3941 = vpow2.f32 %v1845_v2  ;;  %v1835_v60 = vpop.xlane.xlu0 %1834  ;;  %v2025_v8 = vsub.f32 %v4818_v25, %v2015_v59 }
0x10ee   :  { %3943 = vpow2.f32 %v1843_v58  ;;  %v1841_v62 = vsub.f32 %v4823_v35, %v1835_v60  ;;  %v4034_v60 = vld [vmem:[%s5168_s5 + $0x10] sm:$0xff]  }
0x10ef   :  { %v2029_v16 = vmul.f32 1.442695, %v2025_v8 }
0x10f0   :  { %v2021_v5 = vpop.xlane.xlu1 %2020  ;;  %v1847_v51 = vmul.f32 1.442695, %v1841_v62  ;;  %v4035_v62 = vld [vmem:[%s5168_s5 + $0x18] sm:$0xff]  }
0x10f1   :  { %v1838_v3 = vpop.xlane.xlu0 %1837  ;;  %v2027_v23 = vsub.f32 %v4828_v43, %v2021_v5  ;;  %v4036_v5 = vld [vmem:[%s5168_s5] sm:$0xff]  }
0x10f2   :  { %v1842_v10 = vsub.f32 %v4833_v45, %v1838_v3  ;;  %3945 = vpow2.f32 %v1847_v51 }
0x10f3   :  { %v2033_v28 = vmul.f32 1.442695, %v2027_v23 }
0x10f4   :  { %v1849_v14 = vmul.f32 1.442695, %v1842_v10  ;;  %v1866_v17 = vpop.permute.xlu1 %1865 }
0x10f5   :  { %v2018_v13 = vpop.xlane.xlu0 %2017  ;;  %3580 = vmatprep.subr.bf16.mxu0 %v1866_v17 }
0x10f6   :  { %3947 = vpow2.f32 %v1849_v14  ;;  %v2026_v44 = vsub.f32 %v4838_v52, %v2018_v13  ;;  %3581 = vmatpush3.bf16.msra.mxu0 %v1866_v17 }
0x10f7   :  { %v4885_v35 = vpop.eup %3941  ;;  %3949 = vpow2.f32 %v2029_v16 }
0x10f8   :  { %v4887_v6 = vpop.eup %3943  ;;  %v2031_v25 = vmul.f32 1.442695, %v2026_v44  ;;  %v2052_v20 = vpop.permute.xlu1 %2051 }
0x10f9   :  { %v2024_v45 = vpop.xlane.xlu0 %2023  ;;  %v1863_v18 = vpack.c.bf16 %v4885_v35, %v4887_v6 }
0x10fa   :  { %3951 = vpow2.f32 %v2031_v25  ;;  %v2028_v43 = vsub.f32 %v4843_v9, %v2024_v45 }
0x10fb   :  { %3584 = vmatprep.mubr.msk.bf16.mxu0 %vm184_vm0, %v1863_v18  ;;  %3953 = vpow2.f32 %v2033_v28 }
0x10fc   :  { %v2035_v36 = vmul.f32 1.442695, %v2028_v43  ;;  %v4893_v39 = vpop.eup %3945  ;;  %v2054_v29 = vpop.permute.xlu1 %2053 }
0x10fd   :  { %v1868_v52 = vpop.permute.xlu0 %1867 }
0x10fe   :  { %3955 = vpow2.f32 %v2035_v36  ;;  %3582 = vmatprep.subr.bf16.mxu0 %v1868_v52 }
0x10ff   :  { %3583 = vmatpush3.bf16.msra.mxu0 %v1868_v52 }
0x1100   :  { %v4895_v21 = vpop.eup %3947  ;;  %3596 = vmatprep.subr.bf16.mxu0 %v2052_v20 }
0x1101   :  { %v1864_v1 = vpack.c.bf16 %v4895_v21, %v4893_v39  ;;  %v3950_v26 = vpop.eup %3949 }
0x1103   :  { %3585 = vmatmul.mubr.msk.bf16.vlgmr.msra.gmra.mrb[16].mxu0 %vm184_vm0, %v1864_v1 }
0x1104   :  { %v3952_v9 = vpop.eup %3951  ;;  %3597 = vmatpush3.bf16.msra.mxu0 %v2052_v20 }
0x1105   :  { %3598 = vmatprep.subr.bf16.mxu0 %v2054_v29  ;;  %v2049_v33 = vpack.c.bf16 %v3952_v9, %v3950_v26  ;;  %v3954_v2 = vpop.eup %3953 }
0x1107   :  { %3600 = vmatprep.mubr.msk.bf16.mxu0 %vm184_vm0, %v2049_v33 }
0x1108   :  { %v3956_v58 = vpop.eup %3955  ;;  %3599 = vmatpush3.bf16.msra.mxu0 %v2054_v29 }
0x1109   :  { %v2050_v59 = vpack.c.bf16 %v3956_v58, %v3954_v2  ;;  %3772 = vmatprep.subr.msk.bf16.mxu0 %vm266_vm8, %v4034_v60  ;;  %v2040_v60 = vsel %vm184_vm0, %v3952_v9, 0.0  ;;  %v1860_v9 = vsel %vm184_vm0, %v4895_v21, 0.0 }
0x110b   :  { %3601 = vmatmul.mubr.msk.bf16.vlgmr.msra.gmra.mrb[20].mxu0 %vm184_vm0, %v2050_v59 }
0x1111   :  { %3605 = vmatpush3.bf16.xpose.msra.mxu0 %v4473_v42 }
0x1112   :  { %3773 = vmatprep.subr.msk.bf16.mxu0 %vm266_vm8, %v4035_v62  ;;  %v1851_v62 = vsel %vm184_vm0, %v4887_v6, 0.0  ;;  %v2339_v6 = vsel %vm184_vm0, %v4865_v46, 0.0 }
0x1119   :  { %3607 = vmatpush3.bf16.xpose.msra.mxu0 %v4481_v41 }
0x111a   :  { %3774 = vmatprep.subr.msk.bf16.mxu0 %vm266_vm8, %v4036_v5  ;;  %v2046_v5 = vsel %vm184_vm0, %v3956_v58, 0.0 }
0x1195   :  { %v4916_v8 = vpop.f32.mrb[48].mxu1 }
0x1196   :  { %v4918_v51 = vpop.f32.mrb[49].mxu1 }
0x1197   :  { %v4920_v3 = vpop.f32.mrb[50].mxu1 }
0x1198   :  { %v4922_v42 = vpop.f32.mrb[51].mxu1 }
0x11a5   :  { %v3650_v10 = vpop.f32.mrb[52].mxu1 }
0x11a6   :  { %v2548_v14 = vmul.f32 0.35355338, %v3650_v10  ;;  %v2531_v17 = vpop.f32.mrb[53].mxu1  ;;  %v1857_v10 = vsel %vm184_vm0, %v4893_v39, 0.0  ;;  %v2336_v39 = vsel %vm184_vm0, %v4859_v48, 0.0 }
0x11a7   :  { %v2546_v16 = vmul.f32 0.35355338, %v2531_v17  ;;  %v3651_v23 = vpop.f32.mrb[54].mxu1 }
0x11a8   :  { %v2552_v41 = vadd.f32 %v2548_v14, %v4287_v50  ;;  %v2534_v13 = vpop.f32.mrb[55].mxu1  ;;  %v2549_v28 = vmul.f32 0.35355338, %v3651_v23 }
0x11a9   :  { %v2547_v44 = vmul.f32 0.35355338, %v2534_v13  ;;  %v2550_v25 = vadd.f32 %v2546_v16, %v4290_v54 }
0x11aa   :  { %v2560_v45 = vsel %vm184_vm0, %v2552_v41, -inf  ;;  %v2553_v36 = vadd.f32 %v2549_v28, %v4299_v0 }
0x11ab   :  { %v2551_v18 = vadd.f32 %v2547_v44, %v4293_v57  ;;  %2561 = vmax.xlane.f32.xlu0 %v2560_v45  ;;  %v2554_v52 = vsel %vm184_vm0, %v2550_v25, -inf }
0x11ac   :  { %v2563_v50 = vsel %vm184_vm0, %v2553_v36, -inf }
0x11ad   :  { %v2557_v43 = vsel %vm184_vm0, %v2551_v18, -inf }
0x11ae   :  { %2558 = vmax.xlane.f32.xlu1 %v2557_v43 }
0x11af   :  { %2555 = vmax.xlane.f32.xlu0 %v2554_v52 }
0x11b3   :  { %2564 = vmax.xlane.f32.xlu0 %v2563_v50 }
0x11bf   :  { %2592 = vrot.lane.b32.xlu1 %v4744_v61, %s5196_s18  ;;  %v2037_v61 = vsel %vm184_vm0, %v3950_v26, 0.0  ;;  %v1854_v26 = vsel %vm184_vm0, %v4885_v35, 0.0  ;;  %v2342_v35 = vsel %vm184_vm0, %v4868_v12, 0.0 }
0x11c9   :  { %2594 = vrot.lane.b32.xlu0 %v4742_v32, %s5196_s18  ;;  %v2043_v32 = vsel %vm184_vm0, %v3954_v2, 0.0  ;;  %v2333_v2 = vsel %vm184_vm0, %v4861_v11, 0.0 }
0x11d6   :  { %v4936_v54 = vpop.f32.mrb[16].mxu0 }
0x11d7   :  { %v4938_v57 = vpop.f32.mrb[17].mxu0 }
0x11d8   :  { %v4940_v20 = vpop.f32.mrb[18].mxu0 }
0x11d9   :  { %v4942_v0 = vpop.f32.mrb[19].mxu0 }
0x11de   :  { %v4944_v1 = vpop.f32.mrb[20].mxu0 }
0x11df   :  { %v4946_v29 = vpop.f32.mrb[21].mxu0 }
0x11e0   :  { %v4948_v33 = vpop.f32.mrb[22].mxu0 }
0x11e1   :  { %v4950_v59 = vpop.f32.mrb[23].mxu0 }
0x11e3   :  { %2038 = vadd.xlane.f32.xlu1 %v2037_v61 }
0x11e7   :  { %2044 = vadd.xlane.f32.xlu1 %v2043_v32 }
0x11e8   :  { %2041 = vadd.xlane.f32.xlu0 %v2040_v60 }
0x11eb   :  { %1852 = vadd.xlane.f32.xlu1 %v1851_v62 }
0x11ec   :  { %2047 = vadd.xlane.f32.xlu0 %v2046_v5  ;;  %v4038_v5 = vld [vmem:[%s5170_s9 + $0x8] sm:$0xff]  }
0x11ef   :  { %1858 = vadd.xlane.f32.xlu1 %v1857_v10  ;;  %v4039_v10 = vld [vmem:[%s5170_s9 + $0x10] sm:$0xff]  }
0x11f0   :  { %1855 = vadd.xlane.f32.xlu0 %v1854_v26 }
0x11f3   :  { %2334 = vadd.xlane.f32.xlu1 %v2333_v2 }
0x11f4   :  { %1861 = vadd.xlane.f32.xlu0 %v1860_v9 }
0x11f7   :  { %2340 = vadd.xlane.f32.xlu1 %v2339_v6 }
0x11f8   :  { %2337 = vadd.xlane.f32.xlu0 %v2336_v39 }
0x11fc   :  { %2343 = vadd.xlane.f32.xlu0 %v2342_v35 }
0x1238   :  { %v2562_v58 = vpop.xlane.xlu0 %2561 }
0x1239   :  { %v2568_v14 = vsub.f32 %v2552_v41, %v2562_v58  ;;  %v4037_v41 = vld [vmem:[%s5170_s9] sm:$0xff]  }
0x123b   :  { %v2559_v11 = vpop.xlane.xlu1 %2558  ;;  %v2574_v13 = vmul.f32 1.442695, %v2568_v14 }
0x123c   :  { %v2567_v17 = vsub.f32 %v2551_v18, %v2559_v11  ;;  %v2556_v16 = vpop.xlane.xlu0 %2555 }
0x123d   :  { %v2566_v23 = vsub.f32 %v2550_v25, %v2556_v16 }
0x123e   :  { %v2572_v21 = vmul.f32 1.442695, %v2567_v17 }
0x123f   :  { %v2570_v44 = vmul.f32 1.442695, %v2566_v23  ;;  %v2593_v28 = vpop.permute.xlu1 %2592 }
0x1240   :  { %3957 = vpow2.f32 %v2572_v21  ;;  %v2565_v46 = vpop.xlane.xlu0 %2564  ;;  %3652 = vmatprep.subr.bf16.mxu1 %v2593_v28 }
0x1241   :  { %3959 = vpow2.f32 %v2570_v44  ;;  %v2569_v48 = vsub.f32 %v2553_v36, %v2565_v46  ;;  %3653 = vmatpush3.bf16.msra.mxu1 %v2593_v28  ;;  %v4044_v44 = vld [vmem:[%s5170_s9 + $0x38] sm:$0xff]  }
0x1242   :  { %3961 = vpow2.f32 %v2574_v13 }
0x1243   :  { %v2576_v45 = vmul.f32 1.442695, %v2569_v48 }
0x1244   :  { %v2595_v12 = vpop.permute.xlu0 %2594 }
0x1245   :  { %3963 = vpow2.f32 %v2576_v45  ;;  %3654 = vmatprep.subr.bf16.mxu1 %v2595_v12 }
0x1246   :  { %3655 = vmatpush3.bf16.msra.mxu1 %v2595_v12 }
0x1247   :  { %3784 = vmatprep.subr.msk.bf16.mxu1 %vm184_vm0, %v4037_v41 }
0x124a   :  { %v3958_v25 = vpop.eup %3957 }
0x124b   :  { %v3960_v18 = vpop.eup %3959  ;;  %v2581_v43 = vsel %vm184_vm0, %v3958_v25, 0.0 }
0x124c   :  { %2582 = vadd.xlane.f32.xlu0 %v2581_v43  ;;  %v2578_v36 = vsel %vm184_vm0, %v3960_v18, 0.0  ;;  %v2590_v52 = vpack.c.bf16 %v3958_v25, %v3960_v18  ;;  %v3962_v50 = vpop.eup %3961 }
0x124d   :  { %2579 = vadd.xlane.f32.xlu1 %v2578_v36  ;;  %v2584_v32 = vsel %vm184_vm0, %v3962_v50, 0.0 }
0x124e   :  { %3656 = vmatprep.mubr.msk.bf16.mxu1 %vm184_vm0, %v2590_v52 }
0x124f   :  { %v3964_v61 = vpop.eup %3963 }
0x1250   :  { %v2587_v60 = vsel %vm184_vm0, %v3964_v61, 0.0  ;;  %v2591_v62 = vpack.c.bf16 %v3964_v61, %v3962_v50 }
0x1251   :  { %2585 = vadd.xlane.f32.xlu1 %v2584_v32  ;;  %2588 = vadd.xlane.f32.xlu0 %v2587_v60 }
0x1252   :  { %3657 = vmatmul.mubr.msk.bf16.vlgmr.msra.gmra.mrb[56].mxu1 %vm184_vm0, %v2591_v62 }
0x1253   :  { %3669 = vmatpush3.bf16.xpose.msra.mxu1 %v4585_v40  ;;  %v4040_v40 = vld [vmem:[%s5170_s9 + $0x18] sm:$0xff]  }
0x1254   :  { %3785 = vmatprep.subr.msk.bf16.mxu1 %vm184_vm0, %v4038_v5 }
0x125b   :  { %3671 = vmatpush3.bf16.xpose.msra.mxu1 %v4590_v22  ;;  %v4041_v22 = vld [vmem:[%s5170_s9 + $0x20] sm:$0xff]  }
0x125c   :  { %3786 = vmatprep.subr.msk.bf16.mxu1 %vm184_vm0, %v4039_v10 }
0x1263   :  { %3673 = vmatpush3.bf16.xpose.msra.mxu1 %v4598_v56  ;;  %v4042_v56 = vld [vmem:[%s5170_s9 + $0x28] sm:$0xff]  }
0x1264   :  { %3787 = vmatprep.subr.msk.bf16.mxu1 %vm184_vm0, %v4040_v40 }
0x126b   :  { %3675 = vmatpush3.bf16.xpose.msra.mxu1 %v4606_v38 }
0x126c   :  { %3788 = vmatprep.subr.msk.bf16.mxu1 %vm184_vm0, %v4041_v22 }
0x1270   :  { %v2039_v26 = vpop.xlane.xlu1 %2038 }
0x1271   :  { %3965 = vrcp.f32 %v2039_v26 }
0x1273   :  { %3677 = vmatpush3.bf16.xpose.msra.mxu1 %v4614_v31  ;;  %v4043_v31 = vld [vmem:[%s5170_s9 + $0x30] sm:$0xff]  }
0x1274   :  { %v2045_v2 = vpop.xlane.xlu1 %2044  ;;  %3789 = vmatprep.subr.msk.bf16.mxu1 %vm184_vm0, %v4042_v56 }
0x1275   :  { %v2042_v9 = vpop.xlane.xlu0 %2041 }
0x1276   :  { %3967 = vrcp.f32 %v2042_v9 }
0x1277   :  { %3969 = vrcp.f32 %v2045_v2 }
0x1278   :  { %v1853_v38 = vpop.xlane.xlu1 %1852 }
0x1279   :  { %v2048_v6 = vpop.xlane.xlu0 %2047 }
0x127a   :  { %3971 = vrcp.f32 %v2048_v6 }
0x127b   :  { %3679 = vmatpush3.bf16.xpose.msra.mxu1 %v4626_v15  ;;  %3973 = vrcp.f32 %v1853_v38  ;;  %v3966_v58 = vpop.eup %3965 }
0x127c   :  { %v1859_v39 = vpop.xlane.xlu1 %1858  ;;  %3790 = vmatprep.subr.msk.bf16.mxu1 %vm184_vm0, %v4043_v31  ;;  %v2116_v16 = vmul.f32 %v3966_v58, %v4946_v29 }
0x127d   :  { %v1856_v35 = vpop.xlane.xlu0 %1855 }
0x127e   :  { %3975 = vrcp.f32 %v1856_v35 }
0x127f   :  { %3977 = vrcp.f32 %v1859_v39 }
0x1280   :  { %v3968_v14 = vpop.eup %3967  ;;  %v2335_v11 = vpop.xlane.xlu1 %2334 }
0x1281   :  { %v1862_v17 = vpop.xlane.xlu0 %1861  ;;  %v2117_v23 = vmul.f32 %v3968_v14, %v4950_v59  ;;  %v3970_v15 = vpop.eup %3969  ;;  %v4051_v14 = vld [vmem:[%s5173_s11 + $0x8] sm:$0xff]  }
0x1282   :  { %3979 = vrcp.f32 %v1862_v17  ;;  %v2118_v28 = vmul.f32 %v3970_v15, %v4944_v1 }
0x1283   :  { %v2120_v21 = vpack.c.bf16 %v2117_v23, %v2116_v16  ;;  %3681 = vmatpush3.bf16.xpose.msra.mxu1 %v4634_v53  ;;  %3981 = vrcp.f32 %v2335_v11  ;;  %v4052_v16 = vld [vmem:[%s5169_s6] ss:$0 sm:$0xff] }
0x1284   :  { %v3972_v13 = vpop.eup %3971  ;;  %3791 = vmatprep.subr.msk.bf16.mxu1 %vm184_vm0, %v4044_v44  ;;  %v2341_v29 = vpop.xlane.xlu1 %2340 }
0x1285   :  { %v2119_v46 = vmul.f32 %v3972_v13, %v4948_v33  ;;  %v2338_v48 = vpop.xlane.xlu0 %2337  ;;  %3608 = vmatprep.mubr.msk.bf16.mxu0 %vm266_vm8, %v2120_v21  ;;  %v3974_v59 = vpop.eup %3973  ;;  %v4045_v33 = vld [vmem:[%s5168_s5 + $0x8] sm:$0xff]  }
0x1286   :  { %3983 = vrcp.f32 %v2338_v48  ;;  %v1930_v41 = vmul.f32 %v3974_v59, %v4938_v57 }
0x1287   :  { %v2121_v45 = vpack.c.bf16 %v2119_v46, %v2118_v28  ;;  %3985 = vrcp.f32 %v2341_v29 }
0x1288   :  { %v3976_v53 = vpop.eup %3975 }
0x1289   :  { %v2344_v12 = vpop.xlane.xlu0 %2343  ;;  %3609 = vmatmul.mubr.msk.bf16.vlgmr.msra.gmra.mrb[24].mxu0 %vm266_vm8, %v2121_v45  ;;  %v1931_v25 = vmul.f32 %v3976_v53, %v4942_v0  ;;  %v3978_v18 = vpop.eup %3977 }
0x128a   :  { %3987 = vrcp.f32 %v2344_v12  ;;  %3613 = vmatpush3.bf16.xpose.msra.mxu0 %v4504_v49  ;;  %v1932_v36 = vmul.f32 %v3978_v18, %v4936_v54 }
0x128b   :  { %v1934_v1 = vpack.c.bf16 %v1931_v25, %v1930_v41  ;;  %3775 = vmatprep.subr.msk.bf16.mxu0 %vm266_vm8, %v4045_v33  ;;  %3683 = vmatpush3.bf16.xpose.msra.mxu1 %v4642_v19  ;;  %v4046_v19 = vld [vmem:[%s5168_s5 + $0x20] sm:$0xff]  }
0x128c   :  { %v3980_v43 = vpop.eup %3979 }
0x128d   :  { %v1933_v57 = vmul.f32 %v3980_v43, %v4940_v20  ;;  %3616 = vmatprep.mubr.msk.bf16.mxu0 %vm266_vm8, %v1934_v1  ;;  %v3982_v0 = vpop.eup %3981 }
0x128e   :  { %v2412_v49 = vmul.f32 %v3982_v0, %v4918_v51 }
0x128f   :  { %v1935_v52 = vpack.c.bf16 %v1933_v57, %v1932_v36 }
0x1290   :  { %v3984_v50 = vpop.eup %3983 }
0x1291   :  { %v2413_v61 = vmul.f32 %v3984_v50, %v4922_v42  ;;  %v3986_v32 = vpop.eup %3985 }
0x1292   :  { %3615 = vmatpush3.bf16.xpose.msra.mxu0 %v4518_v24  ;;  %v2414_v60 = vmul.f32 %v3986_v32, %v4916_v8  ;;  %v4047_v24 = vld [vmem:[%s5168_s5 + $0x28] sm:$0xff]   ;;  %v4048_v8 = vld [vmem:[%s5168_s5 + $0x30] sm:$0xff]  }
0x1293   :  { %3778 = vmatprep.subr.msk.bf16.mxu0 %vm266_vm8, %v4046_v19  ;;  %v2416_v54 = vpack.c.bf16 %v2413_v61, %v2412_v49 }
0x1294   :  { %v3988_v20 = vpop.eup %3987 }
0x1295   :  { %v2415_v62 = vmul.f32 %v3988_v20, %v4920_v3 }
0x1297   :  { %v2417_v5 = vpack.c.bf16 %v2415_v62, %v2414_v60 }
0x1299   :  { %3617 = vmatmul.mubr.msk.bf16.vlgmr.msra.gmra.mrb[24].mxu0 %vm266_vm8, %v1935_v52 }
0x129a   :  { %3637 = vmatpush3.bf16.xpose.msra.mxu0 %v4530_v47  ;;  %3640 = vmatprep.mubr.msk.bf16.mxu0 %vm266_vm8, %v2416_v54  ;;  %v4049_v47 = vld [vmem:[%s5168_s5 + $0x38] sm:$0xff]  }
0x129b   :  { %3779 = vmatprep.subr.msk.bf16.mxu0 %vm266_vm8, %v4047_v24 }
0x12a2   :  { %3639 = vmatpush3.bf16.xpose.msra.mxu0 %v4540_v63  ;;  %v4050_v63 = vld [vmem:[%s5173_s11] sm:$0xff]  }
0x12a3   :  { %3782 = vmatprep.subr.msk.bf16.mxu0 %vm266_vm8, %v4048_v8 }
0x12a9   :  { %3641 = vmatmul.mubr.msk.bf16.vlgmr.msra.gmra.mrb[24].mxu0 %vm266_vm8, %v2417_v5 }
0x12aa   :  { %3661 = vmatpush3.bf16.xpose.msra.mxu0 %v4548_v4 }
0x12ab   :  { %3783 = vmatprep.subr.msk.bf16.mxu0 %vm266_vm8, %v4049_v47 }
0x12b2   :  { %3663 = vmatpush3.bf16.xpose.msra.mxu0 %v4557_v37 }
0x12b3   :  { %3688 = vmatprep.subr.bf16.mxu0 %v4050_v63 }
0x12d9   :  { %v2583_v51 = vpop.xlane.xlu0 %2582 }
0x12da   :  { %v2580_v3 = vpop.xlane.xlu1 %2579  ;;  %3989 = vrcp.f32 %v2583_v51 }
0x12de   :  { %v2589_v42 = vpop.xlane.xlu0 %2588  ;;  %v2586_v10 = vpop.xlane.xlu1 %2585 }
0x12df   :  { %3991 = vrcp.f32 %v2589_v42 }
0x12e0   :  { %3993 = vrcp.f32 %v2586_v10 }
0x12e1   :  { %3995 = vrcp.f32 %v2580_v3 }
0x12e4   :  { %v3990_v4 = vpop.eup %3989 }
0x12e9   :  { %v3992_v22 = vpop.eup %3991 }
0x12ea   :  { %v3994_v2 = vpop.eup %3993 }
0x12eb   :  { %v3996_v37 = vpop.eup %3995 }
0x1325   :  { %v3658_v40 = vpop.f32.mrb[56].mxu1 }
0x1326   :  { %v2638_v26 = vpop.f32.mrb[57].mxu1  ;;  %v2659_v9 = vmul.f32 %v3994_v2, %v3658_v40 }
0x1327   :  { %v3659_v56 = vpop.f32.mrb[58].mxu1  ;;  %v2657_v39 = vmul.f32 %v3996_v37, %v2638_v26 }
0x1328   :  { %v2660_v38 = vmul.f32 %v3992_v22, %v3659_v56  ;;  %v2641_v6 = vpop.f32.mrb[59].mxu1  ;;  %v4053_v56 = vld [vmem:[%s5171_s7] ss:$0 sm:$0xff] }
0x1329   :  { %v2658_v31 = vmul.f32 %v3990_v4, %v2641_v6 }
0x132a   :  { %v2662_v35 = vpack.c.bf16 %v2660_v38, %v2659_v9 }
0x132b   :  { %v2661_v58 = vpack.c.bf16 %v2658_v31, %v2657_v39 }
0x132d   :  { %3664 = vmatprep.mubr.msk.bf16.mxu0 %vm266_vm8, %v2661_v58  ;;  %v4054_v58 = vld [vmem:[%s5172_s8] ss:$0 sm:$0xff] }
0x132e   :  { %3665 = vmatmul.mubr.msk.bf16.vlgmr.msra.gmra.mrb[24].mxu0 %vm266_vm8, %v2662_v35 }
0x132f   :  { %3689 = vmatpush3.bf16.xpose.msra.mxu0 %v4050_v63 }
0x1330   :  { %3690 = vmatprep.subr.bf16.mxu0 %v4051_v14 }
0x1337   :  { %3691 = vmatpush3.bf16.xpose.msra.mxu0 %v4051_v14 }
0x1401   :  { %v3666_v11 = vpop.f32.mrb[24].mxu0 }
0x1402   :  { %v2703_v17 = vpop.f32.mrb[25].mxu0  ;;  %v2724_v23 = vadd.f32 %v4052_v16, %v3666_v11 }
0x1403   :  { %v2722_v15 = vadd.f32 %v4052_v16, %v2703_v17  ;;  %v3667_v21 = vpop.f32.mrb[26].mxu0 }
0x1404   :  { %v2706_v13 = vpop.f32.mrb[27].mxu0  ;;  %v2725_v28 = vadd.f32 %v4052_v16, %v3667_v21  ;;  %v2728_v29 = vadd.f32 %v2724_v23, %v4732_v34 }
0x1405   :  { %v2726_v44 = vadd.f32 %v2722_v15, %v4725_v27  ;;  %v2723_v46 = vadd.f32 %v4052_v16, %v2706_v13 }
0x1406   :  { %v2729_v45 = vadd.f32 %v2725_v28, %v4734_v55  ;;  %v2736_v12 = vsel %vm184_vm0, %v2728_v29, 0.0 }
0x1407   :  { %v2727_v48 = vadd.f32 %v2723_v46, %v4727_v30  ;;  %v2730_v59 = vsel %vm184_vm0, %v2726_v44, 0.0 }
0x1408   :  { %2731 = vadd.xlane.f32.xlu1 %v2730_v59  ;;  %v2739_v41 = vsel %vm184_vm0, %v2729_v45, 0.0 }
0x1409   :  { %v2733_v53 = vsel %vm184_vm0, %v2727_v48, 0.0 }
0x140a   :  { %2734 = vadd.xlane.f32.xlu0 %v2733_v53 }
0x140c   :  { %2737 = vadd.xlane.f32.xlu1 %v2736_v12 }
0x140e   :  { %2740 = vadd.xlane.f32.xlu0 %v2739_v41 }
0x1495   :  { %v2732_v27 = vpop.xlane.xlu1 %2731 }
0x1496   :  { %v2742_v25 = vmul.f32 0.03125, %v2732_v27 }
0x1497   :  { %v2735_v18 = vpop.xlane.xlu0 %2734 }
0x1498   :  { %v2746_v34 = vsub.f32 %v2726_v44, %v2742_v25  ;;  %v2743_v1 = vmul.f32 0.03125, %v2735_v18  ;;  %v4055_v44 = vld [vmem:[%s5174_s10] ss:$0 sm:$0xff] }
0x1499   :  { %v2738_v30 = vpop.xlane.xlu1 %2737 }
0x149a   :  { %v2747_v33 = vsub.f32 %v2727_v48, %v2743_v1  ;;  %v2744_v43 = vmul.f32 0.03125, %v2738_v30  ;;  %v2750_v36 = vmul.f32 %v2746_v34, %v2746_v34 }
0x149b   :  { %v2741_v57 = vpop.xlane.xlu0 %2740 }
0x149c   :  { %v2748_v55 = vsub.f32 %v2728_v29, %v2744_v43  ;;  %v2745_v0 = vmul.f32 0.03125, %v2741_v57  ;;  %v2754_v52 = vsel %vm184_vm0, %v2750_v36, 0.0  ;;  %v2751_v50 = vmul.f32 %v2747_v33, %v2747_v33 }
0x149d   :  { %2755 = vadd.xlane.f32.xlu1 %v2754_v52 }
0x149e   :  { %v2749_v49 = vsub.f32 %v2729_v45, %v2745_v0  ;;  %v2757_v61 = vsel %vm184_vm0, %v2751_v50, 0.0  ;;  %v2752_v32 = vmul.f32 %v2748_v55, %v2748_v55 }
0x149f   :  { %2758 = vadd.xlane.f32.xlu0 %v2757_v61 }
0x14a0   :  { %v2760_v19 = vsel %vm184_vm0, %v2752_v32, 0.0  ;;  %v2753_v54 = vmul.f32 %v2749_v49, %v2749_v49 }
0x14a1   :  { %2761 = vadd.xlane.f32.xlu1 %v2760_v19 }
0x14a2   :  { %v2763_v20 = vsel %vm184_vm0, %v2753_v54, 0.0 }
0x14a3   :  { %2764 = vadd.xlane.f32.xlu0 %v2763_v20 }
0x152a   :  { %v2756_v60 = vpop.xlane.xlu1 %2755 }
0x152b   :  { %v2766_v62 = vmul.f32 0.03125, %v2756_v60 }
0x152c   :  { %v2759_v5 = vpop.xlane.xlu0 %2758 }
0x152d   :  { %v2770_v24 = vadd.f32 1e-05, %v2766_v62  ;;  %v2767_v8 = vmul.f32 0.03125, %v2759_v5 }
0x152e   :  { %v2762_v47 = vpop.xlane.xlu1 %2761 }
0x152f   :  { %3997 = vrsqrt.f32 %v2770_v24  ;;  %v2771_v63 = vadd.f32 1e-05, %v2767_v8  ;;  %v2768_v51 = vmul.f32 0.03125, %v2762_v47  ;;  %v4056_v24 = vld [vmem:[%s5175_s12] ss:$0 sm:$0xff] }
0x1530   :  { %v2765_v3 = vpop.xlane.xlu0 %2764 }
0x1531   :  { %3999 = vrsqrt.f32 %v2771_v63  ;;  %v2772_v42 = vadd.f32 1e-05, %v2768_v51  ;;  %v2769_v10 = vmul.f32 0.03125, %v2765_v3 }
0x1533   :  { %4001 = vrsqrt.f32 %v2772_v42  ;;  %v2773_v4 = vadd.f32 1e-05, %v2769_v10 }
0x1535   :  { %4003 = vrsqrt.f32 %v2773_v4  ;;  %v4071_v4 = vmov 0.0  }
0x1536   :  { %3696 = vmatprep.subr.bf16.mxu0 %v4071_v4 }
0x1539   :  { %v3998_v40 = vpop.eup %3997 }
0x153a   :  { %v2778_v22 = vmul.f32 %v3998_v40, %v2746_v34  ;;  %v3841_v40 = vld [vmem:[%s5178_s15] sm:$0xff]  }
0x153b   :  { %v4000_v26 = vpop.eup %3999 }
0x153c   :  { %v2779_v2 = vmul.f32 %v4000_v26, %v2747_v33  ;;  %v2782_v37 = vmul.f32 %v4053_v56, %v2778_v22  ;;  %v2981_v22 = vsel %vm184_vm0, %v3841_v40, 0 }
0x153d   :  { %v4002_v9 = vpop.eup %4001 }
0x153e   :  { %v2780_v38 = vmul.f32 %v4002_v9, %v2748_v55  ;;  %v2783_v6 = vmul.f32 %v4053_v56, %v2779_v2  ;;  %v2786_v14 = vadd.f32 %v4054_v58, %v2782_v37 }
0x153f   :  { %v4004_v39 = vpop.eup %4003 }
0x1540   :  { %v2784_v31 = vmul.f32 %v4053_v56, %v2780_v38  ;;  %v2781_v35 = vmul.f32 %v4004_v39, %v2749_v49  ;;  %v2787_v11 = vadd.f32 %v4054_v58, %v2783_v6 }
0x1542   :  { %v2785_v17 = vmul.f32 %v4053_v56, %v2781_v35  ;;  %v2790_v16 = vpack.c.bf16 %v2787_v11, %v2786_v14  ;;  %v2788_v23 = vadd.f32 %v4054_v58, %v2784_v31 }
0x1544   :  { %3684 = vmatprep.mubr.msk.bf16.mxu1 %vm184_vm0, %v2790_v16  ;;  %v2789_v15 = vadd.f32 %v4054_v58, %v2785_v17  ;;  %v3842_v58 = vld [vmem:[%s5178_s15 + $0x8] sm:$0xff]   ;;  %v3844_v16 = vld [vmem:[%s5178_s15 + $0x18] sm:$0xff]  }
0x1545   :  { %v2984_v14 = vsel %vm184_vm0, %v3842_v58, 0 }
0x1546   :  { %v2791_v21 = vpack.c.bf16 %v2789_v15, %v2788_v23  ;;  %v2990_v23 = vsel %vm184_vm0, %v3844_v16, 0 }
0x1548   :  { %3685 = vmatmul.mubr.msk.bf16.vlgmr.msra.gmra.mrb[60].mxu1 %vm184_vm0, %v2791_v21  ;;  %v3033_v21 = vld [vmem:[%s5179_s2] sm:$0x1f] }
0x161b   :  { %v3686_v13 = vpop.f32.mrb[60].mxu1 }
0x161c   :  { %v2841_v28 = vadd.f32 %v4055_v44, %v3686_v13  ;;  %v2832_v46 = vpop.f32.mrb[61].mxu1  ;;  %v3266_v13 = vld [vmem:[%s5179_s2 + $0x8] sm:$0x1f] }
0x161d   :  { %v2833_v29 = vadd.f32 %v4055_v44, %v2832_v46  ;;  %v3687_v48 = vpop.f32.mrb[62].mxu1 }
0x161e   :  { %v2853_v59 = vmul.f32 0.70710677, %v2841_v28  ;;  %v2844_v45 = vadd.f32 %v4055_v44, %v3687_v48  ;;  %v2835_v53 = vpop.f32.mrb[63].mxu1  ;;  %v2849_v36 = vmul.f32 0.5, %v2841_v28 }
0x161f   :  { %v2851_v12 = vmul.f32 0.70710677, %v2833_v29  ;;  %v2836_v41 = vadd.f32 %v4055_v44, %v2835_v53  ;;  %v2847_v0 = vmul.f32 0.5, %v2833_v29  ;;  %v5130_v44 = vrot.slane %v3266_v13, 3 }
0x1620   :  { %4005 = verf.f32 %v2853_v59  ;;  %v2854_v27 = vmul.f32 0.70710677, %v2844_v45  ;;  %v2850_v57 = vmul.f32 0.5, %v2844_v45 }
0x1621   :  { %4007 = verf.f32 %v2851_v12  ;;  %v2852_v25 = vmul.f32 0.70710677, %v2836_v41  ;;  %v2848_v52 = vmul.f32 0.5, %v2836_v41  ;;  %v3037_v28 = vsel %vm2954_vm11, %v3033_v21, %v5130_v44 }
0x1622   :  { %4009 = verf.f32 %v2854_v27  ;;  %v3039_v46 = vcvt.s32.f32 %v5130_v44  ;;  %v3038_v29 = vcvt.s32.f32 %v3037_v28  ;;  %v3058_v48 = vsub.s32 1, %v3037_v28 }
0x1623   :  { %4011 = verf.f32 %v2852_v25  ;;  %v3059_v45 = vsub.s32 1, %v5130_v44 }
0x1624   :  { %v3060_v59 = vmul.u32 63, %v3058_v48 }
0x1625   :  { %v3061_v53 = vmul.u32 63, %v3059_v45 }
0x162a   :  { %v4006_v18 = vpop.eup %4005 }
0x162b   :  { %v4008_v34 = vpop.eup %4007  ;;  %v2861_v1 = vadd.f32 1.0, %v4006_v18 }
0x162c   :  { %v4010_v30 = vpop.eup %4009  ;;  %v2859_v33 = vadd.f32 1.0, %v4008_v34 }
0x162d   :  { %v4012_v43 = vpop.eup %4011  ;;  %v2862_v55 = vadd.f32 1.0, %v4010_v30  ;;  %v2865_v49 = vmul.f32 %v2861_v1, %v2849_v36  ;;  %v4057_v36 = vld [vmem:[%s5176_s13] ss:$0 sm:$0xff] }
0x162e   :  { %v2860_v50 = vadd.f32 1.0, %v4012_v43  ;;  %v2863_v32 = vmul.f32 %v2859_v33, %v2847_v0  ;;  %v4058_v0 = vld [vmem:[%s5177_s14] ss:$0 sm:$0xff] }
0x162f   :  { %v2866_v61 = vmul.f32 %v2862_v55, %v2850_v57 }
0x1630   :  { %v2864_v19 = vmul.f32 %v2860_v50, %v2848_v52 }
0x1631   :  { %v2868_v54 = vpack.c.bf16 %v2866_v61, %v2865_v49 }
0x1632   :  { %v2867_v20 = vpack.c.bf16 %v2864_v19, %v2863_v32 }
0x1634   :  { %3692 = vmatprep.mubr.bf16.mxu0 %v2867_v20 }
0x1635   :  { %3693 = vmatmul.mubr.bf16.vlgmr.msra.gmra.mrb[28].mxu0 %v2868_v54  ;;  %v4075_v54 = vmov 0  }
0x1636   :  { %3697 = vmatpush3.bf16.xpose.msra.mxu0 %v2981_v22  ;;  %3704 = vmatprep.mubr.msk.bf16.mxu0 %vm4072_vm10, %v4071_v4 }
0x1637   :  { %3698 = vmatprep.subr.bf16.mxu0 %v4071_v4 }
0x163e   :  { %3699 = vmatpush3.bf16.xpose.msra.mxu0 %v2984_v14 }
0x163f   :  { %3700 = vmatprep.subr.bf16.mxu0 %v4071_v4 }
0x1708   :  { %v3694_v60 = vpop.f32.mrb[28].mxu0 }
0x1709   :  { %v2903_v62 = vpop.f32.mrb[29].mxu0 }
0x170a   :  { %v3695_v5 = vpop.f32.mrb[30].mxu0 }
0x170b   :  { %v2913_v8 = vadd.f32 %v4056_v24, %v3695_v5  ;;  %v2905_v47 = vpop.f32.mrb[31].mxu0 }
0x170c   :  { %v2906_v63 = vadd.f32 %v4056_v24, %v2905_v47 }
0x170d   :  { %v2917_v51 = vadd.f32 %v2913_v8, %v2789_v15  ;;  %v4073_v15 = vmov 1  }
0x170e   :  { %v2916_v3 = vadd.f32 %v2906_v63, %v2787_v11  ;;  %v3843_v11 = vld [vmem:[%s5178_s15 + $0x10] sm:$0xff]   ;;  %3813 = vset.pattern.permute.xlu1 %v4073_v15  ;;  %3814 = vset.pattern.permute.xlu0 %v4073_v15  ;;  %s4074_s15 = smov 127  }
0x170f   :  { %v2921_v42 = vsel %vm184_vm0, %v2917_v51, 0.0  ;;  %v2987_v17 = vsel %vm184_vm0, %v3843_v11, 0 }
0x1710   :  { %2922 = vadd.xlane.f32.xlu0 %v2921_v42  ;;  %v2918_v10 = vsel %vm184_vm0, %v2916_v3, 0.0  ;;  %3701 = vmatpush3.bf16.xpose.msra.mxu0 %v2987_v17 }
0x1711   :  { %2919 = vadd.xlane.f32.xlu1 %v2918_v10  ;;  %3702 = vmatprep.subr.bf16.mxu0 %v4071_v4 }
0x1718   :  { %3703 = vmatpush3.bf16.xpose.msra.mxu0 %v2990_v23 }
0x179d   :  { %v2923_v26 = vpop.xlane.xlu0 %2922 }
0x179e   :  { %v2925_v2 = vmul.f32 0.03125, %v2923_v26  ;;  %v2920_v56 = vpop.xlane.xlu1 %2919 }
0x179f   :  { %v2924_v37 = vmul.f32 0.03125, %v2920_v56 }
0x17a0   :  { %v2927_v9 = vsub.f32 %v2917_v51, %v2925_v2 }
0x17a1   :  { %v2926_v38 = vsub.f32 %v2916_v3, %v2924_v37 }
0x17a2   :  { %v2929_v6 = vmul.f32 %v2927_v9, %v2927_v9 }
0x17a3   :  { %v2928_v39 = vmul.f32 %v2926_v38, %v2926_v38 }
0x17a4   :  { %v2933_v31 = vsel %vm184_vm0, %v2929_v6, 0.0 }
0x17a5   :  { %2934 = vadd.xlane.f32.xlu0 %v2933_v31  ;;  %v2930_v35 = vsel %vm184_vm0, %v2928_v39, 0.0 }
0x17a6   :  { %2931 = vadd.xlane.f32.xlu1 %v2930_v35 }
0x17b7   :  { %3042 = vperm.xlu1 %3813, %v3038_v29  }
0x17bb   :  { %3047 = vperm.xlu0 %3814, %v3039_v46   ;;  %3052 = vrot.lane.b32.xlu1 %v3037_v28, %s4074_s15 }
0x17bc   :  { %3815 = vset.pattern.permute.xlu1 %v4075_v54 }
0x17bf   :  { %3054 = vrot.lane.b32.xlu1 %v5130_v44, %s4074_s15  ;;  %3816 = vset.pattern.permute.xlu0 %v4075_v54 }
0x17c3   :  { %3062 = vrot.lane.b32.xlu1 %v3060_v59, %s4074_s15 }
0x17c7   :  { %3064 = vrot.lane.b32.xlu1 %v3061_v53, %s4074_s15 }
0x1832   :  { %v2935_v12 = vpop.xlane.xlu0 %2934 }
0x1833   :  { %v2937_v41 = vmul.f32 0.03125, %v2935_v12  ;;  %v2932_v27 = vpop.xlane.xlu1 %2931 }
0x1834   :  { %v2936_v25 = vmul.f32 0.03125, %v2932_v27 }
0x1835   :  { %v2939_v18 = vadd.f32 1e-05, %v2937_v41 }
0x1836   :  { %v2938_v34 = vadd.f32 1e-05, %v2936_v25 }
0x1837   :  { %4013 = vrsqrt.f32 %v2939_v18  ;;  %v3043_v20 = vpop.permute.xlu1 %3042 }
0x1838   :  { %4015 = vrsqrt.f32 %v2938_v34 }
0x183a   :  { %v3048_v62 = vpop.permute.xlu0 %3047 }
0x183b   :  { %v3053_v47 = vpop.permute.xlu1 %3052 }
0x183c   :  { %v3056_v40 = vmul.u32 %v3053_v47, %v3037_v28 }
0x183f   :  { %v3055_v10 = vpop.permute.xlu1 %3054 }
0x1840   :  { %v3057_v2 = vmul.u32 %v3055_v10, %v5130_v44 }
0x1841   :  { %v4014_v1 = vpop.eup %4013 }
0x1842   :  { %v4016_v30 = vpop.eup %4015  ;;  %v2943_v33 = vmul.f32 %v4014_v1, %v2927_v9 }
0x1843   :  { %v2942_v43 = vmul.f32 %v4016_v30, %v2926_v38  ;;  %v3063_v22 = vpop.permute.xlu1 %3062 }
0x1844   :  { %v2945_v57 = vmul.f32 %v4057_v36, %v2943_v33  ;;  %v3066_v26 = vadd.s32 %v3063_v22, %v3056_v40 }
0x1845   :  { %v2944_v55 = vmul.f32 %v4057_v36, %v2942_v43 }
0x1846   :  { %v2947_v52 = vadd.f32 %v4058_v0, %v2945_v57 }
0x1847   :  { %v2946_v50 = vadd.f32 %v4058_v0, %v2944_v55  ;;  %v3065_v56 = vpop.permute.xlu1 %3064 }
0x1848   :  { %v2952_v49 = vrot.slane %v2947_v52, 5  ;;  %v3067_v37 = vadd.s32 %v3065_v56, %v3057_v2 }
0x1849   :  { %v2949_v61 = vrot.slane %v2946_v50, 2 }
0x184a   :  { %vm3115_vm1 = vcmp.ne.s32.totalorder %v3067_v37, 63 }
0x184b   :  { %v2955_v32 = vsel %vm2954_vm11, %v2949_v61, %v2952_v49  ;;  %v3270_v33 = vsel %vm3115_vm1, 1.0, %v4071_v4 }
0x184c   :  { %v2956_v19 = vpack.c.bf16 %v2952_v49, %v2955_v32  ;;  %v3140_v52 = vsel %vm3126_vm3, %v3270_v33, 0.0 }
0x184e   :  { %3705 = vmatmul.mubr.msk.bf16.vlgmr.msra.gmra.mrb[32].mxu0 %vm184_vm0, %v2956_v19  ;;  %vm3114_vm0 = vcmp.ne.s32.totalorder %v3066_v26, 63 }
0x184f   :  { %v3269_v18 = vsel %vm3114_vm0, 1.0, %v4071_v4 }
0x1850   :  { %v3139_v0 = vsel %vm3124_vm2, %v3269_v18, 0.0 }
0x1851   :  { %v3141_v50 = vadd.f32 %v3140_v52, %v3139_v0 }
0x1921   :  { %v3026_v60 = vpop.f32.mrb[32].mxu0 }
0x1922   :  { %v3050_v5 = vmul.f32 %v3043_v20, %v3026_v60  ;;  %v3706_v24 = vpop.f32.mrb[33].mxu0 }
0x1923   :  { %v3029_v8 = vpop.f32.mrb[34].mxu0 }
0x1924   :  { %v3051_v63 = vmul.f32 %v3048_v62, %v3029_v8  ;;  %v3707_v51 = vpop.f32.mrb[35].mxu0  ;;  %v3090_v3 = vsel %vm3082_vm12, %v3050_v5, -inf }
0x1925   :  { %3091 = vmax.xlane.f32.xlu1 %v3090_v3 }
0x1926   :  { %v3093_v42 = vsel %vm3086_vm13, %v3051_v63, -inf }
0x1927   :  { %3094 = vmax.xlane.f32.xlu0 %v3093_v42 }
0x1936   :  { %3069 = vperm.xlu1 %3815, %v3066_v26  }
0x193d   :  { %3072 = vperm.xlu0 %3816, %v3067_v37  }
0x19b2   :  { %v3092_v9 = vpop.xlane.xlu1 %3091 }
0x19b3   :  { %v3096_v38 = vsub.f32 %v3050_v5, %v3092_v9 }
0x19b4   :  { %v3095_v6 = vpop.xlane.xlu0 %3094 }
0x19b5   :  { %v3098_v39 = vmul.f32 1.442695, %v3096_v38  ;;  %v3097_v31 = vsub.f32 %v3051_v63, %v3095_v6 }
0x19b6   :  { %v3070_v58 = vpop.permute.xlu1 %3069 }
0x19b7   :  { %4017 = vpow2.f32 %v3098_v39  ;;  %v3100_v35 = vmul.f32 1.442695, %v3097_v31  ;;  %vm3074_vm14 = vcmp.eq.s32.totalorder %v4179_v7, %v3070_v58 }
0x19b8   :  { %v3267_v11 = vsel %vm3074_vm14, 1.0, %v4071_v4 }
0x19b9   :  { %4019 = vpow2.f32 %v3100_v35  ;;  %v3080_v16 = vmul.f32 %v3267_v11, %v3050_v5 }
0x19bb   :  { %v3083_v28 = vsel %vm3082_vm12, %v3080_v16, 0.0 }
0x19bc   :  { %v3073_v14 = vpop.permute.xlu0 %3072 }
0x19bd   :  { %vm3075_vm15 = vcmp.eq.s32.totalorder %v4179_v7, %v3073_v14 }
0x19be   :  { %v3268_v21 = vsel %vm3075_vm15, 1.0, %v4071_v4 }
0x19bf   :  { %v3081_v44 = vmul.f32 %v3268_v21, %v3051_v63 }
0x19c1   :  { %v4018_v17 = vpop.eup %4017  ;;  %v3087_v46 = vsel %vm3086_vm13, %v3081_v44, 0.0 }
0x19c2   :  { %v3102_v23 = vsel %vm3082_vm12, %v4018_v17, 0.0 }
0x19c3   :  { %v4020_v15 = vpop.eup %4019  ;;  %3103 = vadd.xlane.f32.xlu1 %v3102_v23 }
0x19c4   :  { %v3105_v13 = vsel %vm3086_vm13, %v4020_v15, 0.0 }
0x19c5   :  { %3106 = vadd.xlane.f32.xlu0 %v3105_v13 }
0x19c7   :  { %3084 = vadd.xlane.f32.xlu1 %v3083_v28 }
0x19cb   :  { %3088 = vadd.xlane.f32.xlu1 %v3087_v46 }
0x1a50   :  { %v3104_v29 = vpop.xlane.xlu1 %3103 }
0x1a51   :  { %4021 = vlog2.f32 %v3104_v29 }
0x1a52   :  { %v3107_v7 = vpop.xlane.xlu0 %3106 }
0x1a53   :  { %4023 = vlog2.f32 %v3107_v7 }
0x1a54   :  { %v3085_v59 = vpop.xlane.xlu1 %3084 }
0x1a58   :  { %v3089_v34 = vpop.xlane.xlu1 %3088 }
0x1a5b   :  { %v4022_v48 = vpop.eup %4021 }
0x1a5c   :  { %v3109_v45 = vmul.f32 0.6931472, %v4022_v48 }
0x1a5d   :  { %v4024_v53 = vpop.eup %4023 }
0x1a5e   :  { %v3111_v12 = vmul.f32 0.6931472, %v4024_v53  ;;  %v3112_v41 = vadd.f32 %v3109_v45, %v3092_v9 }
0x1a60   :  { %v3120_v27 = vsub.f32 %v3112_v41, %v3085_v59  ;;  %v3113_v25 = vadd.f32 %v3111_v12, %v3095_v6 }
0x1a62   :  { %v3122_v1 = vmul.f32 %v3269_v18, %v3120_v27  ;;  %v3121_v30 = vsub.f32 %v3113_v25, %v3089_v34 }
0x1a64   :  { %v3123_v43 = vmul.f32 %v3270_v33, %v3121_v30  ;;  %v3125_v36 = vsel %vm3124_vm2, %v3122_v1, 0.0 }
0x1a66   :  { %v3127_v57 = vsel %vm3126_vm3, %v3123_v43, 0.0 }
0x1a67   :  { %v3128_v55 = vadd.f32 %v3127_v57, %v3125_v36 }
0x1a69   :  { %3129 = vadd.xlane.f32.xlu1 %v3128_v55 }
0x1a6d   :  { %3142 = vadd.xlane.f32.xlu1 %v3141_v50 }
0x1af6   :  { %v3130_v49 = vpop.xlane.xlu1 %3129 }
0x1af7   :  { %v3131_v61 = vrot.slane %v3130_v49, 4 }
0x1af9   :  { %v3132_v32 = vadd.f32 %v3131_v61, %v3130_v49 }
0x1afa   :  { %v3143_v19 = vpop.xlane.xlu1 %3142 }
0x1afb   :  { %v3133_v54 = vrot.slane %v3132_v32, 2  ;;  %v3144_v20 = vrot.slane %v3143_v19, 4 }
0x1afd   :  { %v3145_v4 = vadd.f32 %v3144_v20, %v3143_v19  ;;  %v3134_v60 = vadd.f32 %v3133_v54, %v3132_v32 }
0x1aff   :  { %v3146_v62 = vrot.slane %v3145_v4, 2  ;;  %v3135_v5 = vrot.slane %v3134_v60, 1 }
0x1b01   :  { %v3147_v24 = vadd.f32 %v3146_v62, %v3145_v4  ;;  %v3136_v8 = vadd.f32 %v3135_v5, %v3134_v60 }
0x1b03   :  { %3792 = vpush %v3136_v8  ;;  %v3148_v47 = vrot.slane %v3147_v24, 1 }
0x1b05   :  { %v3149_v63 = vadd.f32 %v3148_v47, %v3147_v24 }
0x1b07   :  { %3794 = vpush %v3149_v63 }
0x1b34   :  { %s3793_s13 = spop %3792 }
0x1b35   :  { %v3138_v51 = vstv %s3793_s13 }
0x1b38   :  { %s3795_s14 = spop %3794 }
0x1b39   :  { %v3151_v3 = vstv %s3795_s14 }
0x1b3a   :  { %v3152_v42 = vsel %vm3124_vm2, %v3138_v51, %v3151_v3 }
0x1b3b   :  { %3154 = vst.msk [vmem:[%s5180_s16] sm:$0x1] %vm3153_vm4, %v3152_v42 }

</bundles_post_ra>
